<compile_context>
chip_gen: v7x
topology: tpu7x:2x2x1
jax: 0.10.0
libtpu: 0.0.40
codegen_flags: <defaults>
</compile_context>

<pallas_src>
import jax
import jax.numpy as jnp
from jax.experimental import pallas as pl
from jax.experimental.pallas import tpu as pltpu


def _round_up(n, m):
    return (n + m - 1) // m * m


def _sigmoid(z):
    # Single EUP transcendental per element: sigmoid(z) == 0.5*(1 + tanh(z/2)).
    return 0.5 * (1.0 + jnp.tanh(0.5 * z))


def mlp_kernel(x_ref,
               w1_ref, b1_ref,
               w2_ref, b2_ref,
               w3_ref, b3_ref,
               w4_ref, b4_ref,
               w5_ref, b5_ref,
               o_ref):
    # Activations carried in bf16 (MXU-friendly), accumulation + bias + sigmoid in f32.
    def layer(h, w_ref, b_ref):
        z = jnp.dot(h, w_ref[...], preferred_element_type=jnp.float32) + b_ref[...]
        return _sigmoid(z).astype(jnp.bfloat16)

    h = x_ref[...]                      # bf16 (bt, 128)
    h = layer(h, w1_ref, b1_ref)        # (bt, 128)
    h = layer(h, w2_ref, b2_ref)        # (bt, 256)
    h = layer(h, w3_ref, b3_ref)        # (bt, 512)
    h = layer(h, w4_ref, b4_ref)        # (bt, 128)
    out = jnp.dot(h, w5_ref[...], preferred_element_type=jnp.float32) + b5_ref[...]
    o_ref[...] = out.astype(o_ref.dtype)


def phone_price_model(x, params, *, batch_tile=256):
    """5-layer MLP forward pass in one Pallas kernel, tiled over the batch."""
    (w1, b1), (w2, b2), (w3, b3), (w4, b4), (w5, b5) = params
    B, in_dim = x.shape
    out_dim = w5.shape[1]

    # Lane-dense padding: layer-1 contraction dim (e.g. 20 -> 128) and the final
    # output dim (e.g. 4 -> 128). Zero padding keeps the math identical; the
    # padded rows/cols are sliced off after the call.
    in_pad = _round_up(in_dim, 128)
    out_pad = _round_up(out_dim, 128)
    bt = batch_tile
    B_pad = _round_up(max(B, bt), bt)

    x_p = jnp.pad(x, ((0, B_pad - B), (0, in_pad - in_dim))).astype(jnp.bfloat16)
    w1_p = jnp.pad(w1, ((0, in_pad - in_dim), (0, 0))).astype(jnp.bfloat16)
    w2_p = w2.astype(jnp.bfloat16)
    w3_p = w3.astype(jnp.bfloat16)
    w4_p = w4.astype(jnp.bfloat16)
    w5_p = jnp.pad(w5, ((0, 0), (0, out_pad - out_dim))).astype(jnp.bfloat16)
    b1_p = b1.astype(jnp.float32)
    b2_p = b2.astype(jnp.float32)
    b3_p = b3.astype(jnp.float32)
    b4_p = b4.astype(jnp.float32)
    b5_p = jnp.pad(b5, ((0, 0), (0, out_pad - out_dim))).astype(jnp.float32)

    def rep(a):
        # Weight/bias blocks replicated across the batch grid (full-array blocks).
        return pl.BlockSpec(a.shape, lambda i: (0, 0))

    grid = (B_pad // bt,)
    out = pl.pallas_call(
        mlp_kernel,
        out_shape=jax.ShapeDtypeStruct((B_pad, out_pad), jnp.float32),
        grid_spec=pltpu.PrefetchScalarGridSpec(
            num_scalar_prefetch=0,
            grid=grid,
            in_specs=[
                pl.BlockSpec((bt, in_pad), lambda i: (i, 0)),
                rep(w1_p), rep(b1_p),
                rep(w2_p), rep(b2_p),
                rep(w3_p), rep(b3_p),
                rep(w4_p), rep(b4_p),
                rep(w5_p), rep(b5_p),
            ],
            out_specs=pl.BlockSpec((bt, out_pad), lambda i: (i, 0)),
        ),
        compiler_params=pltpu.CompilerParams(
            dimension_semantics=("parallel",),   # batch axis shards across v7x's 2 TCs
            vmem_limit_bytes=32 << 20,           # explicit budget, safe on v5e/v6e/v7x
        ),
    )(x_p, w1_p, b1_p, w2_p, b2_p, w3_p, b3_p, w4_p, b4_p, w5_p, b5_p)
    return out[:B, :out_dim]


def init_params(key, input_dim, output_dim):
    """Deterministic synthetic init (PyTorch Linear shapes, stored transposed)."""
    dims = [input_dim, 128, 256, 512, 128, output_dim]
    params = []
    for li, (din, dout) in enumerate(zip(dims[:-1], dims[1:])):
        kw, kb = jax.random.split(jax.random.fold_in(key, li))
        bound = 1.0 / jnp.sqrt(din)
        w = jax.random.uniform(kw, (din, dout), jnp.float32, -bound, bound)
        b = jax.random.uniform(kb, (1, dout), jnp.float32, -bound, bound)
        params.append((w, b))
    return params


def reference_forward_f32(x, params):
    h = x
    for (w, b) in params[:-1]:
        h = jax.nn.sigmoid(h @ w + b)
    w5, b5 = params[-1]
    return h @ w5 + b5


def reference_forward_bf16(x, params):
    """Mirrors the kernel numerics: bf16 matmul operands, f32 accumulation."""
    h = x.astype(jnp.bfloat16)
    for (w, b) in params[:-1]:
        z = jnp.dot(h, w.astype(jnp.bfloat16),
                    preferred_element_type=jnp.float32) + b
        h = _sigmoid(z).astype(jnp.bfloat16)
    w5, b5 = params[-1]
    return jnp.dot(h, w5.astype(jnp.bfloat16),
                   preferred_element_type=jnp.float32) + b5


if __name__ == "__main__":
    input_dim = 20   # phone-price feature count
    output_dim = 4   # price classes
    batch = 512      # 2 grid steps at batch_tile=256

    key = jax.random.PRNGKey(0)
    kx, kp = jax.random.split(key)
    x = jax.random.normal(kx, (batch, input_dim), jnp.float32)
    params = init_params(kp, input_dim, output_dim)

    out = phone_price_model(x, params, batch_tile=256)
    out = jax.block_until_ready(out)

    assert out.shape == (batch, output_dim)
    # Tight check against a reference with matched (bf16-operand) numerics.
    ref_matched = reference_forward_bf16(x, params)
    assert jnp.allclose(out, ref_matched, atol=2e-3, rtol=2e-3)
    # Loose check against the pure-f32 PyTorch-equivalent forward pass.
    ref_f32 = reference_forward_f32(x, params)
    assert jnp.allclose(out, ref_f32, atol=1e-1, rtol=1e-1)

    print("KERNEL_OK")
</pallas_src>

<mosaic_0001>
module attributes {stable_mosaic.version = 11 : i64} {
  func.func @mlp_kernel(%arg0: i32, %arg1: memref<256x128xbf16, #tpu.memory_space<vmem>>, %arg2: memref<128x128xbf16, #tpu.memory_space<vmem>>, %arg3: memref<1x128xf32, #tpu.memory_space<vmem>>, %arg4: memref<128x256xbf16, #tpu.memory_space<vmem>>, %arg5: memref<1x256xf32, #tpu.memory_space<vmem>>, %arg6: memref<256x512xbf16, #tpu.memory_space<vmem>>, %arg7: memref<1x512xf32, #tpu.memory_space<vmem>>, %arg8: memref<512x128xbf16, #tpu.memory_space<vmem>>, %arg9: memref<1x128xf32, #tpu.memory_space<vmem>>, %arg10: memref<128x128xbf16, #tpu.memory_space<vmem>>, %arg11: memref<1x128xf32, #tpu.memory_space<vmem>>, %arg12: memref<256x128xf32, #tpu.memory_space<vmem>>) attributes {dimension_semantics = [#tpu.dimension_semantics<parallel>], iteration_bounds = array<i64: 2>, scalar_prefetch = 0 : i64, scratch_operands = 0 : i64, tpu.core_type = #tpu.core_type<tc>, window_params = [{transform_indices = @transform_0, window_bounds = array<i64: 256, 128>}, {pipeline_mode = #tpu.pipeline_mode<synchronous>, transform_indices = @transform_1, window_bounds = array<i64: 128, 128>}, {pipeline_mode = #tpu.pipeline_mode<synchronous>, transform_indices = @transform_2, window_bounds = array<i64: 1, 128>}, {pipeline_mode = #tpu.pipeline_mode<synchronous>, transform_indices = @transform_3, window_bounds = array<i64: 128, 256>}, {pipeline_mode = #tpu.pipeline_mode<synchronous>, transform_indices = @transform_4, window_bounds = array<i64: 1, 256>}, {pipeline_mode = #tpu.pipeline_mode<synchronous>, transform_indices = @transform_5, window_bounds = array<i64: 256, 512>}, {pipeline_mode = #tpu.pipeline_mode<synchronous>, transform_indices = @transform_6, window_bounds = array<i64: 1, 512>}, {pipeline_mode = #tpu.pipeline_mode<synchronous>, transform_indices = @transform_7, window_bounds = array<i64: 512, 128>}, {pipeline_mode = #tpu.pipeline_mode<synchronous>, transform_indices = @transform_8, window_bounds = array<i64: 1, 128>}, {pipeline_mode = #tpu.pipeline_mode<synchronous>, transform_indices = @transform_9, window_bounds = array<i64: 128, 128>}, {pipeline_mode = #tpu.pipeline_mode<synchronous>, transform_indices = @transform_10, window_bounds = array<i64: 1, 128>}, {transform_indices = @transform_11, window_bounds = array<i64: 256, 128>}]} {
    %c0 = arith.constant 0 : index
    %c0_0 = arith.constant 0 : index
    %0 = vector.load %arg1[%c0, %c0_0] : memref<256x128xbf16, #tpu.memory_space<vmem>>, vector<256x128xbf16>
    %c0_1 = arith.constant 0 : index
    %c0_2 = arith.constant 0 : index
    %1 = vector.load %arg2[%c0_1, %c0_2] : memref<128x128xbf16, #tpu.memory_space<vmem>>, vector<128x128xbf16>
    %cst = arith.constant dense<0.000000e+00> : vector<256x128xf32>
    %2 = tpu.matmul %0, %1, %cst {dimension_numbers = #tpu.dot_dimension_numbers<[1], [0], [0], [1], [0, 0, 1, 1], [], []>} : vector<256x128xbf16>, vector<128x128xbf16>, vector<256x128xf32> -> vector<256x128xf32>
    %c0_3 = arith.constant 0 : index
    %c0_4 = arith.constant 0 : index
    %3 = vector.load %arg3[%c0_3, %c0_4] : memref<1x128xf32, #tpu.memory_space<vmem>>, vector<1x128xf32>
    %4 = vector.broadcast %3 : vector<1x128xf32> to vector<256x128xf32>
    %5 = arith.addf %2, %4 : vector<256x128xf32>
    %cst_5 = arith.constant 5.000000e-01 : f32
    %6 = vector.broadcast %cst_5 : f32 to vector<256x128xf32>
    %7 = arith.mulf %6, %5 : vector<256x128xf32>
    %8 = math.tanh %7 : vector<256x128xf32>
    %cst_6 = arith.constant 1.000000e+00 : f32
    %9 = vector.broadcast %cst_6 : f32 to vector<256x128xf32>
    %10 = arith.addf %9, %8 : vector<256x128xf32>
    %cst_7 = arith.constant 5.000000e-01 : f32
    %11 = vector.broadcast %cst_7 : f32 to vector<256x128xf32>
    %12 = arith.mulf %11, %10 : vector<256x128xf32>
    %13 = arith.truncf %12 : vector<256x128xf32> to vector<256x128xbf16>
    %c0_8 = arith.constant 0 : index
    %c0_9 = arith.constant 0 : index
    %14 = vector.load %arg4[%c0_8, %c0_9] : memref<128x256xbf16, #tpu.memory_space<vmem>>, vector<128x256xbf16>
    %cst_10 = arith.constant dense<0.000000e+00> : vector<256x256xf32>
    %15 = tpu.matmul %13, %14, %cst_10 {dimension_numbers = #tpu.dot_dimension_numbers<[1], [0], [0], [1], [0, 0, 1, 1], [], []>} : vector<256x128xbf16>, vector<128x256xbf16>, vector<256x256xf32> -> vector<256x256xf32>
    %c0_11 = arith.constant 0 : index
    %c0_12 = arith.constant 0 : index
    %16 = vector.load %arg5[%c0_11, %c0_12] : memref<1x256xf32, #tpu.memory_space<vmem>>, vector<1x256xf32>
    %17 = vector.broadcast %16 : vector<1x256xf32> to vector<256x256xf32>
    %18 = arith.addf %15, %17 : vector<256x256xf32>
    %cst_13 = arith.constant 5.000000e-01 : f32
    %19 = vector.broadcast %cst_13 : f32 to vector<256x256xf32>
    %20 = arith.mulf %19, %18 : vector<256x256xf32>
    %21 = math.tanh %20 : vector<256x256xf32>
    %cst_14 = arith.constant 1.000000e+00 : f32
    %22 = vector.broadcast %cst_14 : f32 to vector<256x256xf32>
    %23 = arith.addf %22, %21 : vector<256x256xf32>
    %cst_15 = arith.constant 5.000000e-01 : f32
    %24 = vector.broadcast %cst_15 : f32 to vector<256x256xf32>
    %25 = arith.mulf %24, %23 : vector<256x256xf32>
    %26 = arith.truncf %25 : vector<256x256xf32> to vector<256x256xbf16>
    %c0_16 = arith.constant 0 : index
    %c0_17 = arith.constant 0 : index
    %27 = vector.load %arg6[%c0_16, %c0_17] : memref<256x512xbf16, #tpu.memory_space<vmem>>, vector<256x512xbf16>
    %cst_18 = arith.constant dense<0.000000e+00> : vector<256x512xf32>
    %28 = tpu.matmul %26, %27, %cst_18 {dimension_numbers = #tpu.dot_dimension_numbers<[1], [0], [0], [1], [0, 0, 1, 1], [], []>} : vector<256x256xbf16>, vector<256x512xbf16>, vector<256x512xf32> -> vector<256x512xf32>
    %c0_19 = arith.constant 0 : index
    %c0_20 = arith.constant 0 : index
    %29 = vector.load %arg7[%c0_19, %c0_20] : memref<1x512xf32, #tpu.memory_space<vmem>>, vector<1x512xf32>
    %30 = vector.broadcast %29 : vector<1x512xf32> to vector<256x512xf32>
    %31 = arith.addf %28, %30 : vector<256x512xf32>
    %cst_21 = arith.constant 5.000000e-01 : f32
    %32 = vector.broadcast %cst_21 : f32 to vector<256x512xf32>
    %33 = arith.mulf %32, %31 : vector<256x512xf32>
    %34 = math.tanh %33 : vector<256x512xf32>
    %cst_22 = arith.constant 1.000000e+00 : f32
    %35 = vector.broadcast %cst_22 : f32 to vector<256x512xf32>
    %36 = arith.addf %35, %34 : vector<256x512xf32>
    %cst_23 = arith.constant 5.000000e-01 : f32
    %37 = vector.broadcast %cst_23 : f32 to vector<256x512xf32>
    %38 = arith.mulf %37, %36 : vector<256x512xf32>
    %39 = arith.truncf %38 : vector<256x512xf32> to vector<256x512xbf16>
    %c0_24 = arith.constant 0 : index
    %c0_25 = arith.constant 0 : index
    %40 = vector.load %arg8[%c0_24, %c0_25] : memref<512x128xbf16, #tpu.memory_space<vmem>>, vector<512x128xbf16>
    %cst_26 = arith.constant dense<0.000000e+00> : vector<256x128xf32>
    %41 = tpu.matmul %39, %40, %cst_26 {dimension_numbers = #tpu.dot_dimension_numbers<[1], [0], [0], [1], [0, 0, 1, 1], [], []>} : vector<256x512xbf16>, vector<512x128xbf16>, vector<256x128xf32> -> vector<256x128xf32>
    %c0_27 = arith.constant 0 : index
    %c0_28 = arith.constant 0 : index
    %42 = vector.load %arg9[%c0_27, %c0_28] : memref<1x128xf32, #tpu.memory_space<vmem>>, vector<1x128xf32>
    %43 = vector.broadcast %42 : vector<1x128xf32> to vector<256x128xf32>
    %44 = arith.addf %41, %43 : vector<256x128xf32>
    %cst_29 = arith.constant 5.000000e-01 : f32
    %45 = vector.broadcast %cst_29 : f32 to vector<256x128xf32>
    %46 = arith.mulf %45, %44 : vector<256x128xf32>
    %47 = math.tanh %46 : vector<256x128xf32>
    %cst_30 = arith.constant 1.000000e+00 : f32
    %48 = vector.broadcast %cst_30 : f32 to vector<256x128xf32>
    %49 = arith.addf %48, %47 : vector<256x128xf32>
    %cst_31 = arith.constant 5.000000e-01 : f32
    %50 = vector.broadcast %cst_31 : f32 to vector<256x128xf32>
    %51 = arith.mulf %50, %49 : vector<256x128xf32>
    %52 = arith.truncf %51 : vector<256x128xf32> to vector<256x128xbf16>
    %c0_32 = arith.constant 0 : index
    %c0_33 = arith.constant 0 : index
    %53 = vector.load %arg10[%c0_32, %c0_33] : memref<128x128xbf16, #tpu.memory_space<vmem>>, vector<128x128xbf16>
    %cst_34 = arith.constant dense<0.000000e+00> : vector<256x128xf32>
    %54 = tpu.matmul %52, %53, %cst_34 {dimension_numbers = #tpu.dot_dimension_numbers<[1], [0], [0], [1], [0, 0, 1, 1], [], []>} : vector<256x128xbf16>, vector<128x128xbf16>, vector<256x128xf32> -> vector<256x128xf32>
    %c0_35 = arith.constant 0 : index
    %c0_36 = arith.constant 0 : index
    %55 = vector.load %arg11[%c0_35, %c0_36] : memref<1x128xf32, #tpu.memory_space<vmem>>, vector<1x128xf32>
    %56 = vector.broadcast %55 : vector<1x128xf32> to vector<256x128xf32>
    %57 = arith.addf %54, %56 : vector<256x128xf32>
    %c0_37 = arith.constant 0 : index
    %c0_38 = arith.constant 0 : index
    %58 = vector.load %arg12[%c0_37, %c0_38] : memref<256x128xf32, #tpu.memory_space<vmem>>, vector<256x128xf32>
    tpu.vector_store %arg12[%c0_37, %c0_38], %57 {strides = array<i32>} : memref<256x128xf32, #tpu.memory_space<vmem>>, vector<256x128xf32>,
    return
  }
  func.func @transform_0(%arg0: i32) -> (i32, i32) {
    %c0_i32 = arith.constant 0 : i32
    %c0_i32_0 = arith.constant 0 : i32
    return %arg0, %c0_i32 : i32, i32
  }
  func.func @transform_1(%arg0: i32) -> (i32, i32) {
    %c0_i32 = arith.constant 0 : i32
    %c0_i32_0 = arith.constant 0 : i32
    %c0_i32_1 = arith.constant 0 : i32
    return %c0_i32, %c0_i32_0 : i32, i32
  }
  func.func @transform_2(%arg0: i32) -> (i32, i32) {
    %c0_i32 = arith.constant 0 : i32
    %c0_i32_0 = arith.constant 0 : i32
    %c0_i32_1 = arith.constant 0 : i32
    return %c0_i32, %c0_i32_0 : i32, i32
  }
  func.func @transform_3(%arg0: i32) -> (i32, i32) {
    %c0_i32 = arith.constant 0 : i32
    %c0_i32_0 = arith.constant 0 : i32
    %c0_i32_1 = arith.constant 0 : i32
    return %c0_i32, %c0_i32_0 : i32, i32
  }
  func.func @transform_4(%arg0: i32) -> (i32, i32) {
    %c0_i32 = arith.constant 0 : i32
    %c0_i32_0 = arith.constant 0 : i32
    %c0_i32_1 = arith.constant 0 : i32
    return %c0_i32, %c0_i32_0 : i32, i32
  }
  func.func @transform_5(%arg0: i32) -> (i32, i32) {
    %c0_i32 = arith.constant 0 : i32
    %c0_i32_0 = arith.constant 0 : i32
    %c0_i32_1 = arith.constant 0 : i32
    return %c0_i32, %c0_i32_0 : i32, i32
  }
  func.func @transform_6(%arg0: i32) -> (i32, i32) {
    %c0_i32 = arith.constant 0 : i32
    %c0_i32_0 = arith.constant 0 : i32
    %c0_i32_1 = arith.constant 0 : i32
    return %c0_i32, %c0_i32_0 : i32, i32
  }
  func.func @transform_7(%arg0: i32) -> (i32, i32) {
    %c0_i32 = arith.constant 0 : i32
    %c0_i32_0 = arith.constant 0 : i32
    %c0_i32_1 = arith.constant 0 : i32
    return %c0_i32, %c0_i32_0 : i32, i32
  }
  func.func @transform_8(%arg0: i32) -> (i32, i32) {
    %c0_i32 = arith.constant 0 : i32
    %c0_i32_0 = arith.constant 0 : i32
    %c0_i32_1 = arith.constant 0 : i32
    return %c0_i32, %c0_i32_0 : i32, i32
  }
  func.func @transform_9(%arg0: i32) -> (i32, i32) {
    %c0_i32 = arith.constant 0 : i32
    %c0_i32_0 = arith.constant 0 : i32
    %c0_i32_1 = arith.constant 0 : i32
    return %c0_i32, %c0_i32_0 : i32, i32
  }
  func.func @transform_10(%arg0: i32) -> (i32, i32) {
    %c0_i32 = arith.constant 0 : i32
    %c0_i32_0 = arith.constant 0 : i32
    %c0_i32_1 = arith.constant 0 : i32
    return %c0_i32, %c0_i32_0 : i32, i32
  }
  func.func @transform_11(%arg0: i32) -> (i32, i32) {
    %c0_i32 = arith.constant 0 : i32
    %c0_i32_0 = arith.constant 0 : i32
    return %arg0, %c0_i32 : i32, i32
  }
}

</mosaic_0001>

<bundles_post_ra>
// kernel: tpu_custom_call.1
= control target key start
LH: loop header
LB: loop body
LE: loop exit
PB: predicated region body
PF: predicated region fallthrough
CT: control target
= control target key end

     0   :  { %s7137_s0 = inlined_call_operand.hbm [shape: bf16[512,128], index: 0, kind: input, shape index: {}]   ;;  %s7138_s1 = inlined_call_operand.hbm [shape: bf16[128,128], index: 1, kind: input, shape index: {}]   ;;  %s7139_s2 = inlined_call_operand.vmem [shape: f32[1,128], index: 2, kind: input, shape index: {}]   ;;  %s7140_s3 = inlined_call_operand.hbm [shape: bf16[128,256], index: 3, kind: input, shape index: {}]   ;;  %s7141_s4 = inlined_call_operand.vmem [shape: f32[1,256], index: 4, kind: input, shape index: {}]   ;;  %s7142_s5 = inlined_call_operand.hbm [shape: bf16[256,512], index: 5, kind: input, shape index: {}]   ;;  %s7143_s6 = inlined_call_operand.vmem [shape: f32[1,512], index: 6, kind: input, shape index: {}]   ;;  %s7144_s7 = inlined_call_operand.hbm [shape: bf16[512,128], index: 7, kind: input, shape index: {}]   ;;  %s7145_s8 = inlined_call_operand.vmem [shape: f32[1,128], index: 8, kind: input, shape index: {}]   ;;  %s7146_s9 = inlined_call_operand.hbm [shape: bf16[128,128], index: 9, kind: input, shape index: {}]   ;;  %s7147_s10 = inlined_call_operand.vmem [shape: f32[1,128], index: 10, kind: input, shape index: {}]   ;;  %s7148_s11 = inlined_call_operand.hbm [shape: f32[512,128], index: 11, kind: output, shape index: {}]  }
   0x1   :  { %7157 = sst [smem:[#allocation23_spill]] %s7138_s1 }
   0x2   :  { %7158 = sst [smem:[#allocation24_spill]] %s7142_s5 }
   0x3   :  { %7159 = sst [smem:[#allocation25_spill]] %s7145_s8 }
   0x4   :  { %7160 = sst [smem:[#allocation26_spill]] %s7147_s10 }
   0x5   :  { %7161 = sst [smem:[#allocation27_spill]] %s7148_s11 }
   0x6   :  { %16 = vsyncpa [#allocation3], 0 }
   0x7   :  { %18 = vsyncpa [#allocation3 + $0x1], 0 }
   0x8   :  { %19 = vsyncpa [#allocation6], 0 }
   0x9   :  { %20 = vsyncpa [#allocation9], 0 }
   0xa   :  { %21 = vsyncpa [#allocation12], 0 }
   0xb   :  { %22 = vsyncpa [#allocation4], 0 }
   0xc   :  { %24 = vsyncpa [#allocation4 + $0x1], 0  ;;  %s5739_s17 = smov 0   ;;  %s5741_s18 = smov 0  }
   0xd   :  { %s5743_s19 = smov 0   ;;  %s5745_s20 = smov 0  }
   0xe LB: > { %s5663_s21 = smov [#allocation5]   ;;  %s5760_s23 = sadd.s32 4294967295, %s5661_s20   ;;  %s5661_s20 = sphi %s5745_s20, %s7198_s20   ;;  %s5657_s19 = sphi %s5743_s19, %s7197_s19   ;;  %s5653_s18 = sphi %s5741_s18, %s7196_s18   ;;  %s5649_s17 = sphi %s5739_s17, %s7195_s17  }
   0xf   : > { %s309_s22 = sshll.u32 %s5663_s21, 4  ;;  %p4071_p0 = scmp.ge.s32.totalorder %s5661_s20, 1  ;;  %s5765_s22 = int_to_ptr.vmem [resolvable:$true] %s309_s22 }
  0x10   : > { %p7152_p1 = scmp.eq.s32.totalorder %s5760_s23, 0  ;;  %p297_p2 = scmp.lt.s32.totalorder %s5661_s20, 3 }
  0x11   : > { %s5664_s25 = smov [#allocation8]   ;;  %s5665_s28 = smov [#allocation7]  }
  0x12   : > { %p5767_p3 = pnand %p4071_p0, %p297_p2  ;;  %s341_s26 = sshll.u32 %s5664_s25, 4  ;;  %s5780_s26 = int_to_ptr.vmem [resolvable:$true] %s341_s26 }
  0x13   : > { %s5782_s29 = sshll.u32 %s5665_s28, 4  ;;  %s7164_s1 = sld [smem:[#allocation23_spill]]  ;;  %s326_s29 = int_to_ptr.vmem [resolvable:$true] %s5782_s29 }
  0x14   : > { %s7162_s24 = scalar_select %p5767_p3, 1, 0 }
  0x15   : > { %p4635_p5 = pneg %p5767_p3 }
  0x17   : > { %p5776_p6 = pnand %p4635_p5, %p7152_p1 }
  0x19   : > { %s5413_s13 = scalar_lea.hbm %s7164_s1, 1024  ;;  %p5792_p8 = pneg %p5776_p6 }
  0x1a   : > { %p5414_p7 = scmp.ne.s32.totalorder %s7164_s1, %s5413_s13  ;;  %p5420_p11 = scmp.lt.u32.totalorder %s5413_s13, %s7164_s1 }
  0x1c   : > { %p5416_p9 = pnand %p5792_p8, %p5414_p7 }
  0x1e   : > { %p5417_p10 = pneg %p5416_p9 }
  0x20   : > { %p5422_p12 = pnand %p5420_p11, %p5417_p10 }
  0x22   : > { %5425 = shalt.err (!%p5422_p12)
}
  0x23   : > { %s5426_s28 = scalar_lea.vmem %s5765_s22, 1024  ;;  %p5434_p5 = scmp.lt.s32.totalorder %s5765_s22, %s5765_s22 }
  0x24   : > { %p5427_p13 = scmp.ne.s32.totalorder %s5765_s22, %s5426_s28  ;;  %p5435_p4 = scmp.lt.s32.totalorder %s5426_s28, %s5426_s28 }
  0x26   : > { %p5429_p0 = pnand %p5427_p13, %p5792_p8  ;;  %p5436_p7 = por %p5435_p4, %p5434_p5 }
  0x28   : > { %p5430_p2 = pneg %p5429_p0 }
  0x2a   : > { %p5437_p9 = pnand %p5436_p7, %p5430_p2 }
  0x2c   : > { %5440 = shalt.err (!%p5437_p9)
}
  0x2d   : > { %s7150_s30 = smov 64   ;;  %s7154_s12 = smov 4  }
  0x2e   : > { %4638 = dma.hbm_to_vmem [thread:$0]  (!%p5776_p6), %s7164_s1, 1024, %s5765_s22, [#allocation6], %s7150_s30, %s7150_s30, %s7154_s12  }
  0x2f   : > { %s7166_s5 = sld [smem:[#allocation24_spill]] }
  0x35   : > { %s5441_s25 = scalar_lea.hbm %s7166_s5, 8192 }
  0x36   : > { %p5442_p4 = scmp.ne.s32.totalorder %s7166_s5, %s5441_s25  ;;  %p5448_p12 = scmp.lt.u32.totalorder %s5441_s25, %s7166_s5 }
  0x38   : > { %p5444_p10 = pnand %p5442_p4, %p5792_p8 }
  0x3a   : > { %p5445_p11 = pneg %p5444_p10 }
  0x3c   : > { %p5450_p13 = pnand %p5448_p12, %p5445_p11 }
  0x3e   : > { %5453 = shalt.err (!%p5450_p13)
}
  0x3f   : > { %s5454_s22 = scalar_lea.vmem %s5780_s26, 8192  ;;  %p5462_p7 = scmp.lt.s32.totalorder %s5780_s26, %s5780_s26 }
  0x40   : > { %p5455_p0 = scmp.ne.s32.totalorder %s5780_s26, %s5454_s22  ;;  %p5463_p9 = scmp.lt.s32.totalorder %s5454_s22, %s5454_s22 }
  0x42   : > { %p5457_p2 = pnand %p5455_p0, %p5792_p8  ;;  %p5464_p4 = por %p5463_p9, %p5462_p7 }
  0x44   : > { %p5458_p5 = pneg %p5457_p2 }
  0x46   : > { %p5465_p10 = pnand %p5464_p4, %p5458_p5 }
  0x48   : > { %5468 = shalt.err (!%p5465_p10)
}
  0x49   : > { %s5668_s11 = smov 256   ;;  %s5669_s8 = smov 16  }
  0x4a   : > { %4644 = dma.hbm_to_vmem [thread:$0]  (!%p5776_p6), %s7166_s5, 8192, %s5780_s26, [#allocation9], %s5668_s11, %s5668_s11, %s5669_s8  }
  0x4b   : > { %s5469_s21 = scalar_lea.hbm %s7140_s3, 2048 }
  0x4c   : > { %p5470_p11 = scmp.ne.s32.totalorder %s7140_s3, %s5469_s21  ;;  %p5476_p0 = scmp.lt.u32.totalorder %s5469_s21, %s7140_s3 }
  0x4e   : > { %p5472_p12 = pnand %p5470_p11, %p5792_p8 }
  0x50   : > { %p5473_p13 = pneg %p5472_p12 }
  0x52   : > { %p5478_p2 = pnand %p5476_p0, %p5473_p13 }
  0x54   : > { %5481 = shalt.err (!%p5478_p2)
}
  0x55   : > { %s5482_s10 = scalar_lea.vmem %s326_s29, 2048  ;;  %p5490_p4 = scmp.lt.s32.totalorder %s326_s29, %s326_s29 }
  0x56   : > { %p5483_p5 = scmp.ne.s32.totalorder %s326_s29, %s5482_s10  ;;  %p5491_p10 = scmp.lt.s32.totalorder %s5482_s10, %s5482_s10 }
  0x58   : > { %p5485_p7 = pnand %p5483_p5, %p5792_p8  ;;  %p5492_p1 = por %p5491_p10, %p5490_p4 }
  0x5a   : > { %p5486_p9 = pneg %p5485_p7 }
  0x5c   : > { %p5493_p3 = pnand %p5492_p1, %p5486_p9 }
  0x5e   : > { %5496 = shalt.err (!%p5493_p3)
}
  0x5f   : > { %s5670_s26 = smov 128   ;;  %s5671_s11 = smov 8  }
  0x60   : > { %4641 = dma.hbm_to_vmem [thread:$0]  (!%p5776_p6), %s7140_s3, 2048, %s326_s29, [#allocation6], %s5670_s26, %s5670_s26, %s5671_s11  }
  0x61   : > { %s5672_s13 = smov [#allocation10]   ;;  %s5673_s15 = smov [#allocation11]  }
  0x62   : > { %s357_s14 = sshll.u32 %s5672_s13, 4  ;;  %s373_s21 = sshll.u32 %s5673_s15, 4  ;;  %s358_s14 = int_to_ptr.vmem [resolvable:$true] %s357_s14  ;;  %s374_s21 = int_to_ptr.vmem [resolvable:$true] %s373_s21 }
  0x63   : > { %s5497_s22 = scalar_lea.hbm %s7144_s7, 4096 }
  0x64   : > { %p5498_p1 = scmp.ne.s32.totalorder %s7144_s7, %s5497_s22  ;;  %p5504_p12 = scmp.lt.u32.totalorder %s5497_s22, %s7144_s7 }
  0x66   : > { %p5500_p3 = pnand %p5498_p1, %p5792_p8 }
  0x68   : > { %p5501_p11 = pneg %p5500_p3 }
  0x6a   : > { %p5506_p13 = pnand %p5504_p12, %p5501_p11 }
  0x6c   : > { %5509 = shalt.err (!%p5506_p13)
}
  0x6d   : > { %s5510_s29 = scalar_lea.vmem %s358_s14, 4096  ;;  %p5518_p7 = scmp.lt.s32.totalorder %s358_s14, %s358_s14 }
  0x6e   : > { %p5511_p0 = scmp.ne.s32.totalorder %s358_s14, %s5510_s29  ;;  %p5519_p9 = scmp.lt.s32.totalorder %s5510_s29, %s5510_s29 }
  0x70   : > { %p5513_p2 = pnand %p5511_p0, %p5792_p8  ;;  %p5520_p4 = por %p5519_p9, %p5518_p7 }
  0x72   : > { %p5514_p5 = pneg %p5513_p2 }
  0x74   : > { %p5521_p10 = pnand %p5520_p4, %p5514_p5 }
  0x76   : > { %5524 = shalt.err (!%p5521_p10)
}
  0x77   : > { %s7167_s12 = smov 4   ;;  %s7168_s26 = smov 64  }
  0x78   : > { %4647 = dma.hbm_to_vmem [thread:$0]  (!%p5776_p6), %s7144_s7, 4096, %s358_s14, [#allocation9], %s7168_s26, %s7168_s26, %s7167_s12  }
  0x79   : > { %s5525_s8 = scalar_lea.hbm %s7146_s9, 1024 }
  0x7a   : > { %p5526_p1 = scmp.ne.s32.totalorder %s7146_s9, %s5525_s8  ;;  %p5532_p12 = scmp.lt.u32.totalorder %s5525_s8, %s7146_s9 }
  0x7c   : > { %p5528_p3 = pnand %p5526_p1, %p5792_p8 }
  0x7e   : > { %p5529_p11 = pneg %p5528_p3 }
  0x80   : > { %p5534_p13 = pnand %p5532_p12, %p5529_p11 }
  0x82   : > { %5537 = shalt.err (!%p5534_p13)
}
  0x83   : > { %s5538_s22 = scalar_lea.vmem %s374_s21, 1024  ;;  %p5546_p7 = scmp.lt.s32.totalorder %s374_s21, %s374_s21 }
  0x84   : > { %p5539_p0 = scmp.ne.s32.totalorder %s374_s21, %s5538_s22  ;;  %p5547_p9 = scmp.lt.s32.totalorder %s5538_s22, %s5538_s22 }
  0x86   : > { %p5541_p2 = pnand %p5539_p0, %p5792_p8  ;;  %p5548_p4 = por %p5547_p9, %p5546_p7 }
  0x88   : > { %p5542_p5 = pneg %p5541_p2 }
  0x8a   : > { %p5549_p10 = pnand %p5548_p4, %p5542_p5 }
  0x8c   : > { %5552 = shalt.err (!%p5549_p10)
}
  0x8d   : > { %4650 = dma.hbm_to_vmem [thread:$0]  (!%p5776_p6), %s7146_s9, 1024, %s374_s21, [#allocation12], %s7168_s26, %s7168_s26, %s7167_s12  }
  0x8e   : > { %s4070_s27 = sadd.s32 4294967294, %s5661_s20   ;;  %s5902_s16 = sadd.s32 1, %s5661_s20  }
  0x8f   : > { %s37_s29 = sadd.s32 1, %s5657_s19  ;;  %s34_s1 = ssub.s32 %s5661_s20, %s5902_s16 }
  0x90   : > { %p44_p8 = scmp.ne.s32.totalorder %s5657_s19, %s5653_s18  ;;  %p35_p1 = scmp.eq.s32.totalorder %s34_s1, 0 }
  0x91   : > { %p45_p3 = scmp.eq.s32.totalorder %s5661_s20, 0  ;;  %p50_p11 = scmp.ne.s32.totalorder %s5653_s18, %s5649_s17 }
  0x92   : > { %p284_p12 = scmp.eq.s32.totalorder %s5760_s23, 1  ;;  %p7169_p0 = scmp.eq.s32.totalorder %s5760_s23, 0 }
  0x93   : > { %s5914_s5 = scalar_select %p35_p1, %s5657_s19, %s37_s29  }
  0x94   : > { %p46_p13 = por %p45_p3, %p44_p8  ;;  %p5918_p2 = por %p7169_p0, %p50_p11 }
  0x95   : > { %p5922_p6 = por %p284_p12, %p44_p8  ;;  %p290_p5 = scmp.eq.s32.totalorder %s4070_s27, 1 }
  0x96   : > { %p4664_p7 = scmp.lt.s32.totalorder %s5661_s20, 2  ;;  %s390_s30 = sand.u32 1, %s5657_s19  }
  0x97   : > { %s7171_s21 = scalar_select %p5922_p6, 1, 0 }
  0x98   : > { %p5928_p9 = por %p290_p5, %p50_p11  ;;  %s4078_s13 = sshll.u32 %s390_s30, 7 }
  0x99   : > { %s4241_s15 = sshll.u32 %s5661_s20, 11  ;;  %s394_s14 = scalar_lea.vmem [#allocation2], %s4078_s13 }
  0x9a   : > { %s7172_s8 = scalar_select %p5928_p9, 1, 0 }
  0x9b   : > { %s5936_s22 = scalar_lea.hbm %s7137_s0, %s4241_s15  ;;  %s401_s10 = sshll.u32 %s394_s14, 4  ;;  %s5942_s10 = int_to_ptr.vmem [resolvable:$true] %s401_s10 }
  0x9c   : > { %p5938_p4 = pnand %p4664_p7, %p46_p13  ;;  %s5944_s29 = scalar_lea.sflag [#allocation3], %s390_s30 }
  0x9d   : > { %s5553_s1 = scalar_lea.hbm %s5936_s22, 2048  ;;  %s5558_s25 = scalar_lea.hbm %s7137_s0, 4096 }
  0x9e   : > { %p5554_p10 = scmp.ne.s32.totalorder %s5936_s22, %s5553_s1  ;;  %p5555_p8 = pneg %p5938_p4 }
  0x9f   : > { %p5559_p11 = scmp.lt.u32.totalorder %s5936_s22, %s7137_s0  ;;  %p5560_p12 = scmp.lt.u32.totalorder %s5558_s25, %s5553_s1 }
  0xa0   : > { %p5556_p1 = pnand %p5555_p8, %p5554_p10  ;;  %p5562_p0 = scmp.lt.u32.totalorder %s5553_s1, %s5936_s22 }
  0xa1   : > { %p5561_p13 = por %p5560_p12, %p5559_p11 }
  0xa2   : > { %p5557_p3 = pneg %p5556_p1 }
  0xa3   : > { %p5563_p5 = por %p5562_p0, %p5561_p13 }
  0xa5   : > { %p5564_p7 = pnand %p5563_p5, %p5557_p3 }
  0xa7   : > { %5567 = shalt.err (!%p5564_p7)
}
  0xa8   : > { %s5568_s30 = scalar_lea.vmem %s5942_s10, 2048  ;;  %s5674_s13 = smov [#allocation2]  }
  0xa9   : > { %p5569_p10 = scmp.ne.s32.totalorder %s5942_s10, %s5568_s30  ;;  %s5573_s15 = sshll.u32 %s5674_s13, 4  ;;  %s5574_s15 = int_to_ptr.vmem [resolvable:$false] %s5573_s15 }
  0xaa   : > { %s5575_s28 = scalar_lea.vmem %s5574_s15, 4096  ;;  %p5576_p6 = scmp.lt.s32.totalorder %s5942_s10, %s5574_s15 }
  0xab   : > { %p5571_p1 = pnand %p5569_p10, %p5555_p8  ;;  %p5577_p11 = scmp.lt.s32.totalorder %s5575_s28, %s5568_s30 }
  0xad   : > { %p5572_p9 = pneg %p5571_p1  ;;  %p5578_p12 = por %p5577_p11, %p5576_p6 }
  0xaf   : > { %p5579_p13 = pnand %p5578_p12, %p5572_p9 }
  0xb1   : > { %5582 = shalt.err (!%p5579_p13)
}
  0xb2   : > { %4654 = dma.hbm_to_vmem [thread:$0]  (!%p5938_p4), %s5936_s22, 2048, %s5942_s10, %s5944_s29, %s7168_s26, %s7168_s26, %s7167_s12  }
  0xb3   : > { %p7174_p8 = scmp.ne.s32.totalorder %s7162_s24, 0 }
  0xb5   : > { %413 = sbr.rel (%p7174_p8) target bundleno = 1585 (0x631), region = 64 }
  0xbc   : > { %s5978_s1 = sand.u32 1, %s5653_s18  }
  0xbd   : > { %s4082_s25 = sshll.u32 %s5978_s1, 7  ;;  %s416_s14 = scalar_lea.sflag [#allocation3], %s5978_s1 }
  0xbe   : > { %s5982_s30 = scalar_lea.vmem [#allocation2], %s4082_s25 }
  0xbf   : > { %5628 = dma.done.wait (%p5918_p2), %s416_s14, 2048  }
  0xc0   : > { %5630 = vsyncadd (%p5918_p2), %s416_s14, 4294965248  ;;  %p7175_p6 = scmp.eq.s32.totalorder %s5760_s23, 0 }
  0xc2   : > { %5632 = dma.done.wait (%p7175_p6), [#allocation6], 3072   ;;  %p7176_p9 = pmov %p7175_p6 }
  0xc3   : > { %p7177_p4 = pmov %p7175_p6 }
  0xc4   : > { %5634 = vsyncadd (%p7176_p9), [#allocation6], 4294964224 }
  0xc5   : > { %5636 = dma.done.wait (%p7177_p4), [#allocation9], 12288   ;;  %p7178_p3 = pmov %p7177_p4 }
  0xc7   : > { %5638 = vsyncadd (%p7178_p3), [#allocation9], 4294955008  ;;  %p7179_p0 = pmov %p7178_p3 }
  0xc9   : > { %5640 = dma.done.wait (%p7179_p0), [#allocation12], 1024   ;;  %p7180_p5 = pmov %p7179_p0 }
  0xca   : > { %v4717_v0 = vld [vmem:[#allocation5] sm:$0xff]   ;;  %v4718_v1 = vld [vmem:[#allocation5 + $0x8] sm:$0xff]   ;;  %v4719_v2 = vld [vmem:[#allocation5 + $0x10] sm:$0xff]   ;;  %v5675_v40 = vmov 0   ;;  %s7189_s13 = sld [smem:[#allocation25_spill]]  ;;  %s4088_s15 = sshll.u32 %s5978_s1, 8 }
  0xcb   : > { %5642 = vsyncadd (%p7180_p5), [#allocation12], 4294966272  ;;  %4515 = vmatprep.subr.bf16.mxu0 %v4717_v0  ;;  %v4720_v3 = vld [vmem:[#allocation5 + $0x18] sm:$0xff]   ;;  %v4725_v4 = vld [vmem:[%s5982_s30] sm:$0xff]   ;;  %1125 = vmatprep.mubr.bf16.mxu1 %v5675_v40  ;;  %s7190_s14 = sld [smem:[#allocation26_spill]]  ;;  %s4242_s24 = sshll.u32 %s5760_s23, 12 }
  0xcc   : > { %4516 = vmatpush3.bf16.msra.mxu0 %v4717_v0  ;;  %4531 = vmatprep.mubr.bf16.mxu0 %v4725_v4  ;;  %v4721_v5 = vld [vmem:[#allocation5 + $0x20] sm:$0xff]   ;;  %v4722_v6 = vld [vmem:[#allocation5 + $0x28] sm:$0xff]   ;;  %v4723_v7 = vld [vmem:[#allocation5 + $0x30] sm:$0xff]   ;;  %s7191_s22 = sld [smem:[#allocation27_spill]]  ;;  %s3936_s23 = scalar_lea.sflag [#allocation4], %s5978_s1 }
  0xcd   : > { %4517 = vmatprep.subr.bf16.mxu0 %v4718_v1  ;;  %v4724_v8 = vld [vmem:[#allocation5 + $0x38] sm:$0xff]   ;;  %v4741_v9 = vld [vmem:[#allocation7 + $0x4] ss:$8 sps:$4 sm:$0xff]   ;;  %v4743_v10 = vld [vmem:[#allocation7] ss:$8 sps:$4 sm:$0xff]   ;;  %p7192_p7 = scmp.ne.s32.totalorder %s7171_s21, 0 }
  0xce   : > { %1093 = vmatprep.subr.bf16.mxu1 %v4741_v9  ;;  %v4744_v11 = vld [vmem:[#allocation7 + $0x14] ss:$8 sps:$4 sm:$0xff]   ;;  %v4746_v12 = vld [vmem:[#allocation7 + $0x10] ss:$8 sps:$4 sm:$0xff]   ;;  %v4726_v13 = vld [vmem:[%s5982_s30 + $0x8] sm:$0xff]   ;;  %s5676_s29 = smov [#allocation13]  }
  0xcf   : > { %1094 = vmatpush1.bf16.msra.mxu1 %v4743_v10  ;;  %v4727_v14 = vld [vmem:[%s5982_s30 + $0x10] sm:$0xff]   ;;  %v4728_v15 = vld [vmem:[%s5982_s30 + $0x18] sm:$0xff]   ;;  %v4729_v16 = vld [vmem:[%s5982_s30 + $0x20] sm:$0xff]  }
  0xd0   : > { %4518 = vmatpush3.bf16.msra.mxu0 %v4718_v1  ;;  %1095 = vmatprep.subr.bf16.mxu1 %v4744_v11  ;;  %v4730_v17 = vld [vmem:[%s5982_s30 + $0x28] sm:$0xff]   ;;  %v4731_v18 = vld [vmem:[%s5982_s30 + $0x30] sm:$0xff]   ;;  %v4732_v19 = vld [vmem:[%s5982_s30 + $0x38] sm:$0xff]  }
  0xd1   : > { %4519 = vmatprep.subr.bf16.mxu0 %v4719_v2  ;;  %v4733_v20 = vld [vmem:[%s5982_s30 + $0x40] sm:$0xff]   ;;  %v4734_v21 = vld [vmem:[%s5982_s30 + $0x48] sm:$0xff]   ;;  %v4735_v22 = vld [vmem:[%s5982_s30 + $0x50] sm:$0xff]  }
  0xd2   : > { %v4736_v23 = vld [vmem:[%s5982_s30 + $0x58] sm:$0xff]   ;;  %v4737_v24 = vld [vmem:[%s5982_s30 + $0x60] sm:$0xff]   ;;  %v4738_v25 = vld [vmem:[%s5982_s30 + $0x68] sm:$0xff]   ;;  %s7087_s10 = scalar_lea.hbm %s7191_s22, %s4242_s24 }
  0xd3   : > { %1096 = vmatpush1.bf16.msra.mxu1 %v4746_v12  ;;  %v4739_v26 = vld [vmem:[%s5982_s30 + $0x70] sm:$0xff]   ;;  %v4740_v27 = vld [vmem:[%s5982_s30 + $0x78] sm:$0xff]   ;;  %v4747_v28 = vld [vmem:[#allocation7 + $0x24] ss:$8 sps:$4 sm:$0xff]   ;;  %s7022_s30 = scalar_lea.vmem [#allocation13], %s4088_s15 }
  0xd4   : > { %4520 = vmatpush3.bf16.msra.mxu0 %v4719_v2  ;;  %v4749_v29 = vld [vmem:[#allocation7 + $0x20] ss:$8 sps:$4 sm:$0xff]   ;;  %1097 = vmatprep.subr.bf16.mxu1 %v4747_v28  ;;  %v4750_v30 = vld [vmem:[#allocation7 + $0x34] ss:$8 sps:$4 sm:$0xff]   ;;  %v4752_v31 = vld [vmem:[#allocation7 + $0x30] ss:$8 sps:$4 sm:$0xff]  }
  0xd5   : > { %4521 = vmatprep.subr.bf16.mxu0 %v4720_v3  ;;  %v4753_v32 = vld [vmem:[#allocation7 + $0x44] ss:$8 sps:$4 sm:$0xff]   ;;  %v4755_v33 = vld [vmem:[#allocation7 + $0x40] ss:$8 sps:$4 sm:$0xff]   ;;  %v4756_v34 = vld [vmem:[#allocation7 + $0x54] ss:$8 sps:$4 sm:$0xff]  }
  0xd6   : > { %v4758_v35 = vld [vmem:[#allocation7 + $0x50] ss:$8 sps:$4 sm:$0xff]   ;;  %v4759_v36 = vld [vmem:[#allocation7 + $0x64] ss:$8 sps:$4 sm:$0xff]   ;;  %v4761_v37 = vld [vmem:[#allocation7 + $0x60] ss:$8 sps:$4 sm:$0xff]  }
  0xd7   : > { %1098 = vmatpush1.bf16.msra.mxu1 %v4749_v29  ;;  %v4762_v38 = vld [vmem:[#allocation7 + $0x74] ss:$8 sps:$4 sm:$0xff]   ;;  %v4764_v39 = vld [vmem:[#allocation7 + $0x70] ss:$8 sps:$4 sm:$0xff]   ;;  %v6020_v41 = vld [vmem:[%s7139_s2] ss:$0 sm:$0xff] }
  0xd8   : > { %4522 = vmatpush3.bf16.msra.mxu0 %v4720_v3  ;;  %1099 = vmatprep.subr.bf16.mxu1 %v4750_v30  ;;  %v4767_v45 = vld [vmem:[#allocation8 + $0xc] ss:$16 sps:$4 sm:$0xff]   ;;  %v4765_v28 = vld [vmem:[#allocation8 + $0x8] ss:$16 sps:$4 sm:$0xff]   ;;  %s3949_s12 = sshll.u32 %s7022_s30, 4  ;;  %s7089_s12 = int_to_ptr.vmem [resolvable:$true] %s3949_s12 }
  0xd9   : > { %4523 = vmatprep.subr.bf16.mxu0 %v4721_v5  ;;  %s5583_s27 = scalar_lea.vmem %s7089_s12, 4096 }
  0xda   : > { %p5584_p2 = scmp.ne.s32.totalorder %s7089_s12, %s5583_s27 }
  0xdb   : > { %1100 = vmatpush1.bf16.msra.mxu1 %v4752_v31  ;;  %v4770_v31 = vld [vmem:[#allocation8 + $0x2c] ss:$16 sps:$4 sm:$0xff]  }
  0xdc   : > { %4524 = vmatpush3.bf16.msra.mxu0 %v4721_v5  ;;  %1101 = vmatprep.subr.bf16.mxu1 %v4753_v32  ;;  %p5585_p10 = pnand %p5584_p2, %p7192_p7 }
  0xdd   : > { %4525 = vmatprep.subr.bf16.mxu0 %v4722_v6 }
  0xde   : > { %p5586_p1 = pneg %p5585_p10 }
  0xdf   : > { %1102 = vmatpush1.bf16.msra.mxu1 %v4755_v33 }
  0xe0   : > { %4526 = vmatpush3.bf16.msra.mxu0 %v4722_v6  ;;  %1103 = vmatprep.subr.bf16.mxu1 %v4756_v34 }
  0xe1   : > { %4527 = vmatprep.subr.bf16.mxu0 %v4723_v7 }
  0xe3   : > { %1104 = vmatpush1.bf16.msra.mxu1 %v4758_v35  ;;  %v4789_v35 = vld [vmem:[#allocation8] ss:$16 sps:$4 sm:$0xff]  }
  0xe4   : > { %4528 = vmatpush3.bf16.msra.mxu0 %v4723_v7  ;;  %1105 = vmatprep.subr.bf16.mxu1 %v4759_v36  ;;  %v4791_v36 = vld [vmem:[#allocation8 + $0x4] ss:$16 sps:$4 sm:$0xff]  }
  0xe5   : > { %4529 = vmatprep.subr.bf16.mxu0 %v4724_v8 }
  0xe7   : > { %1106 = vmatpush1.bf16.msra.mxu1 %v4761_v37 }
  0xe8   : > { %4530 = vmatpush3.bf16.msra.mxu0 %v4724_v8  ;;  %1107 = vmatprep.subr.bf16.mxu1 %v4762_v38 }
  0xe9   : > { %1980 = vmatprep.subr.bf16.mxu0 %v4791_v36 }
  0xeb   : > { %4532 = vmatmul.mubr.bf16.vlgmr.msra.gmra.mrb[0].mxu0 %v4726_v13  ;;  %1108 = vmatpush1.bf16.msra.mxu1 %v4764_v39 }
  0xec   : > { %4535 = vmatprep.mubr.bf16.mxu0 %v4727_v14  ;;  %2173 = vmatprep.subr.bf16.mxu1 %v4767_v45 }
  0xed   : > { %1981 = vmatpush1.bf16.msra.mxu0 %v4789_v35  ;;  %v4777_v35 = vld [vmem:[#allocation8 + $0x88] ss:$16 sps:$4 sm:$0xff]  }
  0xf3   : > { %4536 = vmatmul.mubr.bf16.gmra.mrb[4].mxu0 %v4728_v15 }
  0xf4   : > { %4539 = vmatprep.mubr.bf16.mxu0 %v4729_v16 }
  0xfb   : > { %4540 = vmatmul.mubr.bf16.gmra.mrb[8].mxu0 %v4730_v17 }
  0xfc   : > { %4543 = vmatprep.mubr.bf16.mxu0 %v4731_v18 }
 0x103   : > { %4544 = vmatmul.mubr.bf16.gmra.mrb[12].mxu0 %v4732_v19 }
 0x104   : > { %4547 = vmatprep.mubr.bf16.mxu0 %v4733_v20 }
 0x10b   : > { %4548 = vmatmul.mubr.bf16.gmra.mrb[16].mxu0 %v4734_v21 }
 0x10c   : > { %4551 = vmatprep.mubr.bf16.mxu0 %v4735_v22 }
 0x113   : > { %4552 = vmatmul.mubr.bf16.gmra.mrb[20].mxu0 %v4736_v23 }
 0x114   : > { %4555 = vmatprep.mubr.bf16.mxu0 %v4737_v24 }
 0x11b   : > { %4556 = vmatmul.mubr.bf16.gmra.mrb[24].mxu0 %v4738_v25 }
 0x11c   : > { %4559 = vmatprep.mubr.bf16.mxu0 %v4739_v26 }
 0x123   : > { %4560 = vmatmul.mubr.bf16.gmra.mrb[28].mxu0 %v4740_v27 }
 0x1be   : > { %v4533_v42 = vpop.f32.mrb[0].mxu0 }
 0x1bf   : > { %v723_v43 = vadd.f32 %v4533_v42, %v6020_v41  ;;  %v714_v44 = vpop.f32.mrb[1].mxu0 }
 0x1c0   : > { %v715_v46 = vadd.f32 %v6020_v41, %v714_v44  ;;  %v4534_v47 = vpop.f32.mrb[2].mxu0 }
 0x1c1   : > { %v843_v48 = vmul.f32 0.5, %v723_v43  ;;  %v726_v49 = vadd.f32 %v4534_v47, %v6020_v41  ;;  %v717_v50 = vpop.f32.mrb[3].mxu0  ;;  %v4768_v43 = vld [vmem:[#allocation8 + $0x28] ss:$16 sps:$4 sm:$0xff]  }
 0x1c2   : > { %v841_v51 = vmul.f32 0.5, %v715_v46  ;;  %v718_v52 = vadd.f32 %v6020_v41, %v717_v50 }
 0x1c3   : > { %4901 = vtanh.f32 %v843_v48  ;;  %v844_v53 = vmul.f32 0.5, %v726_v49  ;;  %v4797_v49 = vld [vmem:[#allocation8 + $0x24] ss:$16 sps:$4 sm:$0xff]  }
 0x1c4   : > { %4903 = vtanh.f32 %v841_v51  ;;  %v842_v54 = vmul.f32 0.5, %v718_v52  ;;  %1982 = vmatprep.subr.bf16.mxu0 %v4797_v49 }
 0x1c5   : > { %4905 = vtanh.f32 %v844_v53 }
 0x1c6   : > { %4907 = vtanh.f32 %v842_v54  ;;  %v4537_v55 = vpop.f32.mrb[4].mxu0 }
 0x1c7   : > { %v739_v56 = vadd.f32 %v4537_v55, %v6020_v41  ;;  %v730_v57 = vpop.f32.mrb[5].mxu0  ;;  %v4773_v55 = vld [vmem:[#allocation8 + $0x4c] ss:$16 sps:$4 sm:$0xff]  }
 0x1c8   : > { %v731_v58 = vadd.f32 %v6020_v41, %v730_v57  ;;  %v4538_v59 = vpop.f32.mrb[6].mxu0 }
 0x1c9   : > { %v847_v60 = vmul.f32 0.5, %v739_v56  ;;  %v742_v61 = vadd.f32 %v4538_v59, %v6020_v41  ;;  %v733_v62 = vpop.f32.mrb[7].mxu0  ;;  %v4795_v59 = vld [vmem:[#allocation8 + $0x20] ss:$16 sps:$4 sm:$0xff]  }
 0x1ca   : > { %v845_v63 = vmul.f32 0.5, %v731_v58  ;;  %v734_v0 = vadd.f32 %v6020_v41, %v733_v62  ;;  %v4800_v62 = vld [vmem:[#allocation8 + $0x44] ss:$16 sps:$4 sm:$0xff]   ;;  %1983 = vmatpush1.bf16.msra.mxu0 %v4795_v59 }
 0x1cb   : > { %4909 = vtanh.f32 %v847_v60  ;;  %v848_v1 = vmul.f32 0.5, %v742_v61  ;;  %1984 = vmatprep.subr.bf16.mxu0 %v4800_v62 }
 0x1cc   : > { %4911 = vtanh.f32 %v845_v63  ;;  %v846_v2 = vmul.f32 0.5, %v734_v0 }
 0x1cd   : > { %v4902_v3 = vpop.eup %4901  ;;  %4913 = vtanh.f32 %v848_v1  ;;  %v4771_v1 = vld [vmem:[#allocation8 + $0x48] ss:$16 sps:$4 sm:$0xff]  }
 0x1ce   : > { %v4904_v4 = vpop.eup %4903  ;;  %v907_v5 = vadd.f32 1.0, %v4902_v3  ;;  %4915 = vtanh.f32 %v846_v2  ;;  %v4541_v6 = vpop.f32.mrb[8].mxu0 }
 0x1cf   : > { %v4906_v7 = vpop.eup %4905  ;;  %v905_v8 = vadd.f32 1.0, %v4904_v4  ;;  %v755_v9 = vadd.f32 %v4541_v6, %v6020_v41  ;;  %v746_v10 = vpop.f32.mrb[9].mxu0  ;;  %v4776_v4 = vld [vmem:[#allocation8 + $0x6c] ss:$16 sps:$4 sm:$0xff]  }
 0x1d0   : > { %v4908_v11 = vpop.eup %4907  ;;  %v908_v12 = vadd.f32 1.0, %v4906_v7  ;;  %v747_v13 = vadd.f32 %v6020_v41, %v746_v10  ;;  %v4542_v14 = vpop.f32.mrb[10].mxu0  ;;  %v6033_v19 = vmul.f32 0.5, %v907_v5 }
 0x1d1   : > { %v906_v15 = vadd.f32 1.0, %v4908_v11  ;;  %v851_v16 = vmul.f32 0.5, %v755_v9  ;;  %v758_v17 = vadd.f32 %v4542_v14, %v6020_v41  ;;  %v749_v18 = vpop.f32.mrb[11].mxu0  ;;  %v937_v23 = vmul.f32 0.5, %v905_v8  ;;  %v4798_v8 = vld [vmem:[#allocation8 + $0x40] ss:$16 sps:$4 sm:$0xff]  }
 0x1d2   : > { %v6035_v20 = vmul.f32 0.5, %v908_v12  ;;  %v849_v21 = vmul.f32 0.5, %v747_v13  ;;  %v750_v22 = vadd.f32 %v6020_v41, %v749_v18  ;;  %v4806_v13 = vld [vmem:[#allocation8 + $0x64] ss:$16 sps:$4 sm:$0xff]   ;;  %1985 = vmatpush1.bf16.msra.mxu0 %v4798_v8 }
 0x1d3   : > { %v938_v24 = vmul.f32 0.5, %v906_v15  ;;  %4917 = vtanh.f32 %v851_v16  ;;  %v852_v25 = vmul.f32 0.5, %v758_v17  ;;  %1986 = vmatprep.subr.bf16.mxu0 %v4806_v13  ;;  %v4788_v13 = vld [vmem:[#allocation8 + $0xec] ss:$16 sps:$4 sm:$0xff]  }
 0x1d4   : > { %4919 = vtanh.f32 %v849_v21  ;;  %v850_v26 = vmul.f32 0.5, %v750_v22  ;;  %v970_v27 = vpack.c.bf16 %v6035_v20, %v6033_v19  ;;  %v4774_v19 = vld [vmem:[#allocation8 + $0x68] ss:$16 sps:$4 sm:$0xff]  }
 0x1d5   : > { %v4910_v29 = vpop.eup %4909  ;;  %v969_v30 = vpack.c.bf16 %v938_v24, %v937_v23  ;;  %4921 = vtanh.f32 %v852_v25  ;;  %v4779_v25 = vld [vmem:[#allocation8 + $0x8c] ss:$16 sps:$4 sm:$0xff]  }
 0x1d6   : > { %v4912_v32 = vpop.eup %4911  ;;  %v911_v33 = vadd.f32 1.0, %v4910_v29  ;;  %4923 = vtanh.f32 %v850_v26  ;;  %v4545_v34 = vpop.f32.mrb[12].mxu0  ;;  %v4804_v29 = vld [vmem:[#allocation8 + $0x60] ss:$16 sps:$4 sm:$0xff]  }
 0x1d7   : > { %v4914_v37 = vpop.eup %4913  ;;  %v909_v38 = vadd.f32 1.0, %v4912_v32  ;;  %1126 = vmatmul.mubr.bf16.vlgmr.msra.gmra.mrb[0].mxu1 %v969_v30  ;;  %v771_v39 = vadd.f32 %v4545_v34, %v6020_v41  ;;  %v762_v42 = vpop.f32.mrb[13].mxu0  ;;  %v4809_v32 = vld [vmem:[#allocation8 + $0x84] ss:$16 sps:$4 sm:$0xff]   ;;  %1987 = vmatpush1.bf16.msra.mxu0 %v4804_v29 }
 0x1d8   : > { %v4916_v44 = vpop.eup %4915  ;;  %v6041_v45 = vmul.f32 0.5, %v911_v33  ;;  %v912_v46 = vadd.f32 1.0, %v4914_v37  ;;  %1135 = vmatprep.mubr.bf16.mxu1 %v5675_v40  ;;  %v763_v47 = vadd.f32 %v6020_v41, %v762_v42  ;;  %v4546_v48 = vpop.f32.mrb[14].mxu0  ;;  %2174 = vmatpush1.bf16.msra.mxu1 %v4765_v28 }
 0x1d9   : > { %v6045_v50 = vmul.f32 0.5, %v909_v38  ;;  %v910_v51 = vadd.f32 1.0, %v4916_v44  ;;  %v855_v52 = vmul.f32 0.5, %v771_v39  ;;  %v774_v53 = vadd.f32 %v4546_v48, %v6020_v41  ;;  %v765_v54 = vpop.f32.mrb[15].mxu0  ;;  %2175 = vmatprep.subr.bf16.mxu1 %v4770_v31  ;;  %v4782_v38 = vld [vmem:[#allocation8 + $0xac] ss:$16 sps:$4 sm:$0xff]   ;;  %1988 = vmatprep.subr.bf16.mxu0 %v4809_v32 }
 0x1da   : > { %v6048_v56 = vmul.f32 0.5, %v912_v46  ;;  %v853_v57 = vmul.f32 0.5, %v763_v47  ;;  %v766_v58 = vadd.f32 %v6020_v41, %v765_v54  ;;  %v4807_v44 = vld [vmem:[#allocation8 + $0x80] ss:$16 sps:$4 sm:$0xff]   ;;  %v4786_v32 = vld [vmem:[#allocation8 + $0xe8] ss:$16 sps:$4 sm:$0xff]  }
 0x1db   : > { %v6051_v60 = vmul.f32 0.5, %v910_v51  ;;  %4925 = vtanh.f32 %v855_v52  ;;  %v856_v61 = vmul.f32 0.5, %v774_v53  ;;  %1989 = vmatpush1.bf16.msra.mxu0 %v4807_v44 }
 0x1dc   : > { %4927 = vtanh.f32 %v853_v57  ;;  %v854_v63 = vmul.f32 0.5, %v766_v58  ;;  %v972_v0 = vpack.c.bf16 %v6048_v56, %v6041_v45  ;;  %2176 = vmatpush1.bf16.msra.mxu1 %v4768_v43  ;;  %v4780_v57 = vld [vmem:[#allocation8 + $0xa8] ss:$16 sps:$4 sm:$0xff]  }
 0x1dd   : > { %v4918_v2 = vpop.eup %4917  ;;  %v971_v3 = vpack.c.bf16 %v6051_v60, %v6045_v50  ;;  %4929 = vtanh.f32 %v856_v61  ;;  %2177 = vmatprep.subr.bf16.mxu1 %v4773_v55  ;;  %v4815_v50 = vld [vmem:[#allocation8 + $0xa4] ss:$16 sps:$4 sm:$0xff]  }
 0x1de   : > { %v4920_v5 = vpop.eup %4919  ;;  %v915_v6 = vadd.f32 1.0, %v4918_v2  ;;  %4931 = vtanh.f32 %v854_v63  ;;  %v4549_v7 = vpop.f32.mrb[16].mxu0  ;;  %v4785_v63 = vld [vmem:[#allocation8 + $0xcc] ss:$16 sps:$4 sm:$0xff]   ;;  %1990 = vmatprep.subr.bf16.mxu0 %v4815_v50  ;;  %v4792_v50 = vld [vmem:[#allocation8 + $0x108] ss:$16 sps:$4 sm:$0xff]  }
 0x1df   : > { %v4922_v9 = vpop.eup %4921  ;;  %v913_v10 = vadd.f32 1.0, %v4920_v5  ;;  %1136 = vmatmul.mubr.bf16.gmra.mrb[4].mxu1 %v970_v27  ;;  %v787_v11 = vadd.f32 %v4549_v7, %v6020_v41  ;;  %v778_v12 = vpop.f32.mrb[17].mxu0  ;;  %v4818_v7 = vld [vmem:[#allocation8 + $0xc4] ss:$16 sps:$4 sm:$0xff]  }
 0x1e0   : > { %v4924_v14 = vpop.eup %4923  ;;  %v6058_v15 = vmul.f32 0.5, %v915_v6  ;;  %v916_v16 = vadd.f32 1.0, %v4922_v9  ;;  %1145 = vmatprep.mubr.bf16.mxu1 %v5675_v40  ;;  %v779_v17 = vadd.f32 %v6020_v41, %v778_v12  ;;  %v4550_v18 = vpop.f32.mrb[18].mxu0  ;;  %2178 = vmatpush1.bf16.msra.mxu1 %v4771_v1 }
 0x1e1   : > { %v6062_v20 = vmul.f32 0.5, %v913_v10  ;;  %v914_v21 = vadd.f32 1.0, %v4924_v14  ;;  %v859_v22 = vmul.f32 0.5, %v787_v11  ;;  %v790_v23 = vadd.f32 %v4550_v18, %v6020_v41  ;;  %v781_v24 = vpop.f32.mrb[19].mxu0  ;;  %2179 = vmatprep.subr.bf16.mxu1 %v4776_v4  ;;  %v4813_v4 = vld [vmem:[#allocation8 + $0xa0] ss:$16 sps:$4 sm:$0xff]  }
 0x1e2   : > { %v6065_v26 = vmul.f32 0.5, %v916_v16  ;;  %v857_v27 = vmul.f32 0.5, %v779_v17  ;;  %v782_v28 = vadd.f32 %v6020_v41, %v781_v24  ;;  %v4783_v10 = vld [vmem:[#allocation8 + $0xc8] ss:$16 sps:$4 sm:$0xff]   ;;  %1991 = vmatpush1.bf16.msra.mxu0 %v4813_v4  ;;  %v4816_v18 = vld [vmem:[#allocation8 + $0xc0] ss:$16 sps:$4 sm:$0xff]  }
 0x1e3   : > { %v6068_v30 = vmul.f32 0.5, %v914_v21  ;;  %4933 = vtanh.f32 %v859_v22  ;;  %v860_v31 = vmul.f32 0.5, %v790_v23  ;;  %1992 = vmatprep.subr.bf16.mxu0 %v4818_v7  ;;  %v4824_v24 = vld [vmem:[#allocation8 + $0xe4] ss:$16 sps:$4 sm:$0xff]  }
 0x1e4   : > { %4935 = vtanh.f32 %v857_v27  ;;  %v858_v33 = vmul.f32 0.5, %v782_v28  ;;  %v974_v34 = vpack.c.bf16 %v6065_v26, %v6058_v15  ;;  %2180 = vmatpush1.bf16.msra.mxu1 %v4774_v19  ;;  %v4828_v26 = vld [vmem:[#allocation8 + $0x188] ss:$16 sps:$4 sm:$0xff]  }
 0x1e5   : > { %v4926_v36 = vpop.eup %4925  ;;  %v973_v37 = vpack.c.bf16 %v6068_v30, %v6062_v20  ;;  %4937 = vtanh.f32 %v860_v31  ;;  %2181 = vmatprep.subr.bf16.mxu1 %v4779_v25 }
 0x1e6   : > { %v4928_v39 = vpop.eup %4927  ;;  %v919_v42 = vadd.f32 1.0, %v4926_v36  ;;  %4939 = vtanh.f32 %v858_v33  ;;  %v4553_v43 = vpop.f32.mrb[20].mxu0  ;;  %v4794_v36 = vld [vmem:[#allocation8 + $0x10c] ss:$16 sps:$4 sm:$0xff]   ;;  %1993 = vmatpush1.bf16.msra.mxu0 %v4816_v18 }
 0x1e7   : > { %v4930_v46 = vpop.eup %4929  ;;  %1146 = vmatmul.mubr.bf16.gmra.mrb[8].mxu1 %v971_v3  ;;  %v917_v47 = vadd.f32 1.0, %v4928_v39  ;;  %v803_v48 = vadd.f32 %v4553_v43, %v6020_v41  ;;  %v794_v49 = vpop.f32.mrb[21].mxu0  ;;  %v4822_v43 = vld [vmem:[#allocation8 + $0xe0] ss:$16 sps:$4 sm:$0xff]   ;;  %1994 = vmatprep.subr.bf16.mxu0 %v4824_v24 }
 0x1e8   : > { %v4932_v51 = vpop.eup %4931  ;;  %v6075_v52 = vmul.f32 0.5, %v919_v42  ;;  %v920_v53 = vadd.f32 1.0, %v4930_v46  ;;  %1155 = vmatprep.mubr.bf16.mxu1 %v5675_v40  ;;  %v795_v54 = vadd.f32 %v6020_v41, %v794_v49  ;;  %v4554_v55 = vpop.f32.mrb[22].mxu0  ;;  %2182 = vmatpush1.bf16.msra.mxu1 %v4777_v35 }
 0x1e9   : > { %v6079_v58 = vmul.f32 0.5, %v917_v47  ;;  %v918_v59 = vadd.f32 1.0, %v4932_v51  ;;  %v863_v60 = vmul.f32 0.5, %v803_v48  ;;  %v806_v61 = vadd.f32 %v4554_v55, %v6020_v41  ;;  %v797_v62 = vpop.f32.mrb[23].mxu0  ;;  %2183 = vmatprep.subr.bf16.mxu1 %v4782_v38  ;;  %v4827_v47 = vld [vmem:[#allocation8 + $0x104] ss:$16 sps:$4 sm:$0xff]  }
 0x1ea   : > { %v6082_v1 = vmul.f32 0.5, %v920_v53  ;;  %v861_v2 = vmul.f32 0.5, %v795_v54  ;;  %v798_v3 = vadd.f32 %v6020_v41, %v797_v62  ;;  %v4803_v54 = vld [vmem:[#allocation8 + $0x12c] ss:$16 sps:$4 sm:$0xff]   ;;  %1995 = vmatpush1.bf16.msra.mxu0 %v4822_v43 }
 0x1eb   : > { %v6085_v5 = vmul.f32 0.5, %v918_v59  ;;  %4941 = vtanh.f32 %v863_v60  ;;  %v864_v6 = vmul.f32 0.5, %v806_v61  ;;  %v4825_v60 = vld [vmem:[#allocation8 + $0x100] ss:$16 sps:$4 sm:$0xff]   ;;  %1996 = vmatprep.subr.bf16.mxu0 %v4827_v47  ;;  %v4830_v47 = vld [vmem:[#allocation8 + $0x18c] ss:$16 sps:$4 sm:$0xff]  }
 0x1ec   : > { %4943 = vtanh.f32 %v861_v2  ;;  %v862_v8 = vmul.f32 0.5, %v798_v3  ;;  %v976_v9 = vpack.c.bf16 %v6082_v1, %v6075_v52  ;;  %2184 = vmatpush1.bf16.msra.mxu1 %v4780_v57  ;;  %v4833_v3 = vld [vmem:[#allocation8 + $0x124] ss:$16 sps:$4 sm:$0xff]   ;;  %v4834_v52 = vld [vmem:[#allocation8 + $0x140] ss:$16 sps:$4 sm:$0xff]  }
 0x1ed   : > { %v4934_v11 = vpop.eup %4933  ;;  %v975_v12 = vpack.c.bf16 %v6085_v5, %v6079_v58  ;;  %4945 = vtanh.f32 %v864_v6  ;;  %2185 = vmatprep.subr.bf16.mxu1 %v4785_v63  ;;  %v4836_v58 = vld [vmem:[#allocation8 + $0x144] ss:$16 sps:$4 sm:$0xff]   ;;  %v4840_v5 = vld [vmem:[#allocation8 + $0x160] ss:$16 sps:$4 sm:$0xff]  }
 0x1ee   : > { %v4936_v14 = vpop.eup %4935  ;;  %v923_v16 = vadd.f32 1.0, %v4934_v11  ;;  %4947 = vtanh.f32 %v862_v8  ;;  %v4557_v17 = vpop.f32.mrb[24].mxu0  ;;  %v4801_v11 = vld [vmem:[#allocation8 + $0x128] ss:$16 sps:$4 sm:$0xff]   ;;  %1997 = vmatpush1.bf16.msra.mxu0 %v4825_v60  ;;  %v4842_v1 = vld [vmem:[#allocation8 + $0x164] ss:$16 sps:$4 sm:$0xff]  }
 0x1ef   : > { %v4938_v19 = vpop.eup %4937  ;;  %1156 = vmatmul.mubr.bf16.gmra.mrb[12].mxu1 %v972_v0  ;;  %v921_v21 = vadd.f32 1.0, %v4936_v14  ;;  %v819_v22 = vadd.f32 %v4557_v17, %v6020_v41  ;;  %v810_v23 = vpop.f32.mrb[25].mxu0  ;;  %1998 = vmatprep.subr.bf16.mxu0 %v4833_v3 }
 0x1f0   : > { %v4940_v25 = vpop.eup %4939  ;;  %1165 = vmatprep.mubr.bf16.mxu1 %v5675_v40  ;;  %v6096_v27 = vmul.f32 0.5, %v923_v16  ;;  %v924_v28 = vadd.f32 1.0, %v4938_v19  ;;  %v811_v29 = vadd.f32 %v6020_v41, %v810_v23  ;;  %v4558_v31 = vpop.f32.mrb[26].mxu0  ;;  %2186 = vmatpush1.bf16.msra.mxu1 %v4783_v10  ;;  %v4812_v16 = vld [vmem:[#allocation8 + $0x14c] ss:$16 sps:$4 sm:$0xff]  }
 0x1f1   : > { %v6099_v33 = vmul.f32 0.5, %v921_v21  ;;  %v922_v45 = vadd.f32 1.0, %v4940_v25  ;;  %v867_v56 = vmul.f32 0.5, %v819_v22  ;;  %v822_v0 = vadd.f32 %v4558_v31, %v6020_v41  ;;  %v813_v35 = vpop.f32.mrb[27].mxu0  ;;  %2187 = vmatprep.subr.bf16.mxu1 %v4788_v13  ;;  %v4831_v21 = vld [vmem:[#allocation8 + $0x120] ss:$16 sps:$4 sm:$0xff]  }
 0x1f2   : > { %v6102_v38 = vmul.f32 0.5, %v924_v28  ;;  %v865_v39 = vmul.f32 0.5, %v811_v29  ;;  %v814_v42 = vadd.f32 %v6020_v41, %v813_v35  ;;  %v4810_v28 = vld [vmem:[#allocation8 + $0x148] ss:$16 sps:$4 sm:$0xff]   ;;  %1999 = vmatpush1.bf16.msra.mxu0 %v4831_v21 }
 0x1f3   : > { %v6105_v44 = vmul.f32 0.5, %v922_v45  ;;  %4949 = vtanh.f32 %v867_v56  ;;  %v868_v46 = vmul.f32 0.5, %v822_v0  ;;  %2000 = vmatprep.subr.bf16.mxu0 %v4836_v58 }
 0x1f4   : > { %4951 = vtanh.f32 %v865_v39  ;;  %v866_v48 = vmul.f32 0.5, %v814_v42  ;;  %v978_v49 = vpack.c.bf16 %v6102_v38, %v6096_v27  ;;  %2188 = vmatpush1.bf16.msra.mxu1 %v4786_v32  ;;  %v4821_v32 = vld [vmem:[#allocation8 + $0x16c] ss:$16 sps:$4 sm:$0xff]   ;;  %v4819_v42 = vld [vmem:[#allocation8 + $0x168] ss:$16 sps:$4 sm:$0xff]  }
 0x1f5   : > { %v4942_v51 = vpop.eup %4941  ;;  %v977_v53 = vpack.c.bf16 %v6105_v44, %v6099_v33  ;;  %4953 = vtanh.f32 %v868_v46  ;;  %2189 = vmatprep.subr.bf16.mxu1 %v4794_v36  ;;  %v4839_v27 = vld [vmem:[#allocation8 + $0x1ac] ss:$16 sps:$4 sm:$0xff]   ;;  %v4851_v33 = vld [vmem:[#allocation8 + $0x1a4] ss:$16 sps:$4 sm:$0xff]   ;;  %v4837_v38 = vld [vmem:[#allocation8 + $0x1a8] ss:$16 sps:$4 sm:$0xff]  }
 0x1f6   : > { %v4944_v55 = vpop.eup %4943  ;;  %v927_v57 = vadd.f32 1.0, %v4942_v51  ;;  %4955 = vtanh.f32 %v866_v48  ;;  %v4561_v59 = vpop.f32.mrb[28].mxu0  ;;  %2001 = vmatpush1.bf16.msra.mxu0 %v4834_v52  ;;  %v4849_v44 = vld [vmem:[#allocation8 + $0x1a0] ss:$16 sps:$4 sm:$0xff]  }
 0x1f7   : > { %v4946_v61 = vpop.eup %4945  ;;  %1166 = vmatmul.mubr.bf16.gmra.mrb[16].mxu1 %v973_v37  ;;  %v925_v62 = vadd.f32 1.0, %v4944_v55  ;;  %v835_v63 = vadd.f32 %v4561_v59, %v6020_v41  ;;  %v826_v2 = vpop.f32.mrb[29].mxu0  ;;  %2002 = vmatprep.subr.bf16.mxu0 %v4842_v1 }
 0x1f8   : > { %v4948_v4 = vpop.eup %4947  ;;  %1175 = vmatprep.mubr.bf16.mxu1 %v5675_v40  ;;  %v6116_v6 = vmul.f32 0.5, %v927_v57  ;;  %v928_v7 = vadd.f32 1.0, %v4946_v61  ;;  %v827_v8 = vadd.f32 %v6020_v41, %v826_v2  ;;  %v4562_v10 = vpop.f32.mrb[30].mxu0  ;;  %2190 = vmatpush1.bf16.msra.mxu1 %v4792_v50 }
 0x1f9   : > { %v6119_v13 = vmul.f32 0.5, %v925_v62  ;;  %v926_v20 = vadd.f32 1.0, %v4948_v4  ;;  %v871_v30 = vmul.f32 0.5, %v835_v63  ;;  %v838_v37 = vadd.f32 %v4562_v10, %v6020_v41  ;;  %v829_v14 = vpop.f32.mrb[31].mxu0  ;;  %2191 = vmatprep.subr.bf16.mxu1 %v4803_v54  ;;  %v4852_v10 = vld [vmem:[#allocation8 + $0x1c0] ss:$16 sps:$4 sm:$0xff]  }
 0x1fa   : > { %v6122_v17 = vmul.f32 0.5, %v928_v7  ;;  %v869_v18 = vmul.f32 0.5, %v827_v8  ;;  %v830_v19 = vadd.f32 %v6020_v41, %v829_v14  ;;  %2003 = vmatpush1.bf16.msra.mxu0 %v4840_v5  ;;  %v4846_v8 = vld [vmem:[#allocation8 + $0x1c8] ss:$16 sps:$4 sm:$0xff]  }
 0x1fb   : > { %v958_v22 = vmul.f32 0.5, %v926_v20  ;;  %4957 = vtanh.f32 %v871_v30  ;;  %v872_v23 = vmul.f32 0.5, %v838_v37  ;;  %v4855_v20 = vld [vmem:[#allocation8 + $0x1e8] ss:$16 sps:$4 sm:$0xff]   ;;  %v4858_v30 = vld [vmem:[#allocation8 + $0x1e0] ss:$16 sps:$4 sm:$0xff]   ;;  %v1003_v37 = vlaneseq }
 0x1fc   : > { %4959 = vtanh.f32 %v869_v18  ;;  %v870_v24 = vmul.f32 0.5, %v830_v19  ;;  %v980_v25 = vpack.c.bf16 %v6122_v17, %v6116_v6  ;;  %2192 = vmatpush1.bf16.msra.mxu1 %v4801_v11  ;;  %v4857_v11 = vld [vmem:[#allocation8 + $0x1ec] ss:$16 sps:$4 sm:$0xff]   ;;  %v1001_v17 = vld [vmem:[%s7141_s4] sm:$0x3] }
 0x1fd   : > { %v4950_v29 = vpop.eup %4949  ;;  %v979_v31 = vpack.c.bf16 %v958_v22, %v6119_v13  ;;  %4961 = vtanh.f32 %v872_v23  ;;  %2193 = vmatprep.subr.bf16.mxu1 %v4812_v16  ;;  %v4860_v13 = vld [vmem:[#allocation8 + $0x1e4] ss:$16 sps:$4 sm:$0xff]   ;;  %v6162_v14 = vshrl.u32 %v1003_v37, 7 }
 0x1fe   : > { %v4952_v41 = vpop.eup %4951  ;;  %v931_v45 = vadd.f32 1.0, %v4950_v29  ;;  %4963 = vtanh.f32 %v870_v24 }
 0x1ff   : > { %v4954_v56 = vpop.eup %4953  ;;  %1176 = vmatmul.mubr.bf16.gmra.mrb[20].mxu1 %v974_v34  ;;  %v929_v0 = vadd.f32 1.0, %v4952_v41  ;;  %v1005_v16 = vsub.s32 0, %v6162_v14  ;;  %v1009_v18 = vsub.s32 1, %v6162_v14 }
 0x200   : > { %v4956_v35 = vpop.eup %4955  ;;  %1185 = vmatprep.mubr.bf16.mxu1 %v5675_v40  ;;  %v6132_v36 = vmul.f32 0.5, %v931_v45  ;;  %v932_v39 = vadd.f32 1.0, %v4954_v56  ;;  %2194 = vmatpush1.bf16.msra.mxu1 %v4810_v28 }
 0x201   : > { %v961_v43 = vmul.f32 0.5, %v929_v0  ;;  %v930_v46 = vadd.f32 1.0, %v4956_v35  ;;  %2195 = vmatprep.subr.bf16.mxu1 %v4821_v32  ;;  %v6171_v19 = vrot.slane %v1001_v17, %v1005_v16  ;;  %v6175_v21 = vrot.slane %v1001_v17, %v1009_v18  ;;  %v4865_v17 = vld [vmem:[#allocation10 + $0x48] sm:$0xff]  }
 0x202   : > { %v6134_v48 = vmul.f32 0.5, %v932_v39 }
 0x203   : > { %v962_v50 = vmul.f32 0.5, %v930_v46 }
 0x204   : > { %v982_v15 = vpack.c.bf16 %v6134_v48, %v6132_v36  ;;  %2196 = vmatpush1.bf16.msra.mxu1 %v4819_v42 }
 0x205   : > { %v4958_v34 = vpop.eup %4957  ;;  %v981_v51 = vpack.c.bf16 %v962_v50, %v961_v43  ;;  %2197 = vmatprep.subr.bf16.mxu1 %v4830_v47 }
 0x206   : > { %v4960_v54 = vpop.eup %4959  ;;  %v935_v55 = vadd.f32 1.0, %v4958_v34  ;;  %v4863_v34 = vld [vmem:[#allocation10 + $0xc0] sm:$0xff]  }
 0x207   : > { %v4962_v57 = vpop.eup %4961  ;;  %1186 = vmatmul.mubr.bf16.gmra.mrb[24].mxu1 %v975_v12  ;;  %v933_v59 = vadd.f32 1.0, %v4960_v54  ;;  %v4843_v12 = vld [vmem:[#allocation8 + $0x180] ss:$16 sps:$4 sm:$0xff]  }
 0x208   : > { %v4964_v60 = vpop.eup %4963  ;;  %1195 = vmatprep.mubr.bf16.mxu1 %v5675_v40  ;;  %v967_v61 = vmul.f32 0.5, %v935_v55  ;;  %v936_v62 = vadd.f32 1.0, %v4962_v57  ;;  %2198 = vmatpush1.bf16.msra.mxu1 %v4828_v26  ;;  %v4861_v26 = vld [vmem:[#allocation10 + $0x40] sm:$0xff]  }
 0x209   : > { %v965_v63 = vmul.f32 0.5, %v933_v59  ;;  %v934_v2 = vadd.f32 1.0, %v4964_v60  ;;  %2199 = vmatprep.subr.bf16.mxu1 %v4839_v27 }
 0x20a   : > { %v968_v3 = vmul.f32 0.5, %v936_v62 }
 0x20b   : > { %v966_v4 = vmul.f32 0.5, %v934_v2 }
 0x20c   : > { %v984_v6 = vpack.c.bf16 %v968_v3, %v967_v61  ;;  %2200 = vmatpush1.bf16.msra.mxu1 %v4837_v38 }
 0x20d   : > { %v983_v7 = vpack.c.bf16 %v966_v4, %v965_v63 }
 0x20f   : > { %1196 = vmatmul.mubr.bf16.gmra.mrb[28].mxu1 %v976_v9  ;;  %v4845_v9 = vld [vmem:[#allocation8 + $0x184] ss:$16 sps:$4 sm:$0xff]  }
 0x210   : > { %1205 = vmatprep.mubr.bf16.mxu1 %v5675_v40  ;;  %2004 = vmatprep.subr.bf16.mxu0 %v4845_v9 }
 0x211   : > { %2005 = vmatpush1.bf16.msra.mxu0 %v4843_v12 }
 0x212   : > { %2006 = vmatprep.subr.bf16.mxu0 %v4851_v33 }
 0x215   : > { %2007 = vmatpush1.bf16.msra.mxu0 %v4849_v44 }
 0x217   : > { %1206 = vmatmul.mubr.bf16.gmra.mrb[32].mxu1 %v977_v53  ;;  %v4854_v53 = vld [vmem:[#allocation8 + $0x1c4] ss:$16 sps:$4 sm:$0xff]  }
 0x218   : > { %1215 = vmatprep.mubr.bf16.mxu1 %v5675_v40  ;;  %2008 = vmatprep.subr.bf16.mxu0 %v4854_v53 }
 0x219   : > { %2009 = vmatpush1.bf16.msra.mxu0 %v4852_v10 }
 0x21a   : > { %2010 = vmatprep.subr.bf16.mxu0 %v4860_v13  ;;  %v4864_v13 = vld [vmem:[#allocation10 + $0x80] sm:$0xff]  }
 0x21d   : > { %2011 = vmatpush1.bf16.msra.mxu0 %v4858_v30 }
 0x21e   : > { %4267 = vmatprep.subr.bf16.mxu0 %v4861_v26 }
 0x21f   : > { %1216 = vmatmul.mubr.bf16.gmra.mrb[36].mxu1 %v978_v49  ;;  %v4848_v49 = vld [vmem:[#allocation8 + $0x1cc] ss:$16 sps:$4 sm:$0xff]  }
 0x220   : > { %1225 = vmatprep.mubr.bf16.mxu1 %v5675_v40  ;;  %2201 = vmatprep.subr.bf16.mxu1 %v4848_v49 }
 0x221   : > { %2202 = vmatpush1.bf16.msra.mxu1 %v4846_v8 }
 0x222   : > { %2203 = vmatprep.subr.bf16.mxu1 %v4857_v11  ;;  %v4862_v11 = vld [vmem:[#allocation10] sm:$0xff]  }
 0x225   : > { %2204 = vmatpush1.bf16.msra.mxu1 %v4855_v20 }
 0x226   : > { %4379 = vmatprep.subr.bf16.mxu1 %v4863_v34 }
 0x227   : > { %1226 = vmatmul.mubr.bf16.gmra.mrb[40].mxu1 %v979_v31 }
 0x228   : > { %1235 = vmatprep.mubr.bf16.mxu1 %v5675_v40 }
 0x22f   : > { %1236 = vmatmul.mubr.bf16.gmra.mrb[44].mxu1 %v980_v25 }
 0x230   : > { %1245 = vmatprep.mubr.bf16.mxu1 %v5675_v40 }
 0x237   : > { %1246 = vmatmul.mubr.bf16.gmra.mrb[48].mxu1 %v981_v51 }
 0x238   : > { %1255 = vmatprep.mubr.bf16.mxu1 %v5675_v40 }
 0x23f   : > { %1256 = vmatmul.mubr.bf16.gmra.mrb[52].mxu1 %v982_v15 }
 0x240   : > { %1265 = vmatprep.mubr.bf16.mxu1 %v5675_v40 }
 0x247   : > { %1266 = vmatmul.mubr.bf16.gmra.mrb[56].mxu1 %v983_v7 }
 0x248   : > { %1275 = vmatprep.mubr.bf16.mxu1 %v5675_v40 }
 0x24f   : > { %1276 = vmatmul.mubr.bf16.gmra.mrb[60].mxu1 %v984_v6 }
 0x2aa   : > { %v1127_v40 = vpop.f32.mrb[0].mxu1 }
 0x2ab   : > { %v1128_v22 = vadd.f32 %v1127_v40, %v6171_v19  ;;  %v1129_v23 = vpop.f32.mrb[1].mxu1  ;;  %v4867_v40 = vld [vmem:[#allocation10 + $0xc8] sm:$0xff]  }
 0x2ac   : > { %v1130_v24 = vadd.f32 %v1129_v23, %v6175_v21  ;;  %v1131_v25 = vpop.f32.mrb[2].mxu1 }
 0x2ad   : > { %v1286_v28 = vmul.f32 0.5, %v1128_v22  ;;  %v1132_v29 = vadd.f32 %v1131_v25, %v6171_v19  ;;  %v1133_v31 = vpop.f32.mrb[3].mxu1 }
 0x2ae   : > { %v1287_v32 = vmul.f32 0.5, %v1130_v24  ;;  %v1134_v41 = vadd.f32 %v1133_v31, %v6175_v21 }
 0x2af   : > { %4965 = vtanh.f32 %v1286_v28  ;;  %v1288_v45 = vmul.f32 0.5, %v1132_v29 }
 0x2b0   : > { %4967 = vtanh.f32 %v1287_v32  ;;  %v1289_v56 = vmul.f32 0.5, %v1134_v41 }
 0x2b1   : > { %4969 = vtanh.f32 %v1288_v45 }
 0x2b2   : > { %4971 = vtanh.f32 %v1289_v56  ;;  %v1137_v0 = vpop.f32.mrb[4].mxu1 }
 0x2b3   : > { %v1138_v35 = vadd.f32 %v1137_v0, %v6171_v19  ;;  %v1139_v36 = vpop.f32.mrb[5].mxu1 }
 0x2b4   : > { %v1140_v39 = vadd.f32 %v1139_v36, %v6175_v21  ;;  %v1141_v42 = vpop.f32.mrb[6].mxu1  ;;  %v4868_v36 = vld [vmem:[#allocation10 + $0x88] sm:$0xff]  }
 0x2b5   : > { %v1290_v43 = vmul.f32 0.5, %v1138_v35  ;;  %v1142_v46 = vadd.f32 %v1141_v42, %v6171_v19  ;;  %v1143_v47 = vpop.f32.mrb[7].mxu1  ;;  %v4866_v35 = vld [vmem:[#allocation10 + $0x8] sm:$0xff]  }
 0x2b6   : > { %v1291_v48 = vmul.f32 0.5, %v1140_v39  ;;  %v1144_v50 = vadd.f32 %v1143_v47, %v6175_v21  ;;  %v4869_v47 = vld [vmem:[#allocation10 + $0x50] sm:$0xff]  }
 0x2b7   : > { %4973 = vtanh.f32 %v1290_v43  ;;  %v1292_v15 = vmul.f32 0.5, %v1142_v46 }
 0x2b8   : > { %4975 = vtanh.f32 %v1291_v48  ;;  %v1293_v51 = vmul.f32 0.5, %v1144_v50  ;;  %v4871_v48 = vld [vmem:[#allocation10 + $0xd0] sm:$0xff]  }
 0x2b9   : > { %v4966_v54 = vpop.eup %4965  ;;  %4977 = vtanh.f32 %v1292_v15 }
 0x2ba   : > { %v4968_v55 = vpop.eup %4967  ;;  %v1414_v57 = vadd.f32 1.0, %v4966_v54  ;;  %4979 = vtanh.f32 %v1293_v51  ;;  %v1147_v59 = vpop.f32.mrb[8].mxu1 }
 0x2bb   : > { %v4970_v60 = vpop.eup %4969  ;;  %v1415_v61 = vadd.f32 1.0, %v4968_v55  ;;  %v1148_v62 = vadd.f32 %v1147_v59, %v6171_v19  ;;  %v1149_v63 = vpop.f32.mrb[9].mxu1  ;;  %v4872_v59 = vld [vmem:[#allocation10 + $0x90] sm:$0xff]  }
 0x2bc   : > { %v4972_v2 = vpop.eup %4971  ;;  %v1416_v3 = vadd.f32 1.0, %v4970_v60  ;;  %v1150_v4 = vadd.f32 %v1149_v63, %v6175_v21  ;;  %v1151_v6 = vpop.f32.mrb[10].mxu1  ;;  %v1478_v5 = vmul.f32 0.5, %v1414_v57  ;;  %v4870_v57 = vld [vmem:[#allocation10 + $0x10] sm:$0xff]   ;;  %v4873_v63 = vld [vmem:[#allocation10 + $0x58] sm:$0xff]  }
 0x2bd   : > { %v1417_v7 = vadd.f32 1.0, %v4972_v2  ;;  %v1294_v58 = vmul.f32 0.5, %v1148_v62  ;;  %v1152_v52 = vadd.f32 %v1151_v6, %v6171_v19  ;;  %v1153_v1 = vpop.f32.mrb[11].mxu1  ;;  %v1479_v33 = vmul.f32 0.5, %v1415_v61  ;;  %v4875_v2 = vld [vmem:[#allocation10 + $0xd8] sm:$0xff]  }
 0x2be   : > { %v1480_v9 = vmul.f32 0.5, %v1416_v3  ;;  %v1295_v12 = vmul.f32 0.5, %v1150_v4  ;;  %v1154_v27 = vadd.f32 %v1153_v1, %v6175_v21 }
 0x2bf   : > { %v1481_v38 = vmul.f32 0.5, %v1417_v7  ;;  %4981 = vtanh.f32 %v1294_v58  ;;  %v1296_v44 = vmul.f32 0.5, %v1152_v52 }
 0x2c0   : > { %v1542_v49 = vpack.c.bf16 %v1480_v9, %v1478_v5  ;;  %4983 = vtanh.f32 %v1295_v12  ;;  %v1297_v53 = vmul.f32 0.5, %v1154_v27 }
 0x2c1   : > { %v4974_v8 = vpop.eup %4973  ;;  %4985 = vtanh.f32 %v1296_v44  ;;  %v1543_v10 = vpack.c.bf16 %v1481_v38, %v1479_v33  ;;  %v4874_v38 = vld [vmem:[#allocation10 + $0x18] sm:$0xff]  }
 0x2c2   : > { %v4976_v20 = vpop.eup %4975  ;;  %v1418_v30 = vadd.f32 1.0, %v4974_v8  ;;  %4987 = vtanh.f32 %v1297_v53  ;;  %v1157_v37 = vpop.f32.mrb[12].mxu1  ;;  %v4876_v44 = vld [vmem:[#allocation10 + $0x98] sm:$0xff]  }
 0x2c3   : > { %v4978_v22 = vpop.eup %4977  ;;  %v1419_v23 = vadd.f32 1.0, %v4976_v20  ;;  %v1158_v24 = vadd.f32 %v1157_v37, %v6171_v19  ;;  %v1159_v25 = vpop.f32.mrb[13].mxu1  ;;  %2012 = vmatprep.mubr.bf16.mxu0 %v1543_v10  ;;  %2205 = vmatprep.mubr.bf16.mxu1 %v1543_v10 }
 0x2c4   : > { %v4980_v28 = vpop.eup %4979  ;;  %v1420_v29 = vadd.f32 1.0, %v4978_v22  ;;  %v1160_v31 = vadd.f32 %v1159_v25, %v6175_v21  ;;  %v1161_v32 = vpop.f32.mrb[14].mxu1  ;;  %2013 = vmatmul.mubr.bf16.vlgmr.msra.gmra.mrb[32].mxu0 %v1542_v49  ;;  %2206 = vmatmul.mubr.bf16.vlgmr.msra.gmra.mrb[64].mxu1 %v1542_v49  ;;  %v1482_v39 = vmul.f32 0.5, %v1418_v30  ;;  %v4880_v25 = vld [vmem:[#allocation10 + $0xa0] sm:$0xff]  }
 0x2c5   : > { %v1421_v41 = vadd.f32 1.0, %v4980_v28  ;;  %v1298_v45 = vmul.f32 0.5, %v1158_v24  ;;  %v1162_v56 = vadd.f32 %v1161_v32, %v6171_v19  ;;  %v1163_v0 = vpop.f32.mrb[15].mxu1  ;;  %4268 = vmatpush3.bf16.msra.mxu0 %v4862_v11  ;;  %4380 = vmatpush3.bf16.msra.mxu1 %v4864_v13  ;;  %v1483_v50 = vmul.f32 0.5, %v1419_v23  ;;  %v4877_v11 = vld [vmem:[#allocation10 + $0x60] sm:$0xff]   ;;  %v4881_v32 = vld [vmem:[#allocation10 + $0x68] sm:$0xff]  }
 0x2c6   : > { %v1484_v42 = vmul.f32 0.5, %v1420_v29  ;;  %v1299_v43 = vmul.f32 0.5, %v1160_v31  ;;  %v1164_v46 = vadd.f32 %v1163_v0, %v6175_v21  ;;  %4269 = vmatprep.subr.bf16.mxu0 %v4865_v17  ;;  %4381 = vmatprep.subr.bf16.mxu1 %v4867_v40  ;;  %v4879_v13 = vld [vmem:[#allocation10 + $0xe0] sm:$0xff]  }
 0x2c7   : > { %v1485_v15 = vmul.f32 0.5, %v1421_v41  ;;  %4989 = vtanh.f32 %v1298_v45  ;;  %v1300_v26 = vmul.f32 0.5, %v1162_v56  ;;  %v4878_v24 = vld [vmem:[#allocation10 + $0x20] sm:$0xff]   ;;  %v4883_v41 = vld [vmem:[#allocation10 + $0xe8] sm:$0xff]  }
 0x2c8   : > { %4991 = vtanh.f32 %v1299_v43  ;;  %v1301_v34 = vmul.f32 0.5, %v1164_v46  ;;  %v1544_v51 = vpack.c.bf16 %v1484_v42, %v1482_v39 }
 0x2c9   : > { %v4982_v54 = vpop.eup %4981  ;;  %4993 = vtanh.f32 %v1300_v26  ;;  %v1545_v55 = vpack.c.bf16 %v1485_v15, %v1483_v50  ;;  %4270 = vmatpush3.bf16.msra.mxu0 %v4866_v35  ;;  %4382 = vmatpush3.bf16.msra.mxu1 %v4868_v36  ;;  %v4882_v15 = vld [vmem:[#allocation10 + $0x28] sm:$0xff]  }
 0x2ca   : > { %v4984_v60 = vpop.eup %4983  ;;  %v1422_v61 = vadd.f32 1.0, %v4982_v54  ;;  %4995 = vtanh.f32 %v1301_v34  ;;  %v1167_v62 = vpop.f32.mrb[16].mxu1  ;;  %4271 = vmatprep.subr.bf16.mxu0 %v4869_v47  ;;  %4383 = vmatprep.subr.bf16.mxu1 %v4871_v48  ;;  %v4884_v26 = vld [vmem:[#allocation10 + $0xa8] sm:$0xff]  }
 0x2cb   : > { %v4986_v3 = vpop.eup %4985  ;;  %v1423_v4 = vadd.f32 1.0, %v4984_v60  ;;  %v1168_v6 = vadd.f32 %v1167_v62, %v6171_v19  ;;  %v1169_v7 = vpop.f32.mrb[17].mxu1  ;;  %2022 = vmatprep.mubr.bf16.mxu0 %v1545_v55  ;;  %2215 = vmatprep.mubr.bf16.mxu1 %v1545_v55 }
 0x2cc   : > { %v4988_v58 = vpop.eup %4987  ;;  %v1424_v52 = vadd.f32 1.0, %v4986_v3  ;;  %v1170_v1 = vadd.f32 %v1169_v7, %v6175_v21  ;;  %v1171_v5 = vpop.f32.mrb[18].mxu1  ;;  %2023 = vmatmul.mubr.bf16.gmra.mrb[36].mxu0 %v1544_v51  ;;  %2216 = vmatmul.mubr.bf16.gmra.mrb[68].mxu1 %v1544_v51  ;;  %v1486_v49 = vmul.f32 0.5, %v1422_v61  ;;  %v4888_v7 = vld [vmem:[#allocation10 + $0xb0] sm:$0xff]  }
 0x2cd   : > { %v1425_v9 = vadd.f32 1.0, %v4988_v58  ;;  %v1302_v12 = vmul.f32 0.5, %v1168_v6  ;;  %v1172_v27 = vadd.f32 %v1171_v5, %v6171_v19  ;;  %v1173_v33 = vpop.f32.mrb[19].mxu1  ;;  %4272 = vmatpush3.bf16.msra.mxu0 %v4870_v57  ;;  %4384 = vmatpush3.bf16.msra.mxu1 %v4872_v59  ;;  %v1487_v20 = vmul.f32 0.5, %v1423_v4  ;;  %v4885_v57 = vld [vmem:[#allocation10 + $0x70] sm:$0xff]  }
 0x2ce   : > { %v1488_v53 = vmul.f32 0.5, %v1424_v52  ;;  %v1303_v8 = vmul.f32 0.5, %v1170_v1  ;;  %v1174_v10 = vadd.f32 %v1173_v33, %v6175_v21  ;;  %4273 = vmatprep.subr.bf16.mxu0 %v4873_v63  ;;  %4385 = vmatprep.subr.bf16.mxu1 %v4875_v2  ;;  %v4887_v59 = vld [vmem:[#allocation10 + $0xf0] sm:$0xff]  }
 0x2cf   : > { %v1489_v30 = vmul.f32 0.5, %v1425_v9  ;;  %4997 = vtanh.f32 %v1302_v12  ;;  %v1304_v37 = vmul.f32 0.5, %v1172_v27  ;;  %v4886_v6 = vld [vmem:[#allocation10 + $0x30] sm:$0xff]  }
 0x2d0   : > { %4999 = vtanh.f32 %v1303_v8  ;;  %v1305_v17 = vmul.f32 0.5, %v1174_v10  ;;  %v1546_v40 = vpack.c.bf16 %v1488_v53, %v1486_v49 }
 0x2d1   : > { %v4990_v22 = vpop.eup %4989  ;;  %5001 = vtanh.f32 %v1304_v37  ;;  %v1547_v23 = vpack.c.bf16 %v1489_v30, %v1487_v20  ;;  %4274 = vmatpush3.bf16.msra.mxu0 %v4874_v38  ;;  %4386 = vmatpush3.bf16.msra.mxu1 %v4876_v44 }
 0x2d2   : > { %v4992_v28 = vpop.eup %4991  ;;  %v1426_v29 = vadd.f32 1.0, %v4990_v22  ;;  %5003 = vtanh.f32 %v1305_v17  ;;  %v1177_v31 = vpop.f32.mrb[20].mxu1  ;;  %4275 = vmatprep.subr.bf16.mxu0 %v4877_v11  ;;  %4387 = vmatprep.subr.bf16.mxu1 %v4879_v13 }
 0x2d3   : > { %v4994_v45 = vpop.eup %4993  ;;  %v1427_v56 = vadd.f32 1.0, %v4992_v28  ;;  %v1178_v0 = vadd.f32 %v1177_v31, %v6171_v19  ;;  %v1179_v35 = vpop.f32.mrb[21].mxu1  ;;  %2032 = vmatprep.mubr.bf16.mxu0 %v1547_v23  ;;  %2225 = vmatprep.mubr.bf16.mxu1 %v1547_v23 }
 0x2d4   : > { %v4996_v36 = vpop.eup %4995  ;;  %v1428_v39 = vadd.f32 1.0, %v4994_v45  ;;  %v1180_v42 = vadd.f32 %v1179_v35, %v6175_v21  ;;  %v1181_v43 = vpop.f32.mrb[22].mxu1  ;;  %2033 = vmatmul.mubr.bf16.gmra.mrb[40].mxu0 %v1546_v40  ;;  %2226 = vmatmul.mubr.bf16.gmra.mrb[72].mxu1 %v1546_v40  ;;  %v1490_v34 = vmul.f32 0.5, %v1426_v29 }
 0x2d5   : > { %v1429_v46 = vadd.f32 1.0, %v4996_v36  ;;  %v1306_v47 = vmul.f32 0.5, %v1178_v0  ;;  %v1182_v48 = vadd.f32 %v1181_v43, %v6171_v19  ;;  %v1183_v50 = vpop.f32.mrb[23].mxu1  ;;  %4276 = vmatpush3.bf16.msra.mxu0 %v4878_v24  ;;  %4388 = vmatpush3.bf16.msra.mxu1 %v4880_v25  ;;  %v1491_v60 = vmul.f32 0.5, %v1427_v56 }
 0x2d6   : > { %v1492_v51 = vmul.f32 0.5, %v1428_v39  ;;  %v1307_v54 = vmul.f32 0.5, %v1180_v42  ;;  %v1184_v55 = vadd.f32 %v1183_v50, %v6175_v21  ;;  %4277 = vmatprep.subr.bf16.mxu0 %v4881_v32  ;;  %4389 = vmatprep.subr.bf16.mxu1 %v4883_v41 }
 0x2d7   : > { %v1493_v61 = vmul.f32 0.5, %v1429_v46  ;;  %5005 = vtanh.f32 %v1306_v47  ;;  %v1308_v62 = vmul.f32 0.5, %v1182_v48 }
 0x2d8   : > { %5007 = vtanh.f32 %v1307_v54  ;;  %v1309_v63 = vmul.f32 0.5, %v1184_v55  ;;  %v1548_v2 = vpack.c.bf16 %v1492_v51, %v1490_v34 }
 0x2d9   : > { %v4998_v3 = vpop.eup %4997  ;;  %5009 = vtanh.f32 %v1308_v62  ;;  %v1549_v4 = vpack.c.bf16 %v1493_v61, %v1491_v60  ;;  %4278 = vmatpush3.bf16.msra.mxu0 %v4882_v15  ;;  %4390 = vmatpush3.bf16.msra.mxu1 %v4884_v26 }
 0x2da   : > { %v5000_v58 = vpop.eup %4999  ;;  %v1430_v52 = vadd.f32 1.0, %v4998_v3  ;;  %5011 = vtanh.f32 %v1309_v63  ;;  %v1187_v1 = vpop.f32.mrb[24].mxu1  ;;  %4279 = vmatprep.subr.bf16.mxu0 %v4885_v57  ;;  %4391 = vmatprep.subr.bf16.mxu1 %v4887_v59 }
 0x2db   : > { %v5002_v5 = vpop.eup %5001  ;;  %v1431_v9 = vadd.f32 1.0, %v5000_v58  ;;  %v1188_v12 = vadd.f32 %v1187_v1, %v6171_v19  ;;  %v1189_v27 = vpop.f32.mrb[25].mxu1  ;;  %2042 = vmatprep.mubr.bf16.mxu0 %v1549_v4  ;;  %2235 = vmatprep.mubr.bf16.mxu1 %v1549_v4 }
 0x2dc   : > { %v5004_v33 = vpop.eup %5003  ;;  %v1432_v38 = vadd.f32 1.0, %v5002_v5  ;;  %v1190_v44 = vadd.f32 %v1189_v27, %v6175_v21  ;;  %v1191_v49 = vpop.f32.mrb[26].mxu1  ;;  %2043 = vmatmul.mubr.bf16.gmra.mrb[44].mxu0 %v1548_v2  ;;  %2236 = vmatmul.mubr.bf16.gmra.mrb[76].mxu1 %v1548_v2  ;;  %v1494_v13 = vmul.f32 0.5, %v1430_v52 }
 0x2dd   : > { %v1433_v53 = vadd.f32 1.0, %v5004_v33  ;;  %v1310_v8 = vmul.f32 0.5, %v1188_v12  ;;  %v1192_v10 = vadd.f32 %v1191_v49, %v6171_v19  ;;  %v1193_v11 = vpop.f32.mrb[27].mxu1  ;;  %4280 = vmatpush3.bf16.msra.mxu0 %v4886_v6  ;;  %4392 = vmatpush3.bf16.msra.mxu1 %v4888_v7  ;;  %v1495_v17 = vmul.f32 0.5, %v1431_v9 }
 0x2de   : > { %v1496_v20 = vmul.f32 0.5, %v1432_v38  ;;  %v1311_v30 = vmul.f32 0.5, %v1190_v44  ;;  %v1194_v37 = vadd.f32 %v1193_v11, %v6175_v21 }
 0x2df   : > { %v1497_v40 = vmul.f32 0.5, %v1433_v53  ;;  %5013 = vtanh.f32 %v1310_v8  ;;  %v1312_v22 = vmul.f32 0.5, %v1192_v10 }
 0x2e0   : > { %5015 = vtanh.f32 %v1311_v30  ;;  %v1313_v23 = vmul.f32 0.5, %v1194_v37  ;;  %v1550_v24 = vpack.c.bf16 %v1496_v20, %v1494_v13 }
 0x2e1   : > { %v5006_v25 = vpop.eup %5005  ;;  %5017 = vtanh.f32 %v1312_v22  ;;  %v1551_v28 = vpack.c.bf16 %v1497_v40, %v1495_v17 }
 0x2e2   : > { %v5008_v29 = vpop.eup %5007  ;;  %v1434_v31 = vadd.f32 1.0, %v5006_v25  ;;  %5019 = vtanh.f32 %v1313_v23  ;;  %v1197_v32 = vpop.f32.mrb[28].mxu1 }
 0x2e3   : > { %v5010_v41 = vpop.eup %5009  ;;  %v1435_v45 = vadd.f32 1.0, %v5008_v29  ;;  %v1198_v56 = vadd.f32 %v1197_v32, %v6171_v19  ;;  %v1199_v0 = vpop.f32.mrb[29].mxu1  ;;  %2052 = vmatprep.mubr.bf16.mxu0 %v1551_v28  ;;  %2245 = vmatprep.mubr.bf16.mxu1 %v1551_v28 }
 0x2e4   : > { %v5012_v35 = vpop.eup %5011  ;;  %v1436_v36 = vadd.f32 1.0, %v5010_v41  ;;  %v1200_v39 = vadd.f32 %v1199_v0, %v6175_v21  ;;  %v1201_v42 = vpop.f32.mrb[30].mxu1  ;;  %2053 = vmatmul.mubr.bf16.gmra.mrb[48].mxu0 %v1550_v24  ;;  %2246 = vmatmul.mubr.bf16.gmra.mrb[80].mxu1 %v1550_v24  ;;  %v1498_v50 = vmul.f32 0.5, %v1434_v31 }
 0x2e5   : > { %v1437_v43 = vadd.f32 1.0, %v5012_v35  ;;  %v1314_v46 = vmul.f32 0.5, %v1198_v56  ;;  %v1202_v47 = vadd.f32 %v1201_v42, %v6171_v19  ;;  %v1203_v48 = vpop.f32.mrb[31].mxu1  ;;  %v1499_v51 = vmul.f32 0.5, %v1435_v45 }
 0x2e6   : > { %v1500_v15 = vmul.f32 0.5, %v1436_v36  ;;  %v1315_v26 = vmul.f32 0.5, %v1200_v39  ;;  %v1204_v34 = vadd.f32 %v1203_v48, %v6175_v21 }
 0x2e7   : > { %v1501_v54 = vmul.f32 0.5, %v1437_v43  ;;  %5021 = vtanh.f32 %v1314_v46  ;;  %v1316_v55 = vmul.f32 0.5, %v1202_v47 }
 0x2e8   : > { %5023 = vtanh.f32 %v1315_v26  ;;  %v1317_v57 = vmul.f32 0.5, %v1204_v34  ;;  %v1552_v59 = vpack.c.bf16 %v1500_v15, %v1498_v50 }
 0x2e9   : > { %v5014_v60 = vpop.eup %5013  ;;  %5025 = vtanh.f32 %v1316_v55  ;;  %v1553_v61 = vpack.c.bf16 %v1501_v54, %v1499_v51 }
 0x2ea   : > { %v5016_v62 = vpop.eup %5015  ;;  %v1438_v63 = vadd.f32 1.0, %v5014_v60  ;;  %5027 = vtanh.f32 %v1317_v57  ;;  %v1207_v2 = vpop.f32.mrb[32].mxu1 }
 0x2eb   : > { %v5018_v3 = vpop.eup %5017  ;;  %v1439_v4 = vadd.f32 1.0, %v5016_v62  ;;  %v1208_v6 = vadd.f32 %v1207_v2, %v6171_v19  ;;  %v1209_v7 = vpop.f32.mrb[33].mxu1  ;;  %2062 = vmatprep.mubr.bf16.mxu0 %v1553_v61  ;;  %2255 = vmatprep.mubr.bf16.mxu1 %v1553_v61 }
 0x2ec   : > { %v5020_v58 = vpop.eup %5019  ;;  %v1440_v52 = vadd.f32 1.0, %v5018_v3  ;;  %v1210_v1 = vadd.f32 %v1209_v7, %v6175_v21  ;;  %v1211_v5 = vpop.f32.mrb[34].mxu1  ;;  %2063 = vmatmul.mubr.bf16.gmra.mrb[52].mxu0 %v1552_v59  ;;  %2256 = vmatmul.mubr.bf16.gmra.mrb[84].mxu1 %v1552_v59  ;;  %v1502_v38 = vmul.f32 0.5, %v1438_v63 }
 0x2ed   : > { %v1441_v9 = vadd.f32 1.0, %v5020_v58  ;;  %v1318_v12 = vmul.f32 0.5, %v1208_v6  ;;  %v1212_v27 = vadd.f32 %v1211_v5, %v6171_v19  ;;  %v1213_v33 = vpop.f32.mrb[35].mxu1  ;;  %v1503_v8 = vmul.f32 0.5, %v1439_v4 }
 0x2ee   : > { %v1504_v44 = vmul.f32 0.5, %v1440_v52  ;;  %v1319_v49 = vmul.f32 0.5, %v1210_v1  ;;  %v1214_v53 = vadd.f32 %v1213_v33, %v6175_v21 }
 0x2ef   : > { %v1505_v10 = vmul.f32 0.5, %v1441_v9  ;;  %5029 = vtanh.f32 %v1318_v12  ;;  %v1320_v11 = vmul.f32 0.5, %v1212_v27 }
 0x2f0   : > { %5031 = vtanh.f32 %v1319_v49  ;;  %v1321_v13 = vmul.f32 0.5, %v1214_v53  ;;  %v1554_v20 = vpack.c.bf16 %v1504_v44, %v1502_v38 }
 0x2f1   : > { %v5022_v30 = vpop.eup %5021  ;;  %5033 = vtanh.f32 %v1320_v11  ;;  %v1555_v37 = vpack.c.bf16 %v1505_v10, %v1503_v8 }
 0x2f2   : > { %v5024_v17 = vpop.eup %5023  ;;  %v1442_v40 = vadd.f32 1.0, %v5022_v30  ;;  %5035 = vtanh.f32 %v1321_v13  ;;  %v1217_v22 = vpop.f32.mrb[36].mxu1 }
 0x2f3   : > { %v5026_v23 = vpop.eup %5025  ;;  %v1443_v24 = vadd.f32 1.0, %v5024_v17  ;;  %v1218_v25 = vadd.f32 %v1217_v22, %v6171_v19  ;;  %v1219_v28 = vpop.f32.mrb[37].mxu1  ;;  %2072 = vmatprep.mubr.bf16.mxu0 %v1555_v37  ;;  %2265 = vmatprep.mubr.bf16.mxu1 %v1555_v37 }
 0x2f4   : > { %v5028_v29 = vpop.eup %5027  ;;  %v1444_v31 = vadd.f32 1.0, %v5026_v23  ;;  %v1220_v32 = vadd.f32 %v1219_v28, %v6175_v21  ;;  %v1221_v41 = vpop.f32.mrb[38].mxu1  ;;  %2073 = vmatmul.mubr.bf16.gmra.mrb[56].mxu0 %v1554_v20  ;;  %2266 = vmatmul.mubr.bf16.gmra.mrb[88].mxu1 %v1554_v20  ;;  %v1506_v36 = vmul.f32 0.5, %v1442_v40 }
 0x2f5   : > { %v1445_v45 = vadd.f32 1.0, %v5028_v29  ;;  %v1322_v56 = vmul.f32 0.5, %v1218_v25  ;;  %v1222_v0 = vadd.f32 %v1221_v41, %v6171_v19  ;;  %v1223_v35 = vpop.f32.mrb[39].mxu1  ;;  %v1507_v46 = vmul.f32 0.5, %v1443_v24 }
 0x2f6   : > { %v1508_v39 = vmul.f32 0.5, %v1444_v31  ;;  %v1323_v42 = vmul.f32 0.5, %v1220_v32  ;;  %v1224_v43 = vadd.f32 %v1223_v35, %v6175_v21 }
 0x2f7   : > { %v1509_v47 = vmul.f32 0.5, %v1445_v45  ;;  %5037 = vtanh.f32 %v1322_v56  ;;  %v1324_v48 = vmul.f32 0.5, %v1222_v0 }
 0x2f8   : > { %5039 = vtanh.f32 %v1323_v42  ;;  %v1325_v50 = vmul.f32 0.5, %v1224_v43  ;;  %v1556_v15 = vpack.c.bf16 %v1508_v39, %v1506_v36 }
 0x2f9   : > { %v5030_v26 = vpop.eup %5029  ;;  %5041 = vtanh.f32 %v1324_v48  ;;  %v1557_v34 = vpack.c.bf16 %v1509_v47, %v1507_v46 }
 0x2fa   : > { %v5032_v51 = vpop.eup %5031  ;;  %v1446_v54 = vadd.f32 1.0, %v5030_v26  ;;  %5043 = vtanh.f32 %v1325_v50  ;;  %v1227_v55 = vpop.f32.mrb[40].mxu1 }
 0x2fb   : > { %v5034_v57 = vpop.eup %5033  ;;  %v1447_v59 = vadd.f32 1.0, %v5032_v51  ;;  %v1228_v60 = vadd.f32 %v1227_v55, %v6171_v19  ;;  %v1229_v61 = vpop.f32.mrb[41].mxu1  ;;  %2082 = vmatprep.mubr.bf16.mxu0 %v1557_v34  ;;  %2275 = vmatprep.mubr.bf16.mxu1 %v1557_v34 }
 0x2fc   : > { %v5036_v62 = vpop.eup %5035  ;;  %v1448_v63 = vadd.f32 1.0, %v5034_v57  ;;  %v1230_v2 = vadd.f32 %v1229_v61, %v6175_v21  ;;  %v1231_v3 = vpop.f32.mrb[42].mxu1  ;;  %2083 = vmatmul.mubr.bf16.gmra.mrb[60].mxu0 %v1556_v15  ;;  %2276 = vmatmul.mubr.bf16.gmra.mrb[92].mxu1 %v1556_v15  ;;  %v1510_v52 = vmul.f32 0.5, %v1446_v54 }
 0x2fd   : > { %v1449_v4 = vadd.f32 1.0, %v5036_v62  ;;  %v1326_v6 = vmul.f32 0.5, %v1228_v60  ;;  %v1232_v7 = vadd.f32 %v1231_v3, %v6171_v19  ;;  %v1233_v58 = vpop.f32.mrb[43].mxu1  ;;  %v1511_v12 = vmul.f32 0.5, %v1447_v59 }
 0x2fe   : > { %v1512_v1 = vmul.f32 0.5, %v1448_v63  ;;  %v1327_v5 = vmul.f32 0.5, %v1230_v2  ;;  %v1234_v9 = vadd.f32 %v1233_v58, %v6175_v21 }
 0x2ff   : > { %v1513_v27 = vmul.f32 0.5, %v1449_v4  ;;  %5045 = vtanh.f32 %v1326_v6  ;;  %v1328_v33 = vmul.f32 0.5, %v1232_v7 }
 0x300   : > { %5047 = vtanh.f32 %v1327_v5  ;;  %v1329_v38 = vmul.f32 0.5, %v1234_v9  ;;  %v1558_v44 = vpack.c.bf16 %v1512_v1, %v1510_v52 }
 0x301   : > { %v5038_v49 = vpop.eup %5037  ;;  %5049 = vtanh.f32 %v1328_v33  ;;  %v1559_v53 = vpack.c.bf16 %v1513_v27, %v1511_v12 }
 0x302   : > { %v5040_v8 = vpop.eup %5039  ;;  %v1450_v10 = vadd.f32 1.0, %v5038_v49  ;;  %5051 = vtanh.f32 %v1329_v38  ;;  %v1237_v11 = vpop.f32.mrb[44].mxu1 }
 0x303   : > { %v5042_v13 = vpop.eup %5041  ;;  %v1451_v20 = vadd.f32 1.0, %v5040_v8  ;;  %v1238_v30 = vadd.f32 %v1237_v11, %v6171_v19  ;;  %v1239_v37 = vpop.f32.mrb[45].mxu1  ;;  %2092 = vmatprep.mubr.bf16.mxu0 %v1559_v53  ;;  %2285 = vmatprep.mubr.bf16.mxu1 %v1559_v53 }
 0x304   : > { %v5044_v17 = vpop.eup %5043  ;;  %v1452_v40 = vadd.f32 1.0, %v5042_v13  ;;  %v1240_v22 = vadd.f32 %v1239_v37, %v6175_v21  ;;  %v1241_v23 = vpop.f32.mrb[46].mxu1  ;;  %2093 = vmatmul.mubr.bf16.gmra.mrb[64].mxu0 %v1558_v44  ;;  %2286 = vmatmul.mubr.bf16.gmra.mrb[96].mxu1 %v1558_v44  ;;  %v1514_v31 = vmul.f32 0.5, %v1450_v10 }
 0x305   : > { %v1453_v24 = vadd.f32 1.0, %v5044_v17  ;;  %v1330_v25 = vmul.f32 0.5, %v1238_v30  ;;  %v1242_v28 = vadd.f32 %v1241_v23, %v6171_v19  ;;  %v1243_v29 = vpop.f32.mrb[47].mxu1  ;;  %v1515_v56 = vmul.f32 0.5, %v1451_v20 }
 0x306   : > { %v1516_v32 = vmul.f32 0.5, %v1452_v40  ;;  %v1331_v41 = vmul.f32 0.5, %v1240_v22  ;;  %v1244_v45 = vadd.f32 %v1243_v29, %v6175_v21 }
 0x307   : > { %v1517_v0 = vmul.f32 0.5, %v1453_v24  ;;  %5053 = vtanh.f32 %v1330_v25  ;;  %v1332_v35 = vmul.f32 0.5, %v1242_v28 }
 0x308   : > { %5055 = vtanh.f32 %v1331_v41  ;;  %v1333_v36 = vmul.f32 0.5, %v1244_v45  ;;  %v1560_v39 = vpack.c.bf16 %v1516_v32, %v1514_v31 }
 0x309   : > { %v5046_v42 = vpop.eup %5045  ;;  %5057 = vtanh.f32 %v1332_v35  ;;  %v1561_v43 = vpack.c.bf16 %v1517_v0, %v1515_v56 }
 0x30a   : > { %v5048_v46 = vpop.eup %5047  ;;  %v1454_v47 = vadd.f32 1.0, %v5046_v42  ;;  %5059 = vtanh.f32 %v1333_v36  ;;  %v1247_v48 = vpop.f32.mrb[48].mxu1 }
 0x30b   : > { %v5050_v50 = vpop.eup %5049  ;;  %v1455_v15 = vadd.f32 1.0, %v5048_v46  ;;  %v1248_v26 = vadd.f32 %v1247_v48, %v6171_v19  ;;  %v1249_v34 = vpop.f32.mrb[49].mxu1  ;;  %2102 = vmatprep.mubr.bf16.mxu0 %v1561_v43  ;;  %2295 = vmatprep.mubr.bf16.mxu1 %v1561_v43 }
 0x30c   : > { %v5052_v51 = vpop.eup %5051  ;;  %v1456_v54 = vadd.f32 1.0, %v5050_v50  ;;  %v1250_v55 = vadd.f32 %v1249_v34, %v6175_v21  ;;  %v1251_v57 = vpop.f32.mrb[50].mxu1  ;;  %2103 = vmatmul.mubr.bf16.gmra.mrb[68].mxu0 %v1560_v39  ;;  %2296 = vmatmul.mubr.bf16.gmra.mrb[100].mxu1 %v1560_v39  ;;  %v1518_v63 = vmul.f32 0.5, %v1454_v47 }
 0x30d   : > { %v1457_v59 = vadd.f32 1.0, %v5052_v51  ;;  %v1334_v60 = vmul.f32 0.5, %v1248_v26  ;;  %v1252_v61 = vadd.f32 %v1251_v57, %v6171_v19  ;;  %v1253_v62 = vpop.f32.mrb[51].mxu1  ;;  %v1519_v6 = vmul.f32 0.5, %v1455_v15 }
 0x30e   : > { %v1520_v2 = vmul.f32 0.5, %v1456_v54  ;;  %v1335_v3 = vmul.f32 0.5, %v1250_v55  ;;  %v1254_v4 = vadd.f32 %v1253_v62, %v6175_v21 }
 0x30f   : > { %v1521_v7 = vmul.f32 0.5, %v1457_v59  ;;  %5061 = vtanh.f32 %v1334_v60  ;;  %v1336_v58 = vmul.f32 0.5, %v1252_v61 }
 0x310   : > { %5063 = vtanh.f32 %v1335_v3  ;;  %v1337_v52 = vmul.f32 0.5, %v1254_v4  ;;  %v1562_v1 = vpack.c.bf16 %v1520_v2, %v1518_v63 }
 0x311   : > { %v5054_v5 = vpop.eup %5053  ;;  %5065 = vtanh.f32 %v1336_v58  ;;  %v1563_v9 = vpack.c.bf16 %v1521_v7, %v1519_v6 }
 0x312   : > { %v5056_v12 = vpop.eup %5055  ;;  %v1458_v27 = vadd.f32 1.0, %v5054_v5  ;;  %5067 = vtanh.f32 %v1337_v52  ;;  %v1257_v33 = vpop.f32.mrb[52].mxu1 }
 0x313   : > { %v5058_v38 = vpop.eup %5057  ;;  %v1459_v44 = vadd.f32 1.0, %v5056_v12  ;;  %v1258_v49 = vadd.f32 %v1257_v33, %v6171_v19  ;;  %v1259_v53 = vpop.f32.mrb[53].mxu1  ;;  %2112 = vmatprep.mubr.bf16.mxu0 %v1563_v9  ;;  %2305 = vmatprep.mubr.bf16.mxu1 %v1563_v9 }
 0x314   : > { %v5060_v8 = vpop.eup %5059  ;;  %v1460_v10 = vadd.f32 1.0, %v5058_v38  ;;  %v1260_v11 = vadd.f32 %v1259_v53, %v6175_v21  ;;  %v1261_v13 = vpop.f32.mrb[54].mxu1  ;;  %2113 = vmatmul.mubr.bf16.gmra.mrb[72].mxu0 %v1562_v1  ;;  %2306 = vmatmul.mubr.bf16.gmra.mrb[104].mxu1 %v1562_v1  ;;  %v1522_v40 = vmul.f32 0.5, %v1458_v27 }
 0x315   : > { %v1461_v20 = vadd.f32 1.0, %v5060_v8  ;;  %v1338_v30 = vmul.f32 0.5, %v1258_v49  ;;  %v1262_v37 = vadd.f32 %v1261_v13, %v6171_v19  ;;  %v1263_v17 = vpop.f32.mrb[55].mxu1  ;;  %v1523_v25 = vmul.f32 0.5, %v1459_v44 }
 0x316   : > { %v1524_v22 = vmul.f32 0.5, %v1460_v10  ;;  %v1339_v23 = vmul.f32 0.5, %v1260_v11  ;;  %v1264_v24 = vadd.f32 %v1263_v17, %v6175_v21 }
 0x317   : > { %v1525_v28 = vmul.f32 0.5, %v1461_v20  ;;  %5069 = vtanh.f32 %v1338_v30  ;;  %v1340_v29 = vmul.f32 0.5, %v1262_v37 }
 0x318   : > { %5071 = vtanh.f32 %v1339_v23  ;;  %v1341_v31 = vmul.f32 0.5, %v1264_v24  ;;  %v1564_v32 = vpack.c.bf16 %v1524_v22, %v1522_v40 }
 0x319   : > { %v5062_v41 = vpop.eup %5061  ;;  %5073 = vtanh.f32 %v1340_v29  ;;  %v1565_v45 = vpack.c.bf16 %v1525_v28, %v1523_v25 }
 0x31a   : > { %v5064_v56 = vpop.eup %5063  ;;  %v1462_v0 = vadd.f32 1.0, %v5062_v41  ;;  %5075 = vtanh.f32 %v1341_v31  ;;  %v1267_v35 = vpop.f32.mrb[56].mxu1 }
 0x31b   : > { %v5066_v36 = vpop.eup %5065  ;;  %v1463_v39 = vadd.f32 1.0, %v5064_v56  ;;  %v1268_v42 = vadd.f32 %v1267_v35, %v6171_v19  ;;  %v1269_v43 = vpop.f32.mrb[57].mxu1  ;;  %2122 = vmatprep.mubr.bf16.mxu0 %v1565_v45  ;;  %2315 = vmatprep.mubr.bf16.mxu1 %v1565_v45  ;;  %v4889_v35 = vld [vmem:[#allocation10 + $0x78] sm:$0xff]  }
 0x31c   : > { %v5068_v46 = vpop.eup %5067  ;;  %v1464_v47 = vadd.f32 1.0, %v5066_v36  ;;  %v1270_v48 = vadd.f32 %v1269_v43, %v6175_v21  ;;  %v1271_v50 = vpop.f32.mrb[58].mxu1  ;;  %2123 = vmatmul.mubr.bf16.gmra.mrb[76].mxu0 %v1564_v32  ;;  %2316 = vmatmul.mubr.bf16.gmra.mrb[108].mxu1 %v1564_v32  ;;  %v1526_v54 = vmul.f32 0.5, %v1462_v0  ;;  %v4891_v36 = vld [vmem:[#allocation10 + $0xf8] sm:$0xff]  }
 0x31d   : > { %v1465_v15 = vadd.f32 1.0, %v5068_v46  ;;  %v1342_v26 = vmul.f32 0.5, %v1268_v42  ;;  %v1272_v34 = vadd.f32 %v1271_v50, %v6171_v19  ;;  %v1273_v51 = vpop.f32.mrb[59].mxu1  ;;  %v1527_v60 = vmul.f32 0.5, %v1463_v39  ;;  %v4890_v42 = vld [vmem:[#allocation10 + $0x38] sm:$0xff]   ;;  %4281 = vmatprep.subr.bf16.mxu0 %v4889_v35  ;;  %4393 = vmatprep.subr.bf16.mxu1 %v4891_v36 }
 0x31e   : > { %v1528_v55 = vmul.f32 0.5, %v1464_v47  ;;  %v1343_v57 = vmul.f32 0.5, %v1270_v48  ;;  %v1274_v59 = vadd.f32 %v1273_v51, %v6175_v21  ;;  %v4892_v43 = vld [vmem:[#allocation10 + $0xb8] sm:$0xff]   ;;  %4282 = vmatpush3.bf16.msra.mxu0 %v4890_v42 }
 0x31f   : > { %v1529_v61 = vmul.f32 0.5, %v1465_v15  ;;  %5077 = vtanh.f32 %v1342_v26  ;;  %v1344_v62 = vmul.f32 0.5, %v1272_v34  ;;  %4394 = vmatpush3.bf16.msra.mxu1 %v4892_v43 }
 0x320   : > { %5079 = vtanh.f32 %v1343_v57  ;;  %v1345_v63 = vmul.f32 0.5, %v1274_v59  ;;  %v1566_v2 = vpack.c.bf16 %v1528_v55, %v1526_v54 }
 0x321   : > { %v5070_v3 = vpop.eup %5069  ;;  %5081 = vtanh.f32 %v1344_v62  ;;  %v1567_v4 = vpack.c.bf16 %v1529_v61, %v1527_v60 }
 0x322   : > { %v5072_v6 = vpop.eup %5071  ;;  %v1466_v7 = vadd.f32 1.0, %v5070_v3  ;;  %5083 = vtanh.f32 %v1345_v63  ;;  %v1277_v58 = vpop.f32.mrb[60].mxu1  ;;  %v1650_v63 = vsub.s32 2, %v6162_v14  ;;  %v1654_v3 = vsub.s32 3, %v6162_v14 }
 0x323   : > { %v5074_v52 = vpop.eup %5073  ;;  %v1467_v1 = vadd.f32 1.0, %v5072_v6  ;;  %v1278_v5 = vadd.f32 %v1277_v58, %v6171_v19  ;;  %v1279_v9 = vpop.f32.mrb[61].mxu1  ;;  %2132 = vmatprep.mubr.bf16.mxu0 %v1567_v4  ;;  %2325 = vmatprep.mubr.bf16.mxu1 %v1567_v4 }
 0x324   : > { %v5076_v12 = vpop.eup %5075  ;;  %v1468_v27 = vadd.f32 1.0, %v5074_v52  ;;  %v1280_v33 = vadd.f32 %v1279_v9, %v6175_v21  ;;  %v1281_v38 = vpop.f32.mrb[62].mxu1  ;;  %2133 = vmatmul.mubr.bf16.gmra.mrb[80].mxu0 %v1566_v2  ;;  %2326 = vmatmul.mubr.bf16.gmra.mrb[112].mxu1 %v1566_v2  ;;  %v1530_v10 = vmul.f32 0.5, %v1466_v7  ;;  %v1638_v2 = vld [vmem:[%s7143_s6] sm:$0xf] }
 0x325   : > { %v1469_v44 = vadd.f32 1.0, %v5076_v12  ;;  %v1346_v49 = vmul.f32 0.5, %v1278_v5  ;;  %v1282_v53 = vadd.f32 %v1281_v38, %v6171_v19  ;;  %v1283_v8 = vpop.f32.mrb[63].mxu1  ;;  %v1531_v30 = vmul.f32 0.5, %v1467_v1 }
 0x326   : > { %v1532_v11 = vmul.f32 0.5, %v1468_v27  ;;  %v1347_v13 = vmul.f32 0.5, %v1280_v33  ;;  %v1284_v20 = vadd.f32 %v1283_v8, %v6175_v21  ;;  %v6248_v4 = vrot.slane %v1638_v2, %v1005_v16 }
 0x327   : > { %v1533_v37 = vmul.f32 0.5, %v1469_v44  ;;  %5085 = vtanh.f32 %v1346_v49  ;;  %v1348_v17 = vmul.f32 0.5, %v1282_v53  ;;  %v6250_v6 = vrot.slane %v1638_v2, %v1650_v63 }
 0x328   : > { %5087 = vtanh.f32 %v1347_v13  ;;  %v1349_v40 = vmul.f32 0.5, %v1284_v20  ;;  %v1568_v22 = vpack.c.bf16 %v1532_v11, %v1530_v10  ;;  %v6254_v7 = vrot.slane %v1638_v2, %v1009_v18 }
 0x329   : > { %v5078_v23 = vpop.eup %5077  ;;  %5089 = vtanh.f32 %v1348_v17  ;;  %v1569_v24 = vpack.c.bf16 %v1533_v37, %v1531_v30  ;;  %v6256_v58 = vrot.slane %v1638_v2, %v1654_v3 }
 0x32a   : > { %v5080_v25 = vpop.eup %5079  ;;  %v1470_v28 = vadd.f32 1.0, %v5078_v23  ;;  %5091 = vtanh.f32 %v1349_v40 }
 0x32b   : > { %v5082_v19 = vpop.eup %5081  ;;  %v1471_v29 = vadd.f32 1.0, %v5080_v25  ;;  %2142 = vmatprep.mubr.bf16.mxu0 %v1569_v24  ;;  %2335 = vmatprep.mubr.bf16.mxu1 %v1569_v24 }
 0x32c   : > { %v5084_v31 = vpop.eup %5083  ;;  %v1472_v32 = vadd.f32 1.0, %v5082_v19  ;;  %2143 = vmatmul.mubr.bf16.gmra.mrb[84].mxu0 %v1568_v22  ;;  %2336 = vmatmul.mubr.bf16.gmra.mrb[116].mxu1 %v1568_v22  ;;  %v1534_v41 = vmul.f32 0.5, %v1470_v28 }
 0x32d   : > { %v1473_v21 = vadd.f32 1.0, %v5084_v31  ;;  %v1535_v56 = vmul.f32 0.5, %v1471_v29 }
 0x32e   : > { %v1536_v45 = vmul.f32 0.5, %v1472_v32 }
 0x32f   : > { %v1537_v0 = vmul.f32 0.5, %v1473_v21 }
 0x330   : > { %v1570_v39 = vpack.c.bf16 %v1536_v45, %v1534_v41 }
 0x331   : > { %v5086_v46 = vpop.eup %5085  ;;  %v1571_v47 = vpack.c.bf16 %v1537_v0, %v1535_v56 }
 0x332   : > { %v5088_v48 = vpop.eup %5087  ;;  %v1474_v50 = vadd.f32 1.0, %v5086_v46 }
 0x333   : > { %v5090_v15 = vpop.eup %5089  ;;  %v1475_v26 = vadd.f32 1.0, %v5088_v48  ;;  %2152 = vmatprep.mubr.bf16.mxu0 %v1571_v47  ;;  %2345 = vmatprep.mubr.bf16.mxu1 %v1571_v47 }
 0x334   : > { %v5092_v34 = vpop.eup %5091  ;;  %v1476_v51 = vadd.f32 1.0, %v5090_v15  ;;  %2153 = vmatmul.mubr.bf16.gmra.mrb[88].mxu0 %v1570_v39  ;;  %2346 = vmatmul.mubr.bf16.gmra.mrb[120].mxu1 %v1570_v39  ;;  %v1538_v55 = vmul.f32 0.5, %v1474_v50 }
 0x335   : > { %v1477_v54 = vadd.f32 1.0, %v5092_v34  ;;  %v1539_v59 = vmul.f32 0.5, %v1475_v26 }
 0x336   : > { %v1540_v57 = vmul.f32 0.5, %v1476_v51 }
 0x337   : > { %v1541_v60 = vmul.f32 0.5, %v1477_v54 }
 0x338   : > { %v1572_v61 = vpack.c.bf16 %v1540_v57, %v1538_v55 }
 0x339   : > { %v1573_v62 = vpack.c.bf16 %v1541_v60, %v1539_v59 }
 0x33b   : > { %2162 = vmatprep.mubr.bf16.mxu0 %v1573_v62  ;;  %2355 = vmatprep.mubr.bf16.mxu1 %v1573_v62 }
 0x33c   : > { %2163 = vmatmul.mubr.bf16.gmra.mrb[92].mxu0 %v1572_v61  ;;  %2356 = vmatmul.mubr.bf16.gmra.mrb[124].mxu1 %v1572_v61 }
 0x397   : > { %v2014_v52 = vpop.f32.mrb[32].mxu0  ;;  %v2207_v1 = vpop.f32.mrb[64].mxu1 }
 0x398   : > { %v2015_v5 = vadd.f32 %v2014_v52, %v6248_v4  ;;  %v2208_v9 = vadd.f32 %v2207_v1, %v6250_v6  ;;  %v2016_v12 = vpop.f32.mrb[33].mxu0  ;;  %v2209_v27 = vpop.f32.mrb[65].mxu1 }
 0x399   : > { %v2017_v33 = vadd.f32 %v2016_v12, %v6254_v7  ;;  %v2210_v16 = vadd.f32 %v2209_v27, %v6256_v58  ;;  %v2018_v38 = vpop.f32.mrb[34].mxu0  ;;  %v2211_v44 = vpop.f32.mrb[66].mxu1 }
 0x39a   : > { %v2366_v49 = vmul.f32 0.5, %v2015_v5  ;;  %v2368_v14 = vmul.f32 0.5, %v2208_v9  ;;  %v2019_v18 = vadd.f32 %v2018_v38, %v6248_v4  ;;  %v2212_v53 = vadd.f32 %v2211_v44, %v6250_v6  ;;  %v2020_v8 = vpop.f32.mrb[35].mxu0  ;;  %v2213_v10 = vpop.f32.mrb[67].mxu1 }
 0x39b   : > { %v2367_v11 = vmul.f32 0.5, %v2017_v33  ;;  %v2369_v13 = vmul.f32 0.5, %v2210_v16  ;;  %v2021_v20 = vadd.f32 %v2020_v8, %v6254_v7  ;;  %v2214_v30 = vadd.f32 %v2213_v10, %v6256_v58 }
 0x39c   : > { %5093 = vtanh.f32 %v2366_v49  ;;  %v2370_v37 = vmul.f32 0.5, %v2019_v18  ;;  %v2372_v17 = vmul.f32 0.5, %v2212_v53 }
 0x39d   : > { %5095 = vtanh.f32 %v2368_v14  ;;  %v2371_v40 = vmul.f32 0.5, %v2021_v20  ;;  %v2373_v22 = vmul.f32 0.5, %v2214_v30 }
 0x39e   : > { %5097 = vtanh.f32 %v2367_v11 }
 0x39f   : > { %5099 = vtanh.f32 %v2369_v13  ;;  %v2024_v23 = vpop.f32.mrb[36].mxu0  ;;  %v2217_v24 = vpop.f32.mrb[68].mxu1 }
 0x3a0   : > { %5101 = vtanh.f32 %v2370_v37  ;;  %v2025_v25 = vadd.f32 %v2024_v23, %v6248_v4  ;;  %v2218_v28 = vadd.f32 %v2217_v24, %v6250_v6  ;;  %v2026_v19 = vpop.f32.mrb[37].mxu0  ;;  %v2219_v29 = vpop.f32.mrb[69].mxu1 }
 0x3a1   : > { %5103 = vtanh.f32 %v2372_v17  ;;  %v2027_v31 = vadd.f32 %v2026_v19, %v6254_v7  ;;  %v2220_v32 = vadd.f32 %v2219_v29, %v6256_v58  ;;  %v2028_v21 = vpop.f32.mrb[38].mxu0  ;;  %v2221_v41 = vpop.f32.mrb[70].mxu1 }
 0x3a2   : > { %5105 = vtanh.f32 %v2371_v40  ;;  %v2374_v45 = vmul.f32 0.5, %v2025_v25  ;;  %v2376_v56 = vmul.f32 0.5, %v2218_v28  ;;  %v2029_v0 = vadd.f32 %v2028_v21, %v6248_v4  ;;  %v2030_v35 = vpop.f32.mrb[39].mxu0  ;;  %v2223_v36 = vpop.f32.mrb[71].mxu1 }
 0x3a3   : > { %5107 = vtanh.f32 %v2373_v22  ;;  %v2375_v39 = vmul.f32 0.5, %v2027_v31  ;;  %v2377_v42 = vmul.f32 0.5, %v2220_v32  ;;  %v2222_v43 = vadd.f32 %v2221_v41, %v6250_v6 }
 0x3a4   : > { %5109 = vtanh.f32 %v2374_v45  ;;  %v2378_v46 = vmul.f32 0.5, %v2029_v0  ;;  %v2031_v47 = vadd.f32 %v2030_v35, %v6254_v7  ;;  %v2224_v48 = vadd.f32 %v2223_v36, %v6256_v58 }
 0x3a5   : > { %5111 = vtanh.f32 %v2376_v56  ;;  %v2380_v50 = vmul.f32 0.5, %v2222_v43 }
 0x3a6   : > { %v5094_v15 = vpop.eup %5093  ;;  %5113 = vtanh.f32 %v2375_v39  ;;  %v2379_v26 = vmul.f32 0.5, %v2031_v47  ;;  %v2381_v51 = vmul.f32 0.5, %v2224_v48 }
 0x3a7   : > { %v5096_v34 = vpop.eup %5095  ;;  %5115 = vtanh.f32 %v2377_v42  ;;  %v2034_v54 = vpop.f32.mrb[40].mxu0  ;;  %v2622_v59 = vadd.f32 1.0, %v5094_v15 }
 0x3a8   : > { %v2227_v55 = vpop.f32.mrb[72].mxu1  ;;  %v5098_v57 = vpop.eup %5097  ;;  %5117 = vtanh.f32 %v2378_v46  ;;  %v2035_v60 = vadd.f32 %v2034_v54, %v6248_v4  ;;  %v2624_v9 = vadd.f32 1.0, %v5096_v34 }
 0x3a9   : > { %v2228_v61 = vadd.f32 %v2227_v55, %v6250_v6  ;;  %v2036_v62 = vpop.f32.mrb[41].mxu0  ;;  %v2229_v63 = vpop.f32.mrb[73].mxu1  ;;  %5119 = vtanh.f32 %v2380_v50  ;;  %v2623_v38 = vadd.f32 1.0, %v5098_v57  ;;  %v6277_v18 = vmul.f32 0.5, %v2622_v59 }
 0x3aa   : > { %v5100_v2 = vpop.eup %5099  ;;  %v2037_v3 = vadd.f32 %v2036_v62, %v6254_v7  ;;  %v2038_v52 = vpop.f32.mrb[42].mxu0  ;;  %5121 = vtanh.f32 %v2379_v26  ;;  %v2382_v12 = vmul.f32 0.5, %v2035_v60  ;;  %v2230_v30 = vadd.f32 %v2229_v63, %v6256_v58 }
 0x3ab   : > { %v2231_v1 = vpop.f32.mrb[74].mxu1  ;;  %v5102_v5 = vpop.eup %5101  ;;  %5123 = vtanh.f32 %v2381_v51  ;;  %v2384_v49 = vmul.f32 0.5, %v2228_v61  ;;  %v2625_v53 = vadd.f32 1.0, %v5100_v2  ;;  %v6282_v17 = vmul.f32 0.5, %v2624_v9 }
 0x3ac   : > { %v2040_v27 = vpop.f32.mrb[43].mxu0  ;;  %v2233_v33 = vpop.f32.mrb[75].mxu1  ;;  %v2626_v44 = vadd.f32 1.0, %v5102_v5  ;;  %5125 = vtanh.f32 %v2382_v12  ;;  %v2383_v20 = vmul.f32 0.5, %v2037_v3  ;;  %v2039_v22 = vadd.f32 %v2038_v52, %v6248_v4 }
 0x3ad   : > { %v5104_v16 = vpop.eup %5103  ;;  %v6287_v24 = vmul.f32 0.5, %v2623_v38  ;;  %5127 = vtanh.f32 %v2384_v49  ;;  %v2385_v28 = vmul.f32 0.5, %v2230_v30  ;;  %v6291_v32 = vmul.f32 0.5, %v2625_v53 }
 0x3ae   : > { %v5106_v14 = vpop.eup %5105  ;;  %v2628_v8 = vadd.f32 1.0, %v5104_v16  ;;  %v6279_v11 = vmul.f32 0.5, %v2626_v44  ;;  %v2386_v45 = vmul.f32 0.5, %v2039_v22  ;;  %5129 = vtanh.f32 %v2383_v20 }
 0x3af   : > { %v5108_v10 = vpop.eup %5107  ;;  %v2627_v13 = vadd.f32 1.0, %v5106_v14  ;;  %v2044_v19 = vpop.f32.mrb[44].mxu0  ;;  %v2232_v42 = vadd.f32 %v2231_v1, %v6250_v6  ;;  %5131 = vtanh.f32 %v2385_v28  ;;  %v2041_v15 = vadd.f32 %v2040_v27, %v6254_v7 }
 0x3b0   : > { %v5110_v37 = vpop.eup %5109  ;;  %v6284_v40 = vmul.f32 0.5, %v2628_v8  ;;  %v2878_v25 = vpack.c.bf16 %v6279_v11, %v6277_v18  ;;  %v2237_v29 = vpop.f32.mrb[76].mxu1  ;;  %v2629_v41 = vadd.f32 1.0, %v5108_v10  ;;  %5133 = vtanh.f32 %v2386_v45 }
 0x3b1   : > { %v5112_v23 = vpop.eup %5111  ;;  %v2046_v56 = vpop.f32.mrb[45].mxu0  ;;  %v6295_v36 = vmul.f32 0.5, %v2627_v13  ;;  %v2630_v39 = vadd.f32 1.0, %v5110_v37  ;;  %v2388_v55 = vmul.f32 0.5, %v2232_v42  ;;  %v2234_v57 = vadd.f32 %v2233_v33, %v6256_v58 }
 0x3b2   : > { %v5114_v31 = vpop.eup %5113  ;;  %v2880_v21 = vpack.c.bf16 %v6284_v40, %v6282_v17  ;;  %v2239_v0 = vpop.f32.mrb[77].mxu1  ;;  %v2632_v48 = vadd.f32 1.0, %v5112_v23  ;;  %v2387_v62 = vmul.f32 0.5, %v2041_v15  ;;  %v2045_v63 = vadd.f32 %v2044_v19, %v6248_v4 }
 0x3b3   : > { %v5116_v35 = vpop.eup %5115  ;;  %v2048_v43 = vpop.f32.mrb[46].mxu0  ;;  %v2631_v50 = vadd.f32 1.0, %v5114_v31  ;;  %v2757_v3 = vmul.f32 0.5, %v2629_v41  ;;  %5135 = vtanh.f32 %v2388_v55  ;;  %v2389_v1 = vmul.f32 0.5, %v2234_v57 }
 0x3b4   : > { %v6298_v46 = vpop.f32.mrb[78].mxu1  ;;  %v5118_v47 = vpop.eup %5117  ;;  %v2633_v54 = vadd.f32 1.0, %v5116_v35  ;;  %v6305_v9 = vmul.f32 0.5, %v2630_v39  ;;  %v6307_v12 = vmul.f32 0.5, %v2632_v48  ;;  %5137 = vtanh.f32 %v2387_v62 }
 0x3b5   : > { %v2050_v26 = vpop.f32.mrb[47].mxu0  ;;  %v6301_v34 = vpop.f32.mrb[79].mxu1  ;;  %v2634_v60 = vadd.f32 1.0, %v5118_v47  ;;  %v2390_v27 = vmul.f32 0.5, %v2045_v63  ;;  %v6309_v16 = vmul.f32 0.5, %v2631_v50  ;;  %v2238_v44 = vadd.f32 %v2237_v29, %v6250_v6 }
 0x3b6   : > { %v5120_v51 = vpop.eup %5119  ;;  %v6311_v33 = vmul.f32 0.5, %v2633_v54  ;;  %v2047_v13 = vadd.f32 %v2046_v56, %v6254_v7  ;;  %5139 = vtanh.f32 %v2389_v1  ;;  %v2240_v28 = vadd.f32 %v2239_v0, %v6256_v58 }
 0x3b7   : > { %v5122_v59 = vpop.eup %5121  ;;  %v2636_v61 = vadd.f32 1.0, %v5120_v51  ;;  %v2054_v49 = vpop.f32.mrb[48].mxu0  ;;  %v6314_v53 = vmul.f32 0.5, %v2634_v60  ;;  %v2392_v23 = vmul.f32 0.5, %v2238_v44  ;;  %5141 = vtanh.f32 %v2390_v27 }
 0x3b8   : > { %v5124_v2 = vpop.eup %5123  ;;  %v2635_v52 = vadd.f32 1.0, %v5122_v59  ;;  %v2247_v14 = vpop.f32.mrb[80].mxu1  ;;  %v2391_v31 = vmul.f32 0.5, %v2047_v13  ;;  %v2879_v41 = vpack.c.bf16 %v6295_v36, %v6287_v24  ;;  %v2881_v45 = vpack.c.bf16 %v2757_v3, %v6291_v32 }
 0x3b9   : > { %v5126_v5 = vpop.eup %5125  ;;  %v2637_v38 = vadd.f32 1.0, %v5124_v2  ;;  %v6316_v8 = vmul.f32 0.5, %v2636_v61  ;;  %v2056_v20 = vpop.f32.mrb[49].mxu0  ;;  %5143 = vtanh.f32 %v2392_v23  ;;  %v2393_v0 = vmul.f32 0.5, %v2240_v28 }
 0x3ba   : > { %v6318_v10 = vmul.f32 0.5, %v2635_v52  ;;  %v2249_v30 = vpop.f32.mrb[81].mxu1  ;;  %v5128_v37 = vpop.eup %5127  ;;  %v2638_v22 = vadd.f32 1.0, %v5126_v5  ;;  %v2049_v47 = vadd.f32 %v2048_v43, %v6248_v4  ;;  %5145 = vtanh.f32 %v2391_v31  ;;  %3237 = vmatprep.mubr.bf16.mxu0 %v2879_v41  ;;  %3398 = vmatprep.mubr.bf16.mxu1 %v2881_v45 }
 0x3bb   : > { %v6322_v19 = vpop.f32.mrb[50].mxu0  ;;  %v6324_v29 = vpop.f32.mrb[82].mxu1  ;;  %v6333_v42 = vmul.f32 0.5, %v2637_v38  ;;  %v2640_v50 = vadd.f32 1.0, %v5128_v37  ;;  %v2242_v24 = vadd.f32 %v6298_v46, %v6250_v6  ;;  %v2051_v32 = vadd.f32 %v2050_v26, %v6254_v7  ;;  %3238 = vmatmul.mubr.bf16.vlgmr.msra.gmra.mrb[96].mxu0 %v2878_v25  ;;  %3399 = vmatmul.mubr.bf16.vlgmr.msra.gmra.mrb[128].mxu1 %v2880_v21 }
 0x3bc   : > { %v6329_v56 = vpop.f32.mrb[51].mxu0  ;;  %v6331_v35 = vpop.f32.mrb[83].mxu1  ;;  %v6339_v15 = vmul.f32 0.5, %v2638_v22  ;;  %5147 = vtanh.f32 %v2393_v0  ;;  %v2394_v51 = vmul.f32 0.5, %v2049_v47  ;;  %v2244_v43 = vadd.f32 %v6301_v34, %v6256_v58 }
 0x3bd   : > { %v5130_v39 = vpop.eup %5129  ;;  %v2396_v46 = vmul.f32 0.5, %v2242_v24  ;;  %v2395_v55 = vmul.f32 0.5, %v2051_v32  ;;  %v2055_v26 = vadd.f32 %v2054_v49, %v6248_v4  ;;  %v2248_v61 = vadd.f32 %v2247_v14, %v6250_v6 }
 0x3be   : > { %v5132_v48 = vpop.eup %5131  ;;  %v2639_v54 = vadd.f32 1.0, %v5130_v39  ;;  %5149 = vtanh.f32 %v2394_v51  ;;  %v2397_v60 = vmul.f32 0.5, %v2244_v43  ;;  %v2057_v40 = vadd.f32 %v2056_v20, %v6254_v7 }
 0x3bf   : > { %v5134_v36 = vpop.eup %5133  ;;  %v2641_v59 = vadd.f32 1.0, %v5132_v48  ;;  %v2064_v18 = vpop.f32.mrb[52].mxu0  ;;  %5151 = vtanh.f32 %v2396_v46  ;;  %v2398_v17 = vmul.f32 0.5, %v2055_v26  ;;  %v2400_v2 = vmul.f32 0.5, %v2248_v61 }
 0x3c0   : > { %v5136_v57 = vpop.eup %5135  ;;  %v2257_v11 = vpop.f32.mrb[84].mxu1  ;;  %v2642_v62 = vadd.f32 1.0, %v5134_v36  ;;  %5153 = vtanh.f32 %v2395_v55  ;;  %v2250_v3 = vadd.f32 %v2249_v30, %v6256_v58  ;;  %v6361_v5 = vmul.f32 0.5, %v2640_v50 }
 0x3c1   : > { %v5138_v25 = vpop.eup %5137  ;;  %v6352_v21 = vpop.f32.mrb[53].mxu0  ;;  %v2644_v63 = vadd.f32 1.0, %v5136_v57  ;;  %v6363_v27 = vmul.f32 0.5, %v2639_v54  ;;  %5155 = vtanh.f32 %v2397_v60  ;;  %v2399_v38 = vmul.f32 0.5, %v2057_v40 }
 0x3c2   : > { %v6354_v34 = vpop.f32.mrb[85].mxu1  ;;  %v6357_v52 = vpop.f32.mrb[54].mxu0  ;;  %v6369_v13 = vmul.f32 0.5, %v2641_v59  ;;  %v2643_v20 = vadd.f32 1.0, %v5138_v25  ;;  %5157 = vtanh.f32 %v2398_v17  ;;  %v2401_v30 = vmul.f32 0.5, %v2250_v3 }
 0x3c3   : > { %v6359_v1 = vpop.f32.mrb[86].mxu1  ;;  %v6365_v44 = vpop.f32.mrb[55].mxu0  ;;  %v6371_v22 = vmul.f32 0.5, %v2642_v62  ;;  %5159 = vtanh.f32 %v2400_v2  ;;  %v2883_v23 = vpack.c.bf16 %v6318_v10, %v6309_v16  ;;  %v2885_v28 = vpack.c.bf16 %v6333_v42, %v6311_v33 }
 0x3c4   : > { %v6367_v49 = vpop.f32.mrb[87].mxu1  ;;  %v5140_v14 = vpop.eup %5139  ;;  %v6377_v41 = vmul.f32 0.5, %v2644_v63  ;;  %5161 = vtanh.f32 %v2399_v38  ;;  %v2059_v45 = vadd.f32 %v6322_v19, %v6248_v4  ;;  %v2252_v39 = vadd.f32 %v6324_v29, %v6250_v6 }
 0x3c5   : > { %v5142_v37 = vpop.eup %5141  ;;  %v2645_v47 = vadd.f32 1.0, %v5140_v14  ;;  %5163 = vtanh.f32 %v2401_v30  ;;  %3245 = vmatprep.mubr.bf16.mxu0 %v2883_v23  ;;  %3406 = vmatprep.mubr.bf16.mxu1 %v2885_v28  ;;  %v2882_v16 = vpack.c.bf16 %v6314_v53, %v6305_v9  ;;  %v2884_v33 = vpack.c.bf16 %v6316_v8, %v6307_v12 }
 0x3c6   : > { %v5144_v31 = vpop.eup %5143  ;;  %v6387_v42 = vmul.f32 0.5, %v2643_v20  ;;  %v2402_v48 = vmul.f32 0.5, %v2059_v45  ;;  %v2404_v50 = vmul.f32 0.5, %v2252_v39  ;;  %v2061_v19 = vadd.f32 %v6329_v56, %v6254_v7 }
 0x3c7   : > { %v5146_v0 = vpop.eup %5145  ;;  %v6391_v29 = vpop.f32.mrb[56].mxu0  ;;  %v2646_v32 = vadd.f32 1.0, %v5142_v37  ;;  %v2648_v36 = vadd.f32 1.0, %v5144_v31  ;;  %3246 = vmatmul.mubr.bf16.gmra.mrb[100].mxu0 %v2882_v16  ;;  %3407 = vmatmul.mubr.bf16.gmra.mrb[132].mxu1 %v2884_v33  ;;  %v2254_v9 = vadd.f32 %v6331_v35, %v6256_v58  ;;  %v2065_v12 = vadd.f32 %v2064_v18, %v6248_v4 }
 0x3c8   : > { %v5148_v10 = vpop.eup %5147  ;;  %v6393_v24 = vpop.f32.mrb[88].mxu1  ;;  %v2647_v43 = vadd.f32 1.0, %v5146_v0  ;;  %5165 = vtanh.f32 %v2402_v48  ;;  %v2403_v56 = vmul.f32 0.5, %v2061_v19  ;;  %v2258_v54 = vadd.f32 %v2257_v11, %v6250_v6 }
 0x3c9   : > { %v6398_v53 = vpop.f32.mrb[57].mxu0  ;;  %v6400_v8 = vpop.f32.mrb[89].mxu1  ;;  %v2649_v57 = vadd.f32 1.0, %v5148_v10  ;;  %5167 = vtanh.f32 %v2404_v50  ;;  %v2405_v35 = vmul.f32 0.5, %v2254_v9  ;;  %v2773_v25 = vmul.f32 0.5, %v2645_v47 }
 0x3ca   : > { %v5150_v51 = vpop.eup %5149  ;;  %v6403_v46 = vpop.f32.mrb[58].mxu0  ;;  %5169 = vtanh.f32 %v2403_v56  ;;  %v2406_v17 = vmul.f32 0.5, %v2065_v12  ;;  %v2408_v63 = vmul.f32 0.5, %v2258_v54  ;;  %v2067_v2 = vadd.f32 %v6352_v21, %v6254_v7 }
 0x3cb   : > { %v6405_v55 = vpop.f32.mrb[90].mxu1  ;;  %v5152_v26 = vpop.eup %5151  ;;  %v2650_v59 = vadd.f32 1.0, %v5150_v51  ;;  %5171 = vtanh.f32 %v2405_v35  ;;  %v6413_v38 = vmul.f32 0.5, %v2646_v32  ;;  %v6415_v14 = vmul.f32 0.5, %v2648_v36 }
 0x3cc   : > { %v6407_v60 = vpop.f32.mrb[59].mxu0  ;;  %v6409_v61 = vpop.f32.mrb[91].mxu1  ;;  %v2652_v62 = vadd.f32 1.0, %v5152_v26  ;;  %v6417_v20 = vmul.f32 0.5, %v2647_v43  ;;  %v2260_v30 = vadd.f32 %v6354_v34, %v6256_v58  ;;  %v6421_v23 = vmul.f32 0.5, %v2649_v57 }
 0x3cd   : > { %v5154_v18 = vpop.eup %5153  ;;  %v6423_v28 = vmul.f32 0.5, %v2650_v59  ;;  %5173 = vtanh.f32 %v2406_v17  ;;  %v2407_v31 = vmul.f32 0.5, %v2067_v2  ;;  %v2887_v47 = vpack.c.bf16 %v6387_v42, %v6363_v27 }
 0x3ce   : > { %v5156_v40 = vpop.eup %5155  ;;  %v2651_v11 = vadd.f32 1.0, %v5154_v18  ;;  %v6425_v39 = vmul.f32 0.5, %v2652_v62  ;;  %v2409_v0 = vmul.f32 0.5, %v2260_v30  ;;  %5175 = vtanh.f32 %v2408_v63 }
 0x3cf   : > { %v5158_v3 = vpop.eup %5157  ;;  %v2653_v21 = vadd.f32 1.0, %v5156_v40  ;;  %v6429_v16 = vpop.f32.mrb[60].mxu0  ;;  %v2889_v50 = vpack.c.bf16 %v2773_v25, %v6369_v13  ;;  %5177 = vtanh.f32 %v2407_v31  ;;  %3253 = vmatprep.mubr.bf16.mxu0 %v2887_v47  ;;  %v2069_v27 = vadd.f32 %v6357_v52, %v6248_v4 }
 0x3d0   : > { %v5160_v37 = vpop.eup %5159  ;;  %v6431_v33 = vpop.f32.mrb[92].mxu1  ;;  %v6433_v10 = vmul.f32 0.5, %v2651_v11  ;;  %v2654_v48 = vadd.f32 1.0, %v5158_v3  ;;  %5179 = vtanh.f32 %v2409_v0  ;;  %v2262_v13 = vadd.f32 %v6359_v1, %v6250_v6 }
 0x3d1   : > { %v5162_v45 = vpop.eup %5161  ;;  %v6436_v19 = vpop.f32.mrb[61].mxu0  ;;  %v2656_v36 = vadd.f32 1.0, %v5160_v37  ;;  %3414 = vmatprep.mubr.bf16.mxu1 %v2889_v50  ;;  %v2886_v51 = vpack.c.bf16 %v6371_v22, %v6339_v15  ;;  %v2888_v43 = vpack.c.bf16 %v6377_v41, %v6361_v5  ;;  %v2410_v57 = vmul.f32 0.5, %v2069_v27 }
 0x3d2   : > { %v5164_v34 = vpop.eup %5163  ;;  %v6438_v32 = vpop.f32.mrb[93].mxu1  ;;  %v2655_v9 = vadd.f32 1.0, %v5162_v45  ;;  %v2071_v59 = vadd.f32 %v6365_v44, %v6254_v7  ;;  %v2264_v35 = vadd.f32 %v6367_v49, %v6256_v58  ;;  %v2412_v25 = vmul.f32 0.5, %v2262_v13 }
 0x3d3   : > { %v6442_v42 = vpop.f32.mrb[62].mxu0  ;;  %v6444_v12 = vpop.f32.mrb[94].mxu1  ;;  %v2657_v26 = vadd.f32 1.0, %v5164_v34  ;;  %3254 = vmatmul.mubr.bf16.gmra.mrb[104].mxu0 %v2886_v51  ;;  %3415 = vmatmul.mubr.bf16.gmra.mrb[136].mxu1 %v2888_v43  ;;  %v2075_v15 = vadd.f32 %v6391_v29, %v6248_v4  ;;  %v2268_v5 = vadd.f32 %v6393_v24, %v6250_v6  ;;  %5181 = vtanh.f32 %v2410_v57 }
 0x3d4   : > { %v6452_v56 = vpop.f32.mrb[63].mxu0  ;;  %v6454_v54 = vpop.f32.mrb[95].mxu1  ;;  %v2411_v62 = vmul.f32 0.5, %v2071_v59  ;;  %v2413_v17 = vmul.f32 0.5, %v2264_v35  ;;  %v2781_v40 = vmul.f32 0.5, %v2653_v21  ;;  %5183 = vtanh.f32 %v2412_v25  ;;  %v4893_v35 = vld [vmem:[#allocation11] sm:$0xff]  }
 0x3d5   : > { %v5166_v52 = vpop.eup %5165  ;;  %v2414_v49 = vmul.f32 0.5, %v2075_v15  ;;  %v6464_v63 = vmul.f32 0.5, %v2654_v48  ;;  %v6466_v2 = vmul.f32 0.5, %v2656_v36  ;;  %v2416_v3 = vmul.f32 0.5, %v2268_v5  ;;  %4563 = vmatprep.subr.bf16.mxu0 %v4893_v35 }
 0x3d6   : > { %v5168_v1 = vpop.eup %5167  ;;  %v2658_v18 = vadd.f32 1.0, %v5166_v52  ;;  %5185 = vtanh.f32 %v2411_v62  ;;  %v6472_v37 = vmul.f32 0.5, %v2655_v9  ;;  %v2077_v45 = vadd.f32 %v6398_v53, %v6254_v7  ;;  %4564 = vmatpush3.bf16.msra.mxu0 %v4893_v35 }
 0x3d7   : > { %v5170_v22 = vpop.eup %5169  ;;  %v2660_v41 = vadd.f32 1.0, %v5168_v1  ;;  %v6468_v29 = vpop.f32.mrb[64].mxu0  ;;  %5187 = vtanh.f32 %v2413_v17  ;;  %v6480_v47 = vmul.f32 0.5, %v2657_v26  ;;  %v2270_v50 = vadd.f32 %v6400_v8, %v6256_v58 }
 0x3d8   : > { %v5172_v44 = vpop.eup %5171  ;;  %v2659_v11 = vadd.f32 1.0, %v5170_v22  ;;  %v6470_v30 = vpop.f32.mrb[96].mxu1  ;;  %v6482_v34 = vmul.f32 0.5, %v2658_v18  ;;  %5189 = vtanh.f32 %v2414_v49  ;;  %v2415_v53 = vmul.f32 0.5, %v2077_v45 }
 0x3d9   : > { %v5174_v24 = vpop.eup %5173  ;;  %v2661_v31 = vadd.f32 1.0, %v5172_v44  ;;  %v6476_v21 = vpop.f32.mrb[65].mxu0  ;;  %v6484_v48 = vmul.f32 0.5, %v2660_v41  ;;  %v2891_v51 = vpack.c.bf16 %v6433_v10, %v6417_v20  ;;  %5191 = vtanh.f32 %v2416_v3  ;;  %v4894_v10 = vld [vmem:[#allocation11 + $0x8] sm:$0xff]  }
 0x3da   : > { %v6478_v0 = vpop.f32.mrb[97].mxu1  ;;  %v6488_v36 = vpop.f32.mrb[66].mxu0  ;;  %v6492_v13 = vmul.f32 0.5, %v2659_v11  ;;  %v2662_v57 = vadd.f32 1.0, %v5174_v24  ;;  %v2417_v8 = vmul.f32 0.5, %v2270_v50  ;;  %v2893_v59 = vpack.c.bf16 %v2781_v40, %v6421_v23  ;;  %v4895_v40 = vld [vmem:[#allocation11 + $0x10] sm:$0xff]   ;;  %4565 = vmatprep.subr.bf16.mxu0 %v4894_v10 }
 0x3db   : > { %v6490_v9 = vpop.f32.mrb[98].mxu1  ;;  %v5176_v27 = vpop.eup %5175  ;;  %v6501_v18 = vmul.f32 0.5, %v2661_v31  ;;  %5193 = vtanh.f32 %v2415_v53  ;;  %3261 = vmatprep.mubr.bf16.mxu0 %v2891_v51  ;;  %v2079_v25 = vadd.f32 %v6403_v46, %v6248_v4  ;;  %v2272_v20 = vadd.f32 %v6405_v55, %v6250_v6  ;;  %4566 = vmatpush3.bf16.msra.mxu0 %v4894_v10 }
 0x3dc   : > { %v6496_v43 = vpop.f32.mrb[67].mxu0  ;;  %v6498_v52 = vpop.f32.mrb[99].mxu1  ;;  %v2664_v15 = vadd.f32 1.0, %v5176_v27  ;;  %5195 = vtanh.f32 %v2417_v8  ;;  %3422 = vmatprep.mubr.bf16.mxu1 %v2893_v59  ;;  %v2890_v5 = vpack.c.bf16 %v6423_v28, %v6413_v38  ;;  %v2892_v23 = vpack.c.bf16 %v6425_v39, %v6415_v14  ;;  %4567 = vmatprep.subr.bf16.mxu0 %v4895_v40 }
 0x3dd   : > { %v5178_v26 = vpop.eup %5177  ;;  %v2418_v41 = vmul.f32 0.5, %v2079_v25  ;;  %v2420_v62 = vmul.f32 0.5, %v2272_v20  ;;  %v2081_v46 = vadd.f32 %v6407_v60, %v6254_v7  ;;  %v2274_v44 = vadd.f32 %v6409_v61, %v6256_v58 }
 0x3de   : > { %v5180_v1 = vpop.eup %5179  ;;  %v2663_v22 = vadd.f32 1.0, %v5178_v26  ;;  %3262 = vmatmul.mubr.bf16.gmra.mrb[108].mxu0 %v2890_v5  ;;  %3423 = vmatmul.mubr.bf16.gmra.mrb[140].mxu1 %v2892_v23  ;;  %v2085_v38 = vadd.f32 %v6429_v16, %v6248_v4  ;;  %v2278_v14 = vadd.f32 %v6431_v33, %v6250_v6  ;;  %v2087_v3 = vadd.f32 %v6436_v19, %v6254_v7 }
 0x3df   : > { %v5182_v17 = vpop.eup %5181  ;;  %v2665_v55 = vadd.f32 1.0, %v5180_v1  ;;  %v6519_v28 = vpop.f32.mrb[68].mxu0  ;;  %5197 = vtanh.f32 %v2418_v41  ;;  %v2419_v49 = vmul.f32 0.5, %v2081_v46  ;;  %v2421_v33 = vmul.f32 0.5, %v2274_v44  ;;  %4568 = vmatpush3.bf16.msra.mxu0 %v4895_v40 }
 0x3e0   : > { %v6521_v39 = vpop.f32.mrb[100].mxu1  ;;  %v5184_v60 = vpop.eup %5183  ;;  %v2666_v11 = vadd.f32 1.0, %v5182_v17  ;;  %5199 = vtanh.f32 %v2420_v62  ;;  %v2422_v45 = vmul.f32 0.5, %v2085_v38  ;;  %v6533_v51 = vmul.f32 0.5, %v2662_v57 }
 0x3e1   : > { %v6525_v24 = vpop.f32.mrb[69].mxu0  ;;  %v6527_v61 = vpop.f32.mrb[101].mxu1  ;;  %v2668_v31 = vadd.f32 1.0, %v5184_v60  ;;  %5201 = vtanh.f32 %v2419_v49  ;;  %v2424_v19 = vmul.f32 0.5, %v2278_v14  ;;  %v6539_v35 = vmul.f32 0.5, %v2664_v15 }
 0x3e2   : > { %v5186_v16 = vpop.eup %5185  ;;  %v6529_v50 = vpop.f32.mrb[70].mxu0  ;;  %5203 = vtanh.f32 %v2421_v33  ;;  %v2423_v25 = vmul.f32 0.5, %v2087_v3  ;;  %v6541_v5 = vmul.f32 0.5, %v2663_v22  ;;  %v6543_v23 = vmul.f32 0.5, %v2665_v55 }
 0x3e3   : > { %v6531_v27 = vpop.f32.mrb[102].mxu1  ;;  %v5188_v53 = vpop.eup %5187  ;;  %v2667_v26 = vadd.f32 1.0, %v5186_v16  ;;  %5205 = vtanh.f32 %v2422_v45  ;;  %v2280_v57 = vadd.f32 %v6438_v32, %v6256_v58  ;;  %v6547_v62 = vmul.f32 0.5, %v2666_v11 }
 0x3e4   : > { %v6535_v8 = vpop.f32.mrb[71].mxu0  ;;  %v6537_v59 = vpop.f32.mrb[103].mxu1  ;;  %v2669_v1 = vadd.f32 1.0, %v5188_v53  ;;  %v6549_v46 = vmul.f32 0.5, %v2668_v31  ;;  %5207 = vtanh.f32 %v2424_v19  ;;  %v2895_v10 = vpack.c.bf16 %v6492_v13, %v6472_v37 }
 0x3e5   : > { %v5190_v20 = vpop.eup %5189  ;;  %v6553_v17 = vmul.f32 0.5, %v2667_v26  ;;  %5209 = vtanh.f32 %v2423_v25  ;;  %v2425_v22 = vmul.f32 0.5, %v2280_v57  ;;  %v2897_v55 = vpack.c.bf16 %v6501_v18, %v6480_v47 }
 0x3e6   : > { %v5192_v41 = vpop.eup %5191  ;;  %v6557_v32 = vmul.f32 0.5, %v2669_v1  ;;  %v2670_v38 = vadd.f32 1.0, %v5190_v20  ;;  %3269 = vmatprep.mubr.bf16.mxu0 %v2895_v10  ;;  %v2089_v14 = vadd.f32 %v6442_v42, %v6248_v4  ;;  %v2282_v37 = vadd.f32 %v6444_v12, %v6250_v6 }
 0x3e7   : > { %v5194_v15 = vpop.eup %5193  ;;  %v6563_v13 = vpop.f32.mrb[72].mxu0  ;;  %v2672_v11 = vadd.f32 1.0, %v5192_v41  ;;  %5211 = vtanh.f32 %v2425_v22  ;;  %3430 = vmatprep.mubr.bf16.mxu1 %v2897_v55  ;;  %v2894_v47 = vpack.c.bf16 %v6482_v34, %v6464_v63  ;;  %v2896_v18 = vpack.c.bf16 %v6484_v48, %v6466_v2 }
 0x3e8   : > { %v5196_v44 = vpop.eup %5195  ;;  %v6565_v60 = vpop.f32.mrb[104].mxu1  ;;  %v2671_v42 = vadd.f32 1.0, %v5194_v15  ;;  %v2426_v3 = vmul.f32 0.5, %v2089_v14  ;;  %v2428_v12 = vmul.f32 0.5, %v2282_v37  ;;  %v2091_v16 = vadd.f32 %v6452_v56, %v6254_v7 }
 0x3e9   : > { %v6571_v40 = vpop.f32.mrb[73].mxu0  ;;  %v6573_v49 = vpop.f32.mrb[105].mxu1  ;;  %v2673_v53 = vadd.f32 1.0, %v5196_v44  ;;  %3270 = vmatmul.mubr.bf16.gmra.mrb[112].mxu0 %v2894_v47  ;;  %3431 = vmatmul.mubr.bf16.gmra.mrb[144].mxu1 %v2896_v18  ;;  %v2284_v63 = vadd.f32 %v6454_v54, %v6256_v58  ;;  %v2095_v2 = vadd.f32 %v6468_v29, %v6248_v4  ;;  %v2288_v34 = vadd.f32 %v6470_v30, %v6250_v6 }
 0x3ea   : > { %v6577_v31 = vpop.f32.mrb[74].mxu0  ;;  %v6579_v33 = vpop.f32.mrb[106].mxu1  ;;  %5213 = vtanh.f32 %v2426_v3  ;;  %v2427_v1 = vmul.f32 0.5, %v2091_v16  ;;  %v2097_v25 = vadd.f32 %v6476_v21, %v6254_v7  ;;  %v6593_v10 = vmul.f32 0.5, %v2670_v38 }
 0x3eb   : > { %v5198_v45 = vpop.eup %5197  ;;  %v6587_v48 = vpop.f32.mrb[75].mxu0  ;;  %5215 = vtanh.f32 %v2428_v12  ;;  %v2429_v54 = vmul.f32 0.5, %v2284_v63  ;;  %v2430_v41 = vmul.f32 0.5, %v2095_v2  ;;  %v2432_v15 = vmul.f32 0.5, %v2288_v34 }
 0x3ec   : > { %v6589_v56 = vpop.f32.mrb[107].mxu1  ;;  %v5200_v26 = vpop.eup %5199  ;;  %v2674_v19 = vadd.f32 1.0, %v5198_v45  ;;  %5217 = vtanh.f32 %v2427_v1  ;;  %v6595_v55 = vmul.f32 0.5, %v2672_v11  ;;  %v2431_v14 = vmul.f32 0.5, %v2097_v25 }
 0x3ed   : > { %v5202_v20 = vpop.eup %5201  ;;  %v2676_v57 = vadd.f32 1.0, %v5200_v26  ;;  %5219 = vtanh.f32 %v2429_v54  ;;  %v6597_v47 = vmul.f32 0.5, %v2671_v42  ;;  %v6599_v21 = vmul.f32 0.5, %v2673_v53 }
 0x3ee   : > { %v5204_v29 = vpop.eup %5203  ;;  %v2675_v30 = vadd.f32 1.0, %v5202_v20  ;;  %5221 = vtanh.f32 %v2430_v41  ;;  %v2290_v18 = vadd.f32 %v6478_v0, %v6256_v58  ;;  %v6607_v16 = vmul.f32 0.5, %v2674_v19 }
 0x3ef   : > { %v5206_v22 = vpop.eup %5205  ;;  %v2677_v44 = vadd.f32 1.0, %v5204_v29  ;;  %v6603_v38 = vpop.f32.mrb[76].mxu0  ;;  %v6609_v11 = vmul.f32 0.5, %v2676_v57  ;;  %5223 = vtanh.f32 %v2432_v15  ;;  %v2899_v42 = vpack.c.bf16 %v6553_v17, %v6541_v5 }
 0x3f0   : > { %v5208_v37 = vpop.eup %5207  ;;  %v6605_v3 = vpop.f32.mrb[108].mxu1  ;;  %v6617_v63 = vmul.f32 0.5, %v2675_v30  ;;  %v2678_v0 = vadd.f32 1.0, %v5206_v22  ;;  %5225 = vtanh.f32 %v2431_v14  ;;  %v2433_v2 = vmul.f32 0.5, %v2290_v18 }
 0x3f1   : > { %v5210_v12 = vpop.eup %5209  ;;  %v6613_v45 = vpop.f32.mrb[77].mxu0  ;;  %v6623_v1 = vmul.f32 0.5, %v2677_v44  ;;  %3277 = vmatprep.mubr.bf16.mxu0 %v2899_v42  ;;  %v2901_v5 = vpack.c.bf16 %v6557_v32, %v6543_v23  ;;  %v2099_v17 = vadd.f32 %v6488_v36, %v6248_v4  ;;  %v2292_v25 = vadd.f32 %v6490_v9, %v6250_v6 }
 0x3f2   : > { %v6615_v53 = vpop.f32.mrb[109].mxu1  ;;  %v6619_v34 = vpop.f32.mrb[78].mxu0  ;;  %v2680_v54 = vadd.f32 1.0, %v5208_v37  ;;  %v2679_v41 = vadd.f32 1.0, %v5210_v12  ;;  %5227 = vtanh.f32 %v2433_v2  ;;  %v2898_v29 = vpack.c.bf16 %v6547_v62, %v6533_v51 }
 0x3f3   : > { %v6621_v26 = vpop.f32.mrb[110].mxu1  ;;  %v5212_v19 = vpop.eup %5211  ;;  %3438 = vmatprep.mubr.bf16.mxu1 %v2901_v5  ;;  %v2434_v30 = vmul.f32 0.5, %v2099_v17  ;;  %v2436_v15 = vmul.f32 0.5, %v2292_v25  ;;  %v2900_v23 = vpack.c.bf16 %v6549_v46, %v6539_v35  ;;  %v2101_v36 = vadd.f32 %v6496_v43, %v6254_v7 }
 0x3f4   : > { %v6631_v20 = vpop.f32.mrb[79].mxu0  ;;  %v6633_v57 = vpop.f32.mrb[111].mxu1  ;;  %v2681_v32 = vadd.f32 1.0, %v5212_v19  ;;  %3278 = vmatmul.mubr.bf16.gmra.mrb[116].mxu0 %v2898_v29  ;;  %v2294_v22 = vadd.f32 %v6498_v52, %v6256_v58  ;;  %v2105_v44 = vadd.f32 %v6519_v28, %v6248_v4  ;;  %v2298_v51 = vadd.f32 %v6521_v39, %v6250_v6 }
 0x3f5   : > { %v5214_v9 = vpop.eup %5213  ;;  %5229 = vtanh.f32 %v2434_v30  ;;  %3439 = vmatmul.mubr.bf16.gmra.mrb[148].mxu1 %v2900_v23  ;;  %v2435_v35 = vmul.f32 0.5, %v2101_v36  ;;  %v2107_v43 = vadd.f32 %v6525_v24, %v6254_v7  ;;  %v6653_v2 = vmul.f32 0.5, %v2678_v0 }
 0x3f6   : > { %v5216_v62 = vpop.eup %5215  ;;  %v2682_v14 = vadd.f32 1.0, %v5214_v9  ;;  %5231 = vtanh.f32 %v2436_v15  ;;  %v2437_v18 = vmul.f32 0.5, %v2294_v22  ;;  %v2438_v12 = vmul.f32 0.5, %v2105_v44 }
 0x3f7   : > { %v5218_v46 = vpop.eup %5217  ;;  %v2684_v37 = vadd.f32 1.0, %v5216_v62  ;;  %v6649_v52 = vpop.f32.mrb[80].mxu0  ;;  %5233 = vtanh.f32 %v2435_v35  ;;  %v2440_v19 = vmul.f32 0.5, %v2298_v51  ;;  %v6659_v25 = vmul.f32 0.5, %v2680_v54 }
 0x3f8   : > { %v6651_v42 = vpop.f32.mrb[112].mxu1  ;;  %v5220_v28 = vpop.eup %5219  ;;  %v2683_v39 = vadd.f32 1.0, %v5218_v46  ;;  %5235 = vtanh.f32 %v2437_v18  ;;  %v2439_v30 = vmul.f32 0.5, %v2107_v43  ;;  %v6665_v0 = vmul.f32 0.5, %v2679_v41 }
 0x3f9   : > { %v6655_v5 = vpop.f32.mrb[81].mxu0  ;;  %v6657_v17 = vpop.f32.mrb[113].mxu1  ;;  %v2685_v29 = vadd.f32 1.0, %v5220_v28  ;;  %v6667_v9 = vmul.f32 0.5, %v2681_v32  ;;  %5237 = vtanh.f32 %v2438_v12  ;;  %v2300_v22 = vadd.f32 %v6527_v61, %v6256_v58 }
 0x3fa   : > { %v5222_v24 = vpop.eup %5221  ;;  %v6661_v15 = vpop.f32.mrb[82].mxu0  ;;  %v6675_v62 = vmul.f32 0.5, %v2682_v14  ;;  %v6677_v35 = vmul.f32 0.5, %v2684_v37  ;;  %5239 = vtanh.f32 %v2440_v19  ;;  %v2903_v41 = vpack.c.bf16 %v6617_v63, %v6597_v47 }
 0x3fb   : > { %v6663_v23 = vpop.f32.mrb[114].mxu1  ;;  %v5224_v36 = vpop.eup %5223  ;;  %v6681_v43 = vmul.f32 0.5, %v2683_v39  ;;  %v2686_v32 = vadd.f32 1.0, %v5222_v24  ;;  %5241 = vtanh.f32 %v2439_v30  ;;  %v2441_v46 = vmul.f32 0.5, %v2300_v22 }
 0x3fc   : > { %v6671_v44 = vpop.f32.mrb[83].mxu0  ;;  %v6673_v54 = vpop.f32.mrb[115].mxu1  ;;  %v6683_v61 = vmul.f32 0.5, %v2685_v29  ;;  %3285 = vmatprep.mubr.bf16.mxu0 %v2903_v41  ;;  %v2905_v12 = vpack.c.bf16 %v6623_v1, %v6599_v21  ;;  %v2109_v14 = vadd.f32 %v6529_v50, %v6248_v4  ;;  %v2302_v37 = vadd.f32 %v6531_v27, %v6250_v6 }
 0x3fd   : > { %v5226_v51 = vpop.eup %5225  ;;  %v2688_v28 = vadd.f32 1.0, %v5224_v36  ;;  %5243 = vtanh.f32 %v2441_v46  ;;  %v2902_v63 = vpack.c.bf16 %v6607_v16, %v6593_v10  ;;  %v2904_v24 = vpack.c.bf16 %v6609_v11, %v6595_v55 }
 0x3fe   : > { %v5228_v18 = vpop.eup %5227  ;;  %v2687_v47 = vadd.f32 1.0, %v5226_v51  ;;  %3446 = vmatprep.mubr.bf16.mxu1 %v2905_v12  ;;  %v2442_v39 = vmul.f32 0.5, %v2109_v14  ;;  %v2444_v19 = vmul.f32 0.5, %v2302_v37  ;;  %v2111_v21 = vadd.f32 %v6535_v8, %v6254_v7 }
 0x3ff   : > { %v6697_v1 = vpop.f32.mrb[84].mxu0  ;;  %v6699_v50 = vpop.f32.mrb[116].mxu1  ;;  %v2689_v29 = vadd.f32 1.0, %v5228_v18  ;;  %3286 = vmatmul.mubr.bf16.gmra.mrb[120].mxu0 %v2902_v63  ;;  %v2304_v30 = vadd.f32 %v6537_v59, %v6256_v58  ;;  %v2115_v10 = vadd.f32 %v6563_v13, %v6248_v4  ;;  %v2308_v16 = vadd.f32 %v6565_v60, %v6250_v6  ;;  %3447 = vmatmul.mubr.bf16.gmra.mrb[152].mxu1 %v2904_v24 }
 0x400   : > { %v5230_v27 = vpop.eup %5229  ;;  %v6707_v55 = vpop.f32.mrb[85].mxu0  ;;  %5245 = vtanh.f32 %v2442_v39  ;;  %v2443_v22 = vmul.f32 0.5, %v2111_v21  ;;  %v2117_v51 = vadd.f32 %v6571_v40, %v6254_v7  ;;  %v6721_v63 = vmul.f32 0.5, %v2686_v32 }
 0x401   : > { %v6709_v11 = vpop.f32.mrb[117].mxu1  ;;  %v5232_v8 = vpop.eup %5231  ;;  %v2690_v36 = vadd.f32 1.0, %v5230_v27  ;;  %5247 = vtanh.f32 %v2444_v19  ;;  %v2445_v60 = vmul.f32 0.5, %v2304_v30  ;;  %v2446_v18 = vmul.f32 0.5, %v2115_v10 }
 0x402   : > { %v6713_v41 = vpop.f32.mrb[86].mxu0  ;;  %v6715_v59 = vpop.f32.mrb[118].mxu1  ;;  %v2692_v46 = vadd.f32 1.0, %v5232_v8  ;;  %5249 = vtanh.f32 %v2443_v22  ;;  %v2448_v24 = vmul.f32 0.5, %v2308_v16  ;;  %v6723_v21 = vmul.f32 0.5, %v2688_v28 }
 0x403   : > { %7181 = vst [vmem:[#allocation19_spill] sm:$0xff] %v6715_v59  ;;  %v5234_v13 = vpop.eup %5233  ;;  %v6717_v12 = vpop.f32.mrb[87].mxu0  ;;  %5251 = vtanh.f32 %v2445_v60  ;;  %v2447_v59 = vmul.f32 0.5, %v2117_v51  ;;  %v6725_v19 = vmul.f32 0.5, %v2687_v47  ;;  %v6727_v30 = vmul.f32 0.5, %v2689_v29 }
 0x404   : > { %v6719_v14 = vpop.f32.mrb[119].mxu1  ;;  %v5236_v37 = vpop.eup %5235  ;;  %v2691_v39 = vadd.f32 1.0, %v5234_v13  ;;  %5253 = vtanh.f32 %v2446_v18  ;;  %v2310_v10 = vadd.f32 %v6573_v49, %v6256_v58  ;;  %v6733_v22 = vmul.f32 0.5, %v2692_v46 }
 0x405   : > { %7182 = vst [vmem:[#allocation20_spill] sm:$0xff] %v6719_v14  ;;  %v5238_v40 = vpop.eup %5237  ;;  %v2693_v27 = vadd.f32 1.0, %v5236_v37  ;;  %v6731_v14 = vmul.f32 0.5, %v2690_v36  ;;  %5255 = vtanh.f32 %v2448_v24  ;;  %v2907_v28 = vpack.c.bf16 %v6681_v43, %v6665_v0 }
 0x406   : > { %v5240_v8 = vpop.eup %5239  ;;  %v6737_v16 = vmul.f32 0.5, %v2691_v39  ;;  %v2694_v51 = vadd.f32 1.0, %v5238_v40  ;;  %5257 = vtanh.f32 %v2447_v59  ;;  %v2449_v47 = vmul.f32 0.5, %v2310_v10 }
 0x407   : > { %v5242_v32 = vpop.eup %5241  ;;  %v6739_v29 = vpop.f32.mrb[88].mxu0  ;;  %v6743_v49 = vmul.f32 0.5, %v2693_v27  ;;  %3293 = vmatprep.mubr.bf16.mxu0 %v2907_v28  ;;  %v2909_v36 = vpack.c.bf16 %v6683_v61, %v6667_v9  ;;  %v2119_v46 = vadd.f32 %v6577_v31, %v6248_v4  ;;  %v2312_v0 = vadd.f32 %v6579_v33, %v6250_v6 }
 0x408   : > { %v6741_v13 = vpop.f32.mrb[120].mxu1  ;;  %v5244_v60 = vpop.eup %5243  ;;  %v2696_v18 = vadd.f32 1.0, %v5240_v8  ;;  %v2695_v37 = vadd.f32 1.0, %v5242_v32  ;;  %5259 = vtanh.f32 %v2449_v47  ;;  %v2906_v39 = vpack.c.bf16 %v6675_v62, %v6653_v2 }
 0x409   : > { %v6751_v43 = vpop.f32.mrb[89].mxu0  ;;  %v6753_v59 = vpop.f32.mrb[121].mxu1  ;;  %3454 = vmatprep.mubr.bf16.mxu1 %v2909_v36  ;;  %v2450_v9 = vmul.f32 0.5, %v2119_v46  ;;  %v2452_v31 = vmul.f32 0.5, %v2312_v0  ;;  %v2908_v33 = vpack.c.bf16 %v6677_v35, %v6659_v25  ;;  %v2121_v61 = vadd.f32 %v6587_v48, %v6254_v7 }
 0x40a   : > { %v6757_v24 = vpop.f32.mrb[90].mxu0  ;;  %v6759_v40 = vpop.f32.mrb[122].mxu1  ;;  %v2697_v32 = vadd.f32 1.0, %v5244_v60  ;;  %3294 = vmatmul.mubr.bf16.gmra.mrb[124].mxu0 %v2906_v39  ;;  %v2314_v2 = vadd.f32 %v6589_v56, %v6256_v58  ;;  %v2125_v62 = vadd.f32 %v6603_v38, %v6248_v4  ;;  %v2318_v28 = vadd.f32 %v6605_v3, %v6250_v6 }
 0x40b   : > { %v6765_v27 = vpop.f32.mrb[91].mxu0  ;;  %v6767_v8 = vpop.f32.mrb[123].mxu1  ;;  %5261 = vtanh.f32 %v2450_v9  ;;  %3455 = vmatmul.mubr.bf16.gmra.mrb[156].mxu1 %v2908_v33  ;;  %v2451_v48 = vmul.f32 0.5, %v2121_v61  ;;  %v2127_v47 = vadd.f32 %v6613_v45, %v6254_v7  ;;  %v6777_v39 = vmul.f32 0.5, %v2694_v51 }
 0x40c   : > { %7183 = vst [vmem:[#allocation21_spill] sm:$0xff] %v6765_v27  ;;  %7184 = vst [vmem:[#allocation22_spill] sm:$0xff] %v6767_v8  ;;  %v5246_v10 = vpop.eup %5245  ;;  %5263 = vtanh.f32 %v2452_v31  ;;  %v2453_v46 = vmul.f32 0.5, %v2314_v2  ;;  %v2454_v0 = vmul.f32 0.5, %v2125_v62  ;;  %v2456_v8 = vmul.f32 0.5, %v2318_v28 }
 0x40d   : > { %v5248_v25 = vpop.eup %5247  ;;  %v2698_v35 = vadd.f32 1.0, %v5246_v10  ;;  %5265 = vtanh.f32 %v2451_v48  ;;  %v6779_v27 = vmul.f32 0.5, %v2696_v18  ;;  %v2455_v33 = vmul.f32 0.5, %v2127_v47 }
 0x40e   : > { %v5250_v36 = vpop.eup %5249  ;;  %v2700_v60 = vadd.f32 1.0, %v5248_v25  ;;  %5267 = vtanh.f32 %v2453_v46  ;;  %v6785_v31 = vmul.f32 0.5, %v2695_v37  ;;  %v6787_v2 = vmul.f32 0.5, %v2697_v32 }
 0x40f   : > { %v5252_v56 = vpop.eup %5251  ;;  %v2699_v38 = vadd.f32 1.0, %v5250_v36  ;;  %v6781_v61 = vpop.f32.mrb[92].mxu0  ;;  %5269 = vtanh.f32 %v2454_v0  ;;  %v2320_v51 = vadd.f32 %v6615_v53, %v6256_v58  ;;  %v6795_v25 = vmul.f32 0.5, %v2698_v35 }
 0x410   : > { %v5254_v3 = vpop.eup %5253  ;;  %v2701_v9 = vadd.f32 1.0, %v5252_v56  ;;  %v6783_v45 = vpop.f32.mrb[124].mxu1  ;;  %v6797_v48 = vmul.f32 0.5, %v2700_v60  ;;  %5271 = vtanh.f32 %v2456_v8  ;;  %v2911_v37 = vpack.c.bf16 %v6737_v16, %v6725_v19 }
 0x411   : > { %v5256_v10 = vpop.eup %5255  ;;  %v6791_v62 = vpop.f32.mrb[93].mxu0  ;;  %v6805_v36 = vmul.f32 0.5, %v2699_v38  ;;  %v2702_v53 = vadd.f32 1.0, %v5254_v3  ;;  %5273 = vtanh.f32 %v2455_v33  ;;  %v2457_v46 = vmul.f32 0.5, %v2320_v51 }
 0x412   : > { %v6793_v18 = vpop.f32.mrb[125].mxu1  ;;  %v5258_v28 = vpop.eup %5257  ;;  %v6811_v60 = vmul.f32 0.5, %v2701_v9  ;;  %3301 = vmatprep.mubr.bf16.mxu0 %v2911_v37  ;;  %v2913_v19 = vpack.c.bf16 %v6743_v49, %v6727_v30  ;;  %v2129_v16 = vadd.f32 %v6619_v34, %v6248_v4  ;;  %v2322_v8 = vadd.f32 %v6621_v26, %v6250_v6 }
 0x413   : > { %v6801_v47 = vpop.f32.mrb[94].mxu0  ;;  %v6803_v32 = vpop.f32.mrb[126].mxu1  ;;  %v2704_v38 = vadd.f32 1.0, %v5256_v10  ;;  %v2703_v3 = vadd.f32 1.0, %v5258_v28  ;;  %5275 = vtanh.f32 %v2457_v46  ;;  %v2910_v33 = vpack.c.bf16 %v6731_v14, %v6721_v63 }
 0x414   : > { %v6807_v0 = vpop.f32.mrb[95].mxu0  ;;  %v6809_v56 = vpop.f32.mrb[127].mxu1  ;;  %3462 = vmatprep.mubr.bf16.mxu1 %v2913_v19  ;;  %v2458_v51 = vmul.f32 0.5, %v2129_v16  ;;  %v2460_v9 = vmul.f32 0.5, %v2322_v8  ;;  %v2912_v37 = vpack.c.bf16 %v6733_v22, %v6723_v21  ;;  %v2131_v30 = vadd.f32 %v6631_v20, %v6254_v7 }
 0x415   : > { %v5260_v35 = vpop.eup %5259  ;;  %3302 = vmatmul.mubr.bf16.gmra.mrb[128].mxu0 %v2910_v33  ;;  %v2324_v26 = vadd.f32 %v6633_v57, %v6256_v58  ;;  %v2135_v10 = vadd.f32 %v6649_v52, %v6248_v4  ;;  %v2328_v14 = vadd.f32 %v6651_v42, %v6250_v6  ;;  %v2137_v20 = vadd.f32 %v6655_v5, %v6254_v7 }
 0x416   : > { %v5262_v49 = vpop.eup %5261  ;;  %v2705_v34 = vadd.f32 1.0, %v5260_v35  ;;  %5277 = vtanh.f32 %v2458_v51  ;;  %3463 = vmatmul.mubr.bf16.gmra.mrb[160].mxu1 %v2912_v37  ;;  %v2459_v21 = vmul.f32 0.5, %v2131_v30  ;;  %v6833_v16 = vmul.f32 0.5, %v2702_v53 }
 0x417   : > { %v5264_v63 = vpop.eup %5263  ;;  %v2706_v28 = vadd.f32 1.0, %v5262_v49  ;;  %5279 = vtanh.f32 %v2460_v9  ;;  %v2461_v35 = vmul.f32 0.5, %v2324_v26  ;;  %v2462_v19 = vmul.f32 0.5, %v2135_v10 }
 0x418   : > { %v5266_v22 = vpop.eup %5265  ;;  %v2708_v46 = vadd.f32 1.0, %v5264_v63  ;;  %5281 = vtanh.f32 %v2459_v21  ;;  %v2464_v8 = vmul.f32 0.5, %v2328_v14  ;;  %v6835_v33 = vmul.f32 0.5, %v2704_v38 }
 0x419   : > { %v5268_v57 = vpop.eup %5267  ;;  %v2707_v52 = vadd.f32 1.0, %v5266_v22  ;;  %5283 = vtanh.f32 %v2461_v35  ;;  %v2463_v37 = vmul.f32 0.5, %v2137_v20  ;;  %v6837_v49 = vmul.f32 0.5, %v2703_v3 }
 0x41a   : > { %v5270_v42 = vpop.eup %5269  ;;  %v2709_v51 = vadd.f32 1.0, %v5268_v57  ;;  %v6839_v5 = vmul.f32 0.5, %v2705_v34  ;;  %5285 = vtanh.f32 %v2462_v19  ;;  %v2330_v9 = vadd.f32 %v6657_v17, %v6256_v58 }
 0x41b   : > { %v5272_v30 = vpop.eup %5271  ;;  %v6843_v26 = vmul.f32 0.5, %v2706_v28  ;;  %v6845_v10 = vmul.f32 0.5, %v2708_v46  ;;  %5287 = vtanh.f32 %v2464_v8  ;;  %v2915_v38 = vpack.c.bf16 %v6805_v36, %v6785_v31 }
 0x41c   : > { %v5274_v53 = vpop.eup %5273  ;;  %v2835_v14 = vmul.f32 0.5, %v2707_v52  ;;  %v2710_v63 = vadd.f32 1.0, %v5270_v42  ;;  %5289 = vtanh.f32 %v2463_v37  ;;  %v2465_v3 = vmul.f32 0.5, %v2330_v9 }
 0x41d   : > { %v5276_v21 = vpop.eup %5275  ;;  %v6849_v34 = vmul.f32 0.5, %v2709_v51  ;;  %3309 = vmatprep.mubr.bf16.mxu0 %v2915_v38  ;;  %v2917_v17 = vpack.c.bf16 %v6811_v60, %v6787_v2  ;;  %v2139_v28 = vadd.f32 %v6661_v15, %v6248_v4  ;;  %v2332_v20 = vadd.f32 %v6663_v23, %v6250_v6 }
 0x41e   : > { %v2712_v22 = vadd.f32 1.0, %v5272_v30  ;;  %v2711_v46 = vadd.f32 1.0, %v5274_v53  ;;  %5291 = vtanh.f32 %v2465_v3  ;;  %v2914_v31 = vpack.c.bf16 %v6795_v25, %v6777_v39 }
 0x41f   : > { %3470 = vmatprep.mubr.bf16.mxu1 %v2917_v17  ;;  %v2466_v36 = vmul.f32 0.5, %v2139_v28  ;;  %v2468_v35 = vmul.f32 0.5, %v2332_v20  ;;  %v2916_v19 = vpack.c.bf16 %v6797_v48, %v6779_v27  ;;  %v2141_v2 = vadd.f32 %v6671_v44, %v6254_v7 }
 0x420   : > { %v5278_v60 = vpop.eup %5277  ;;  %v2713_v15 = vadd.f32 1.0, %v5276_v21  ;;  %3310 = vmatmul.mubr.bf16.gmra.mrb[132].mxu0 %v2914_v31  ;;  %v2334_v23 = vadd.f32 %v6673_v54, %v6256_v58  ;;  %v2145_v57 = vadd.f32 %v6697_v1, %v6248_v4  ;;  %v2338_v39 = vadd.f32 %v6699_v50, %v6250_v6 }
 0x421   : > { %v5280_v25 = vpop.eup %5279  ;;  %v2714_v52 = vadd.f32 1.0, %v5278_v60  ;;  %5293 = vtanh.f32 %v2466_v36  ;;  %3471 = vmatmul.mubr.bf16.gmra.mrb[164].mxu1 %v2916_v19  ;;  %v2467_v27 = vmul.f32 0.5, %v2141_v2  ;;  %v2147_v44 = vadd.f32 %v6707_v55, %v6254_v7  ;;  %v7185_v60 = vld [vmem:[#allocation19_spill] sm:$0xff] }
 0x422   : > { %v5282_v48 = vpop.eup %5281  ;;  %v2716_v8 = vadd.f32 1.0, %v5280_v25  ;;  %5295 = vtanh.f32 %v2468_v35  ;;  %v2469_v42 = vmul.f32 0.5, %v2334_v23  ;;  %v2470_v51 = vmul.f32 0.5, %v2145_v57 }
 0x423   : > { %v5284_v54 = vpop.eup %5283  ;;  %v6871_v37 = vmul.f32 0.5, %v2710_v63  ;;  %v2715_v1 = vadd.f32 1.0, %v5282_v48  ;;  %5297 = vtanh.f32 %v2467_v27  ;;  %v2472_v30 = vmul.f32 0.5, %v2338_v39 }
 0x424   : > { %v5286_v50 = vpop.eup %5285  ;;  %v6873_v9 = vmul.f32 0.5, %v2712_v22  ;;  %v2717_v53 = vadd.f32 1.0, %v5284_v54  ;;  %5299 = vtanh.f32 %v2469_v42  ;;  %v2471_v38 = vmul.f32 0.5, %v2147_v44 }
 0x425   : > { %v5288_v3 = vpop.eup %5287  ;;  %v6875_v21 = vmul.f32 0.5, %v2711_v46  ;;  %v6877_v55 = vmul.f32 0.5, %v2713_v15  ;;  %5301 = vtanh.f32 %v2470_v51  ;;  %v2340_v17 = vadd.f32 %v6709_v11, %v6256_v58 }
 0x426   : > { %v5290_v63 = vpop.eup %5289  ;;  %v6881_v28 = vmul.f32 0.5, %v2714_v52  ;;  %v6883_v20 = vmul.f32 0.5, %v2716_v8  ;;  %5303 = vtanh.f32 %v2472_v30  ;;  %v2919_v22 = vpack.c.bf16 %v2835_v14, %v6837_v49  ;;  %v7186_v52 = vld [vmem:[#allocation20_spill] sm:$0xff] }
 0x427   : > { %v2843_v31 = vmul.f32 0.5, %v2715_v1  ;;  %v2718_v36 = vadd.f32 1.0, %v5286_v50  ;;  %5305 = vtanh.f32 %v2471_v38  ;;  %v2473_v35 = vmul.f32 0.5, %v2340_v17 }
 0x428   : > { %v5292_v46 = vpop.eup %5291  ;;  %v6886_v19 = vmul.f32 0.5, %v2717_v53  ;;  %3317 = vmatprep.mubr.bf16.mxu0 %v2919_v22  ;;  %v2921_v2 = vpack.c.bf16 %v6849_v34, %v6839_v5  ;;  %v2149_v11 = vadd.f32 %v6713_v41, %v6248_v4  ;;  %v2342_v15 = vadd.f32 %v7185_v60, %v6250_v6 }
 0x429   : > { %v2720_v23 = vadd.f32 1.0, %v5288_v3  ;;  %v2719_v57 = vadd.f32 1.0, %v5290_v63  ;;  %5307 = vtanh.f32 %v2473_v35  ;;  %v2918_v49 = vpack.c.bf16 %v6843_v26, %v6833_v16 }
 0x42a   : > { %3478 = vmatprep.mubr.bf16.mxu1 %v2921_v2  ;;  %v2474_v14 = vmul.f32 0.5, %v2149_v11  ;;  %v2476_v39 = vmul.f32 0.5, %v2342_v15  ;;  %v2920_v25 = vpack.c.bf16 %v6845_v10, %v6835_v33  ;;  %v2151_v5 = vadd.f32 %v6717_v12, %v6254_v7 }
 0x42b   : > { %v5294_v34 = vpop.eup %5293  ;;  %v2721_v41 = vadd.f32 1.0, %v5292_v46  ;;  %3318 = vmatmul.mubr.bf16.gmra.mrb[136].mxu0 %v2918_v49  ;;  %v2344_v27 = vadd.f32 %v7186_v52, %v6256_v58  ;;  %v2155_v44 = vadd.f32 %v6739_v29, %v6248_v4  ;;  %v2348_v16 = vadd.f32 %v6741_v13, %v6250_v6 }
 0x42c   : > { %v5296_v26 = vpop.eup %5295  ;;  %v2722_v48 = vadd.f32 1.0, %v5294_v34  ;;  %5309 = vtanh.f32 %v2474_v14  ;;  %3479 = vmatmul.mubr.bf16.gmra.mrb[168].mxu1 %v2920_v25  ;;  %v2475_v33 = vmul.f32 0.5, %v2151_v5  ;;  %v2157_v12 = vadd.f32 %v6751_v43, %v6254_v7  ;;  %v4896_v34 = vld [vmem:[#allocation11 + $0x18] sm:$0xff]  }
 0x42d   : > { %v5298_v10 = vpop.eup %5297  ;;  %v2724_v8 = vadd.f32 1.0, %v5296_v26  ;;  %5311 = vtanh.f32 %v2476_v39  ;;  %v2477_v42 = vmul.f32 0.5, %v2344_v27  ;;  %v2478_v51 = vmul.f32 0.5, %v2155_v44  ;;  %4569 = vmatprep.subr.bf16.mxu0 %v4896_v34 }
 0x42e   : > { %v5300_v54 = vpop.eup %5299  ;;  %v6908_v1 = vmul.f32 0.5, %v2718_v36  ;;  %v2723_v29 = vadd.f32 1.0, %v5298_v10  ;;  %5313 = vtanh.f32 %v2475_v33  ;;  %v2480_v30 = vmul.f32 0.5, %v2348_v16  ;;  %4570 = vmatpush3.bf16.msra.mxu0 %v4896_v34 }
 0x42f   : > { %v5302_v13 = vpop.eup %5301  ;;  %v6910_v50 = vmul.f32 0.5, %v2720_v23  ;;  %v2725_v53 = vadd.f32 1.0, %v5300_v54  ;;  %5315 = vtanh.f32 %v2477_v42  ;;  %v2479_v38 = vmul.f32 0.5, %v2157_v12 }
 0x430   : > { %v5304_v3 = vpop.eup %5303  ;;  %v6912_v17 = vmul.f32 0.5, %v2719_v57  ;;  %v6914_v43 = vmul.f32 0.5, %v2721_v41  ;;  %5317 = vtanh.f32 %v2478_v51  ;;  %v2350_v63 = vadd.f32 %v6753_v59, %v6256_v58 }
 0x431   : > { %v5306_v22 = vpop.eup %5305  ;;  %v6918_v36 = vmul.f32 0.5, %v2722_v48  ;;  %v6920_v35 = vmul.f32 0.5, %v2724_v8  ;;  %5319 = vtanh.f32 %v2480_v30  ;;  %v2923_v46 = vpack.c.bf16 %v2843_v31, %v6875_v21 }
 0x432   : > { %v6923_v2 = vmul.f32 0.5, %v2723_v29  ;;  %v2726_v11 = vadd.f32 1.0, %v5302_v13  ;;  %5321 = vtanh.f32 %v2479_v38  ;;  %v2481_v60 = vmul.f32 0.5, %v2350_v63 }
 0x433   : > { %v5308_v15 = vpop.eup %5307  ;;  %v6925_v23 = vmul.f32 0.5, %v2725_v53  ;;  %3325 = vmatprep.mubr.bf16.mxu0 %v2923_v46  ;;  %v2925_v59 = vpack.c.bf16 %v6886_v19, %v6877_v55  ;;  %v2159_v57 = vadd.f32 %v6757_v24, %v6248_v4  ;;  %v2352_v49 = vadd.f32 %v6759_v40, %v6250_v6  ;;  %v7187_v55 = vld [vmem:[#allocation21_spill] sm:$0xff]  ;;  %v7188_v40 = vld [vmem:[#allocation22_spill] sm:$0xff] }
 0x434   : > { %v2728_v14 = vadd.f32 1.0, %v5304_v3  ;;  %v2727_v21 = vadd.f32 1.0, %v5306_v22  ;;  %5323 = vtanh.f32 %v2481_v60  ;;  %v2922_v31 = vpack.c.bf16 %v6881_v28, %v6871_v37 }
 0x435   : > { %3486 = vmatprep.mubr.bf16.mxu1 %v2925_v59  ;;  %v2482_v39 = vmul.f32 0.5, %v2159_v57  ;;  %v2484_v25 = vmul.f32 0.5, %v2352_v49  ;;  %v2924_v5 = vpack.c.bf16 %v6883_v20, %v6873_v9  ;;  %v2161_v19 = vadd.f32 %v7187_v55, %v6254_v7  ;;  %v4897_v59 = vld [vmem:[#allocation11 + $0x20] sm:$0xff]  }
 0x436   : > { %v5310_v24 = vpop.eup %5309  ;;  %v2729_v41 = vadd.f32 1.0, %v5308_v15  ;;  %3326 = vmatmul.mubr.bf16.gmra.mrb[140].mxu0 %v2922_v31  ;;  %v2354_v52 = vadd.f32 %v7188_v40, %v6256_v58  ;;  %v2165_v27 = vadd.f32 %v6781_v61, %v6248_v4  ;;  %v2358_v37 = vadd.f32 %v6783_v45, %v6250_v6  ;;  %4571 = vmatprep.subr.bf16.mxu0 %v4897_v59 }
 0x437   : > { %v5312_v28 = vpop.eup %5311  ;;  %v2730_v44 = vadd.f32 1.0, %v5310_v24  ;;  %5325 = vtanh.f32 %v2482_v39  ;;  %3487 = vmatmul.mubr.bf16.gmra.mrb[172].mxu1 %v2924_v5  ;;  %v2483_v9 = vmul.f32 0.5, %v2161_v19  ;;  %v2167_v20 = vadd.f32 %v6791_v62, %v6254_v7  ;;  %4572 = vmatpush3.bf16.msra.mxu0 %v4897_v59  ;;  %v4900_v59 = vld [vmem:[#allocation11 + $0x38] sm:$0xff]  }
 0x438   : > { %v5314_v16 = vpop.eup %5313  ;;  %v6947_v26 = vmul.f32 0.5, %v2726_v11  ;;  %v2732_v48 = vadd.f32 1.0, %v5312_v28  ;;  %5327 = vtanh.f32 %v2484_v25  ;;  %v2485_v33 = vmul.f32 0.5, %v2354_v52 }
 0x439   : > { %v5316_v61 = vpop.eup %5315  ;;  %v6949_v12 = vmul.f32 0.5, %v2728_v14  ;;  %v2731_v45 = vadd.f32 1.0, %v5314_v16  ;;  %5329 = vtanh.f32 %v2483_v9  ;;  %v2486_v10 = vmul.f32 0.5, %v2165_v27 }
 0x43a   : > { %v5318_v8 = vpop.eup %5317  ;;  %v2855_v42 = vmul.f32 0.5, %v2727_v21  ;;  %v2733_v51 = vadd.f32 1.0, %v5316_v61  ;;  %5331 = vtanh.f32 %v2485_v33  ;;  %v2488_v54 = vmul.f32 0.5, %v2358_v37  ;;  %v4898_v37 = vld [vmem:[#allocation11 + $0x28] sm:$0xff]  }
 0x43b   : > { %v5320_v62 = vpop.eup %5319  ;;  %v2857_v29 = vmul.f32 0.5, %v2729_v41  ;;  %v6951_v30 = vmul.f32 0.5, %v2730_v44  ;;  %v2487_v13 = vmul.f32 0.5, %v2167_v20  ;;  %v2360_v53 = vadd.f32 %v6793_v18, %v6256_v58  ;;  %4573 = vmatprep.subr.bf16.mxu0 %v4898_v37 }
 0x43c   : > { %v5322_v38 = vpop.eup %5321  ;;  %v6955_v3 = vmul.f32 0.5, %v2732_v48  ;;  %v2859_v63 = vmul.f32 0.5, %v2731_v45  ;;  %v2734_v22 = vadd.f32 1.0, %v5318_v8  ;;  %v2927_v46 = vpack.c.bf16 %v6923_v2, %v6912_v17  ;;  %v4899_v48 = vld [vmem:[#allocation11 + $0x30] sm:$0xff]   ;;  %4574 = vmatpush3.bf16.msra.mxu0 %v4898_v37 }
 0x43d   : > { %v2861_v11 = vmul.f32 0.5, %v2733_v51  ;;  %v2736_v60 = vadd.f32 1.0, %v5320_v62  ;;  %5333 = vtanh.f32 %v2486_v10  ;;  %v2489_v15 = vmul.f32 0.5, %v2360_v53  ;;  %4575 = vmatprep.subr.bf16.mxu0 %v4899_v48 }
 0x43e   : > { %v5324_v57 = vpop.eup %5323  ;;  %5335 = vtanh.f32 %v2488_v54  ;;  %3333 = vmatprep.mubr.bf16.mxu0 %v2927_v46  ;;  %v2929_v49 = vpack.c.bf16 %v6925_v23, %v6914_v43  ;;  %v2169_v18 = vadd.f32 %v6801_v47, %v6248_v4  ;;  %v2362_v14 = vadd.f32 %v6803_v32, %v6250_v6 }
 0x43f   : > { %v2735_v21 = vadd.f32 1.0, %v5322_v38  ;;  %v2737_v31 = vadd.f32 1.0, %v5324_v57  ;;  %5337 = vtanh.f32 %v2487_v13  ;;  %v2926_v17 = vpack.c.bf16 %v6918_v36, %v6908_v1 }
 0x440   : > { %3494 = vmatprep.mubr.bf16.mxu1 %v2929_v49  ;;  %v2490_v2 = vmul.f32 0.5, %v2169_v18  ;;  %v2492_v39 = vmul.f32 0.5, %v2362_v14  ;;  %v2928_v25 = vpack.c.bf16 %v6920_v35, %v6910_v50  ;;  %v2171_v43 = vadd.f32 %v6807_v0, %v6254_v7  ;;  %4576 = vmatpush3.bf16.msra.mxu0 %v4899_v48 }
 0x441   : > { %v5326_v4 = vpop.eup %5325  ;;  %5339 = vtanh.f32 %v2489_v15  ;;  %3334 = vmatmul.mubr.bf16.gmra.mrb[144].mxu0 %v2926_v17  ;;  %v2364_v6 = vadd.f32 %v6809_v56, %v6256_v58  ;;  %v2931_v47 = vpack.c.bf16 %v2859_v63, %v2855_v42  ;;  %v2933_v32 = vpack.c.bf16 %v2861_v11, %v2857_v29  ;;  %4577 = vmatprep.subr.bf16.mxu0 %v4900_v59 }
 0x442   : > { %v5328_v1 = vpop.eup %5327  ;;  %v2738_v36 = vadd.f32 1.0, %v5326_v4  ;;  %5341 = vtanh.f32 %v2490_v2  ;;  %3495 = vmatmul.mubr.bf16.gmra.mrb[176].mxu1 %v2928_v25  ;;  %v2491_v23 = vmul.f32 0.5, %v2171_v43  ;;  %v2930_v50 = vpack.c.bf16 %v6951_v30, %v6947_v26  ;;  %v6980_v2 = vld [vmem:[%s7189_s13] ss:$0 sm:$0xff]  ;;  %s5587_s13 = sshll.u32 %s5676_s29, 4  ;;  %s5588_s13 = int_to_ptr.vmem [resolvable:$false] %s5587_s13 }
 0x443   : > { %v5330_v35 = vpop.eup %5329  ;;  %v2740_v5 = vadd.f32 1.0, %v5328_v1  ;;  %5343 = vtanh.f32 %v2492_v39  ;;  %v2493_v7 = vmul.f32 0.5, %v2364_v6  ;;  %3341 = vmatprep.mubr.bf16.mxu0 %v2931_v47  ;;  %3502 = vmatprep.mubr.bf16.mxu1 %v2933_v32  ;;  %v2932_v0 = vpack.c.bf16 %v6955_v3, %v6949_v12  ;;  %s5589_s15 = scalar_lea.vmem %s5588_s13, 8192  ;;  %p5590_p11 = scmp.lt.s32.totalorder %s7089_s12, %s5588_s13 }
 0x444   : > { %v5332_v58 = vpop.eup %5331  ;;  %v2862_v56 = vmul.f32 0.5, %v2734_v22  ;;  %v2866_v55 = vmul.f32 0.5, %v2738_v36  ;;  %v2739_v19 = vadd.f32 1.0, %v5330_v35  ;;  %5345 = vtanh.f32 %v2491_v23  ;;  %4578 = vmatpush3.bf16.msra.mxu0 %v4900_v59  ;;  %p5591_p12 = scmp.lt.s32.totalorder %s5589_s15, %s5583_s27 }
 0x445   : > { %v2864_v34 = vmul.f32 0.5, %v2736_v60  ;;  %v2868_v24 = vmul.f32 0.5, %v2740_v5  ;;  %v2741_v41 = vadd.f32 1.0, %v5332_v58  ;;  %5347 = vtanh.f32 %v2493_v7 }
 0x446   : > { %v2863_v40 = vmul.f32 0.5, %v2735_v21  ;;  %v2867_v52 = vmul.f32 0.5, %v2739_v19  ;;  %v2934_v27 = vpack.c.bf16 %v2866_v55, %v2862_v56  ;;  %v2865_v44 = vmul.f32 0.5, %v2737_v31  ;;  %p5592_p13 = por %p5591_p12, %p5590_p11 }
 0x447   : > { %v5334_v28 = vpop.eup %5333  ;;  %v2869_v9 = vmul.f32 0.5, %v2741_v41  ;;  %v2936_v20 = vpack.c.bf16 %v2868_v24, %v2864_v34 }
 0x448   : > { %v5336_v16 = vpop.eup %5335  ;;  %v2935_v26 = vpack.c.bf16 %v2867_v52, %v2863_v40  ;;  %v2742_v45 = vadd.f32 1.0, %v5334_v28  ;;  %p5593_p8 = pnand %p5592_p13, %p5586_p1 }
 0x449   : > { %v5338_v33 = vpop.eup %5337  ;;  %3342 = vmatmul.mubr.bf16.gmra.mrb[148].mxu0 %v2930_v50  ;;  %v2937_v61 = vpack.c.bf16 %v2869_v9, %v2865_v44  ;;  %v2744_v8 = vadd.f32 1.0, %v5336_v16 }
 0x44a   : > { %3503 = vmatmul.mubr.bf16.gmra.mrb[180].mxu1 %v2932_v0  ;;  %3349 = vmatprep.mubr.bf16.mxu0 %v2935_v26  ;;  %v2743_v51 = vadd.f32 1.0, %v5338_v33  ;;  %v2870_v53 = vmul.f32 0.5, %v2742_v45 }
 0x44b   : > { %v5340_v12 = vpop.eup %5339  ;;  %3510 = vmatprep.mubr.bf16.mxu1 %v2937_v61  ;;  %v2872_v63 = vmul.f32 0.5, %v2744_v8 }
 0x44c   : > { %v5342_v10 = vpop.eup %5341  ;;  %v2745_v29 = vadd.f32 1.0, %v5340_v12  ;;  %v2871_v11 = vmul.f32 0.5, %v2743_v51 }
 0x44d   : > { %v5344_v42 = vpop.eup %5343  ;;  %v2746_v54 = vadd.f32 1.0, %v5342_v10 }
 0x44e   : > { %v5346_v62 = vpop.eup %5345  ;;  %v2748_v30 = vadd.f32 1.0, %v5344_v42  ;;  %v2873_v57 = vmul.f32 0.5, %v2745_v29 }
 0x44f   : > { %v5348_v13 = vpop.eup %5347  ;;  %v2874_v38 = vmul.f32 0.5, %v2746_v54  ;;  %v2747_v3 = vadd.f32 1.0, %v5346_v62 }
 0x450   : > { %v2876_v22 = vmul.f32 0.5, %v2748_v30  ;;  %v2749_v46 = vadd.f32 1.0, %v5348_v13 }
 0x451   : > { %v2875_v60 = vmul.f32 0.5, %v2747_v3  ;;  %3350 = vmatmul.mubr.bf16.gmra.mrb[152].mxu0 %v2934_v27  ;;  %v2938_v15 = vpack.c.bf16 %v2874_v38, %v2870_v53 }
 0x452   : > { %v2877_v49 = vmul.f32 0.5, %v2749_v46  ;;  %3511 = vmatmul.mubr.bf16.gmra.mrb[184].mxu1 %v2936_v20  ;;  %v2940_v18 = vpack.c.bf16 %v2876_v22, %v2872_v63 }
 0x453   : > { %v2939_v14 = vpack.c.bf16 %v2875_v60, %v2871_v11 }
 0x454   : > { %v2941_v21 = vpack.c.bf16 %v2877_v49, %v2873_v57 }
 0x455   : > { %3357 = vmatprep.mubr.bf16.mxu0 %v2939_v14 }
 0x456   : > { %3518 = vmatprep.mubr.bf16.mxu1 %v2941_v21 }
 0x459   : > { %3358 = vmatmul.mubr.bf16.gmra.mrb[156].mxu0 %v2938_v15 }
 0x45a   : > { %3519 = vmatmul.mubr.bf16.gmra.mrb[188].mxu1 %v2940_v18 }
 0x48e   : > { %v4283_v31 = vpop.f32.mrb[96].mxu0  ;;  %v4395_v17 = vpop.f32.mrb[128].mxu1 }
 0x48f   : > { %v4284_v39 = vpop.f32.mrb[97].mxu0  ;;  %v4396_v25 = vpop.f32.mrb[129].mxu1 }
 0x490   : > { %v4285_v43 = vadd.f32 %v4284_v39, %v4283_v31  ;;  %v4397_v4 = vadd.f32 %v4396_v25, %v4395_v17  ;;  %v4286_v6 = vpop.f32.mrb[98].mxu0  ;;  %v4398_v47 = vpop.f32.mrb[130].mxu1 }
 0x491   : > { %v4287_v32 = vpop.f32.mrb[99].mxu0  ;;  %v4399_v1 = vpop.f32.mrb[131].mxu1 }
 0x492   : > { %v3240_v36 = vadd.f32 %v4285_v43, %v6980_v2  ;;  %v4288_v23 = vadd.f32 %v4287_v32, %v4286_v6  ;;  %v4400_v50 = vadd.f32 %v4399_v1, %v4398_v47 }
 0x494   : > { %v3401_v35 = vadd.f32 %v4397_v4, %v3240_v36  ;;  %v3243_v5 = vadd.f32 %v4288_v23, %v6980_v2 }
 0x496   : > { %v3527_v7 = vmul.f32 0.5, %v3401_v35  ;;  %v3404_v0 = vadd.f32 %v4400_v50, %v3243_v5 }
 0x498   : > { %5349 = vtanh.f32 %v3527_v7  ;;  %v3528_v58 = vmul.f32 0.5, %v3404_v0 }
 0x49a   : > { %v4289_v56 = vpop.f32.mrb[100].mxu0  ;;  %v4401_v55 = vpop.f32.mrb[132].mxu1  ;;  %5351 = vtanh.f32 %v3528_v58 }
 0x49b   : > { %v4290_v19 = vpop.f32.mrb[101].mxu0  ;;  %v4402_v34 = vpop.f32.mrb[133].mxu1 }
 0x49c   : > { %v4291_v24 = vadd.f32 %v4290_v19, %v4289_v56  ;;  %v4403_v41 = vadd.f32 %v4402_v34, %v4401_v55  ;;  %v4292_v40 = vpop.f32.mrb[102].mxu0  ;;  %v4404_v52 = vpop.f32.mrb[134].mxu1 }
 0x49d   : > { %v4293_v27 = vpop.f32.mrb[103].mxu0  ;;  %v4405_v37 = vpop.f32.mrb[135].mxu1 }
 0x49e   : > { %v3248_v28 = vadd.f32 %v4291_v24, %v6980_v2  ;;  %v4294_v44 = vadd.f32 %v4293_v27, %v4292_v40  ;;  %v4406_v9 = vadd.f32 %v4405_v37, %v4404_v52 }
 0x4a0   : > { %v3409_v20 = vadd.f32 %v4403_v41, %v3248_v28  ;;  %v3251_v16 = vadd.f32 %v4294_v44, %v6980_v2 }
 0x4a2   : > { %v3529_v26 = vmul.f32 0.5, %v3409_v20  ;;  %v3412_v48 = vadd.f32 %v4406_v9, %v3251_v16  ;;  %v5350_v33 = vpop.eup %5349 }
 0x4a3   : > { %v3591_v61 = vadd.f32 1.0, %v5350_v33 }
 0x4a4   : > { %5353 = vtanh.f32 %v3529_v26  ;;  %v3530_v12 = vmul.f32 0.5, %v3412_v48  ;;  %v5352_v45 = vpop.eup %5351 }
 0x4a5   : > { %v3592_v10 = vadd.f32 1.0, %v5352_v45  ;;  %v3623_v53 = vmul.f32 0.5, %v3591_v61 }
 0x4a6   : > { %5355 = vtanh.f32 %v3530_v12  ;;  %v4295_v8 = vpop.f32.mrb[104].mxu0  ;;  %v4407_v42 = vpop.f32.mrb[136].mxu1 }
 0x4a7   : > { %v4296_v51 = vpop.f32.mrb[105].mxu0  ;;  %v4408_v54 = vpop.f32.mrb[137].mxu1  ;;  %v3624_v38 = vmul.f32 0.5, %v3592_v10 }
 0x4a8   : > { %v4297_v62 = vadd.f32 %v4296_v51, %v4295_v8  ;;  %v4409_v29 = vadd.f32 %v4408_v54, %v4407_v42  ;;  %v4298_v30 = vpop.f32.mrb[106].mxu0  ;;  %v4410_v13 = vpop.f32.mrb[138].mxu1 }
 0x4a9   : > { %v4299_v3 = vpop.f32.mrb[107].mxu0  ;;  %v4411_v63 = vpop.f32.mrb[139].mxu1  ;;  %v3655_v60 = vpack.c.bf16 %v3624_v38, %v3623_v53 }
 0x4aa   : > { %v3256_v22 = vadd.f32 %v4297_v62, %v6980_v2  ;;  %v4300_v46 = vadd.f32 %v4299_v3, %v4298_v30  ;;  %v4412_v11 = vadd.f32 %v4411_v63, %v4410_v13 }
 0x4ab   : > { %4579 = vmatprep.mubr.bf16.mxu0 %v3655_v60 }
 0x4ac   : > { %v3417_v15 = vadd.f32 %v4409_v29, %v3256_v22  ;;  %v3259_v59 = vadd.f32 %v4300_v46, %v6980_v2 }
 0x4ae   : > { %v5354_v57 = vpop.eup %5353  ;;  %v3531_v49 = vmul.f32 0.5, %v3417_v15  ;;  %v3420_v18 = vadd.f32 %v4412_v11, %v3259_v59 }
 0x4af   : > { %v3593_v14 = vadd.f32 1.0, %v5354_v57 }
 0x4b0   : > { %v5356_v21 = vpop.eup %5355  ;;  %5357 = vtanh.f32 %v3531_v49  ;;  %v3532_v31 = vmul.f32 0.5, %v3420_v18 }
 0x4b1   : > { %v3594_v17 = vadd.f32 1.0, %v5356_v21  ;;  %v4301_v39 = vpop.f32.mrb[108].mxu0  ;;  %v4413_v25 = vpop.f32.mrb[140].mxu1  ;;  %v3625_v6 = vmul.f32 0.5, %v3593_v14 }
 0x4b2   : > { %5359 = vtanh.f32 %v3532_v31  ;;  %v4302_v43 = vpop.f32.mrb[109].mxu0  ;;  %v4414_v4 = vpop.f32.mrb[141].mxu1 }
 0x4b3   : > { %v3626_v47 = vmul.f32 0.5, %v3594_v17  ;;  %v4303_v32 = vadd.f32 %v4302_v43, %v4301_v39  ;;  %v4415_v1 = vadd.f32 %v4414_v4, %v4413_v25  ;;  %v4304_v36 = vpop.f32.mrb[110].mxu0  ;;  %v4416_v23 = vpop.f32.mrb[142].mxu1 }
 0x4b4   : > { %v4305_v50 = vpop.f32.mrb[111].mxu0  ;;  %v4417_v35 = vpop.f32.mrb[143].mxu1 }
 0x4b5   : > { %v3656_v5 = vpack.c.bf16 %v3626_v47, %v3625_v6  ;;  %v3264_v7 = vadd.f32 %v4303_v32, %v6980_v2  ;;  %v4306_v0 = vadd.f32 %v4305_v50, %v4304_v36  ;;  %v4418_v58 = vadd.f32 %v4417_v35, %v4416_v23 }
 0x4b7   : > { %v3425_v56 = vadd.f32 %v4415_v1, %v3264_v7  ;;  %v3267_v55 = vadd.f32 %v4306_v0, %v6980_v2  ;;  %4580 = vmatmul.mubr.bf16.vlgmr.msra.gmra.mrb[160].mxu0 %v3656_v5 }
 0x4b9   : > { %v3533_v19 = vmul.f32 0.5, %v3425_v56  ;;  %v3428_v34 = vadd.f32 %v4418_v58, %v3267_v55 }
 0x4ba   : > { %v5358_v24 = vpop.eup %5357 }
 0x4bb   : > { %v3595_v41 = vadd.f32 1.0, %v5358_v24  ;;  %5361 = vtanh.f32 %v3533_v19  ;;  %v3534_v40 = vmul.f32 0.5, %v3428_v34 }
 0x4bc   : > { %v5360_v52 = vpop.eup %5359  ;;  %v4307_v27 = vpop.f32.mrb[112].mxu0 }
 0x4bd   : > { %v4419_v37 = vpop.f32.mrb[144].mxu1  ;;  %v3596_v28 = vadd.f32 1.0, %v5360_v52  ;;  %5363 = vtanh.f32 %v3534_v40  ;;  %v4308_v44 = vpop.f32.mrb[113].mxu0  ;;  %v3627_v12 = vmul.f32 0.5, %v3595_v41 }
 0x4be   : > { %v4420_v9 = vpop.f32.mrb[145].mxu1  ;;  %v4309_v20 = vadd.f32 %v4308_v44, %v4307_v27  ;;  %v4310_v26 = vpop.f32.mrb[114].mxu0 }
 0x4bf   : > { %v4421_v16 = vadd.f32 %v4420_v9, %v4419_v37  ;;  %v4422_v48 = vpop.f32.mrb[146].mxu1  ;;  %v4311_v33 = vpop.f32.mrb[115].mxu0  ;;  %v3628_v45 = vmul.f32 0.5, %v3596_v28 }
 0x4c0   : > { %v4423_v61 = vpop.f32.mrb[147].mxu1  ;;  %v3272_v10 = vadd.f32 %v4309_v20, %v6980_v2  ;;  %v4312_v8 = vadd.f32 %v4311_v33, %v4310_v26 }
 0x4c1   : > { %v4424_v42 = vadd.f32 %v4423_v61, %v4422_v48  ;;  %v3657_v51 = vpack.c.bf16 %v3628_v45, %v3627_v12 }
 0x4c2   : > { %v3433_v54 = vadd.f32 %v4421_v16, %v3272_v10  ;;  %v3275_v62 = vadd.f32 %v4312_v8, %v6980_v2 }
 0x4c3   : > { %4583 = vmatprep.mubr.bf16.mxu0 %v3657_v51 }
 0x4c4   : > { %v3535_v29 = vmul.f32 0.5, %v3433_v54  ;;  %v3436_v30 = vadd.f32 %v4424_v42, %v3275_v62 }
 0x4c5   : > { %v5362_v13 = vpop.eup %5361 }
 0x4c6   : > { %v3597_v53 = vadd.f32 1.0, %v5362_v13  ;;  %5365 = vtanh.f32 %v3535_v29  ;;  %v3536_v38 = vmul.f32 0.5, %v3436_v30 }
 0x4c7   : > { %v5364_v3 = vpop.eup %5363  ;;  %v4313_v63 = vpop.f32.mrb[116].mxu0 }
 0x4c8   : > { %v3598_v22 = vadd.f32 1.0, %v5364_v3  ;;  %5367 = vtanh.f32 %v3536_v38  ;;  %v4425_v46 = vpop.f32.mrb[148].mxu1  ;;  %v4314_v11 = vpop.f32.mrb[117].mxu0  ;;  %v3629_v14 = vmul.f32 0.5, %v3597_v53 }
 0x4c9   : > { %v4315_v60 = vadd.f32 %v4314_v11, %v4313_v63  ;;  %v4426_v15 = vpop.f32.mrb[149].mxu1  ;;  %v4316_v59 = vpop.f32.mrb[118].mxu0 }
 0x4ca   : > { %v4427_v57 = vadd.f32 %v4426_v15, %v4425_v46  ;;  %v4428_v49 = vpop.f32.mrb[150].mxu1  ;;  %v4317_v18 = vpop.f32.mrb[119].mxu0  ;;  %v3630_v21 = vmul.f32 0.5, %v3598_v22 }
 0x4cb   : > { %v3280_v31 = vadd.f32 %v4315_v60, %v6980_v2  ;;  %v4318_v17 = vadd.f32 %v4317_v18, %v4316_v59  ;;  %v4429_v39 = vpop.f32.mrb[151].mxu1 }
 0x4cc   : > { %v4430_v25 = vadd.f32 %v4429_v39, %v4428_v49  ;;  %v3658_v43 = vpack.c.bf16 %v3630_v21, %v3629_v14 }
 0x4cd   : > { %v3441_v4 = vadd.f32 %v4427_v57, %v3280_v31  ;;  %v3283_v6 = vadd.f32 %v4318_v17, %v6980_v2 }
 0x4ce   : > { %4584 = vmatmul.mubr.bf16.gmra.mrb[164].mxu0 %v3658_v43 }
 0x4cf   : > { %v3537_v47 = vmul.f32 0.5, %v3441_v4  ;;  %v3444_v32 = vadd.f32 %v4430_v25, %v3283_v6 }
 0x4d0   : > { %v5366_v1 = vpop.eup %5365 }
 0x4d1   : > { %v3599_v36 = vadd.f32 1.0, %v5366_v1  ;;  %5369 = vtanh.f32 %v3537_v47  ;;  %v3538_v23 = vmul.f32 0.5, %v3444_v32 }
 0x4d2   : > { %v5368_v50 = vpop.eup %5367  ;;  %v4319_v35 = vpop.f32.mrb[120].mxu0 }
 0x4d3   : > { %v3600_v5 = vadd.f32 1.0, %v5368_v50  ;;  %5371 = vtanh.f32 %v3538_v23  ;;  %v4431_v7 = vpop.f32.mrb[152].mxu1  ;;  %v4320_v0 = vpop.f32.mrb[121].mxu0  ;;  %v3631_v41 = vmul.f32 0.5, %v3599_v36 }
 0x4d4   : > { %v4321_v58 = vadd.f32 %v4320_v0, %v4319_v35  ;;  %v4432_v56 = vpop.f32.mrb[153].mxu1  ;;  %v4322_v55 = vpop.f32.mrb[122].mxu0 }
 0x4d5   : > { %v4433_v19 = vadd.f32 %v4432_v56, %v4431_v7  ;;  %v4434_v34 = vpop.f32.mrb[154].mxu1  ;;  %v4323_v24 = vpop.f32.mrb[123].mxu0  ;;  %v3632_v40 = vmul.f32 0.5, %v3600_v5 }
 0x4d6   : > { %v3288_v52 = vadd.f32 %v4321_v58, %v6980_v2  ;;  %v4324_v27 = vadd.f32 %v4323_v24, %v4322_v55  ;;  %v4435_v37 = vpop.f32.mrb[155].mxu1 }
 0x4d7   : > { %v4436_v28 = vadd.f32 %v4435_v37, %v4434_v34  ;;  %v3659_v44 = vpack.c.bf16 %v3632_v40, %v3631_v41 }
 0x4d8   : > { %v3449_v9 = vadd.f32 %v4433_v19, %v3288_v52  ;;  %v3291_v20 = vadd.f32 %v4324_v27, %v6980_v2 }
 0x4d9   : > { %4587 = vmatprep.mubr.bf16.mxu0 %v3659_v44 }
 0x4da   : > { %v3539_v16 = vmul.f32 0.5, %v3449_v9  ;;  %v3452_v26 = vadd.f32 %v4436_v28, %v3291_v20 }
 0x4db   : > { %v5370_v48 = vpop.eup %5369 }
 0x4dc   : > { %v3601_v33 = vadd.f32 1.0, %v5370_v48  ;;  %5373 = vtanh.f32 %v3539_v16  ;;  %v3540_v61 = vmul.f32 0.5, %v3452_v26 }
 0x4dd   : > { %v5372_v12 = vpop.eup %5371  ;;  %v4325_v45 = vpop.f32.mrb[124].mxu0 }
 0x4de   : > { %v3602_v10 = vadd.f32 1.0, %v5372_v12  ;;  %5375 = vtanh.f32 %v3540_v61  ;;  %v4437_v8 = vpop.f32.mrb[156].mxu1  ;;  %v4326_v42 = vpop.f32.mrb[125].mxu0  ;;  %v3633_v53 = vmul.f32 0.5, %v3601_v33 }
 0x4df   : > { %v4327_v51 = vadd.f32 %v4326_v42, %v4325_v45  ;;  %v4438_v54 = vpop.f32.mrb[157].mxu1  ;;  %v4328_v62 = vpop.f32.mrb[126].mxu0 }
 0x4e0   : > { %v4439_v29 = vadd.f32 %v4438_v54, %v4437_v8  ;;  %v4440_v30 = vpop.f32.mrb[158].mxu1  ;;  %v4329_v13 = vpop.f32.mrb[127].mxu0  ;;  %v3634_v38 = vmul.f32 0.5, %v3602_v10 }
 0x4e1   : > { %v3296_v3 = vadd.f32 %v4327_v51, %v6980_v2  ;;  %v4330_v63 = vadd.f32 %v4329_v13, %v4328_v62  ;;  %v4441_v22 = vpop.f32.mrb[159].mxu1 }
 0x4e2   : > { %v4442_v46 = vadd.f32 %v4441_v22, %v4440_v30  ;;  %v3660_v11 = vpack.c.bf16 %v3634_v38, %v3633_v53 }
 0x4e3   : > { %v3457_v60 = vadd.f32 %v4439_v29, %v3296_v3  ;;  %v3299_v15 = vadd.f32 %v4330_v63, %v6980_v2 }
 0x4e4   : > { %4588 = vmatmul.mubr.bf16.gmra.mrb[168].mxu0 %v3660_v11 }
 0x4e5   : > { %v3541_v59 = vmul.f32 0.5, %v3457_v60  ;;  %v3460_v57 = vadd.f32 %v4442_v46, %v3299_v15 }
 0x4e6   : > { %v5374_v49 = vpop.eup %5373 }
 0x4e7   : > { %v3603_v18 = vadd.f32 1.0, %v5374_v49  ;;  %5377 = vtanh.f32 %v3541_v59  ;;  %v3542_v14 = vmul.f32 0.5, %v3460_v57 }
 0x4e8   : > { %v5376_v21 = vpop.eup %5375  ;;  %v4331_v31 = vpop.f32.mrb[128].mxu0 }
 0x4e9   : > { %v3604_v17 = vadd.f32 1.0, %v5376_v21  ;;  %5379 = vtanh.f32 %v3542_v14  ;;  %v4443_v39 = vpop.f32.mrb[160].mxu1  ;;  %v4332_v25 = vpop.f32.mrb[129].mxu0  ;;  %v3635_v36 = vmul.f32 0.5, %v3603_v18 }
 0x4ea   : > { %v4333_v43 = vadd.f32 %v4332_v25, %v4331_v31  ;;  %v4444_v4 = vpop.f32.mrb[161].mxu1  ;;  %v4334_v6 = vpop.f32.mrb[130].mxu0 }
 0x4eb   : > { %v4445_v47 = vadd.f32 %v4444_v4, %v4443_v39  ;;  %v4446_v32 = vpop.f32.mrb[162].mxu1  ;;  %v4335_v1 = vpop.f32.mrb[131].mxu0  ;;  %v3636_v23 = vmul.f32 0.5, %v3604_v17 }
 0x4ec   : > { %v3304_v50 = vadd.f32 %v4333_v43, %v6980_v2  ;;  %v4336_v35 = vadd.f32 %v4335_v1, %v4334_v6  ;;  %v4447_v5 = vpop.f32.mrb[163].mxu1 }
 0x4ed   : > { %v4448_v7 = vadd.f32 %v4447_v5, %v4446_v32  ;;  %v3661_v0 = vpack.c.bf16 %v3636_v23, %v3635_v36 }
 0x4ee   : > { %v3465_v58 = vadd.f32 %v4445_v47, %v3304_v50  ;;  %v3307_v56 = vadd.f32 %v4336_v35, %v6980_v2 }
 0x4ef   : > { %4591 = vmatprep.mubr.bf16.mxu0 %v3661_v0 }
 0x4f0   : > { %v3543_v55 = vmul.f32 0.5, %v3465_v58  ;;  %v3468_v19 = vadd.f32 %v4448_v7, %v3307_v56 }
 0x4f1   : > { %v5378_v34 = vpop.eup %5377 }
 0x4f2   : > { %v3605_v24 = vadd.f32 1.0, %v5378_v34  ;;  %5381 = vtanh.f32 %v3543_v55  ;;  %v3544_v41 = vmul.f32 0.5, %v3468_v19 }
 0x4f3   : > { %v5380_v40 = vpop.eup %5379  ;;  %v4337_v52 = vpop.f32.mrb[132].mxu0 }
 0x4f4   : > { %v3606_v27 = vadd.f32 1.0, %v5380_v40  ;;  %5383 = vtanh.f32 %v3544_v41  ;;  %v4449_v37 = vpop.f32.mrb[164].mxu1  ;;  %v4338_v28 = vpop.f32.mrb[133].mxu0  ;;  %v3637_v33 = vmul.f32 0.5, %v3605_v24 }
 0x4f5   : > { %v4339_v44 = vadd.f32 %v4338_v28, %v4337_v52  ;;  %v4450_v9 = vpop.f32.mrb[165].mxu1  ;;  %v4340_v20 = vpop.f32.mrb[134].mxu0 }
 0x4f6   : > { %v4451_v16 = vadd.f32 %v4450_v9, %v4449_v37  ;;  %v4452_v26 = vpop.f32.mrb[166].mxu1  ;;  %v4341_v48 = vpop.f32.mrb[135].mxu0  ;;  %v3638_v61 = vmul.f32 0.5, %v3606_v27 }
 0x4f7   : > { %v3312_v12 = vadd.f32 %v4339_v44, %v6980_v2  ;;  %v4342_v45 = vadd.f32 %v4341_v48, %v4340_v20  ;;  %v4453_v10 = vpop.f32.mrb[167].mxu1 }
 0x4f8   : > { %v4454_v8 = vadd.f32 %v4453_v10, %v4452_v26  ;;  %v3662_v42 = vpack.c.bf16 %v3638_v61, %v3637_v33 }
 0x4f9   : > { %v3473_v51 = vadd.f32 %v4451_v16, %v3312_v12  ;;  %v3315_v54 = vadd.f32 %v4342_v45, %v6980_v2 }
 0x4fa   : > { %4592 = vmatmul.mubr.bf16.gmra.mrb[172].mxu0 %v3662_v42 }
 0x4fb   : > { %v3545_v62 = vmul.f32 0.5, %v3473_v51  ;;  %v3476_v29 = vadd.f32 %v4454_v8, %v3315_v54 }
 0x4fc   : > { %v5382_v30 = vpop.eup %5381 }
 0x4fd   : > { %v3607_v13 = vadd.f32 1.0, %v5382_v30  ;;  %5385 = vtanh.f32 %v3545_v62  ;;  %v3546_v53 = vmul.f32 0.5, %v3476_v29 }
 0x4fe   : > { %v5384_v38 = vpop.eup %5383  ;;  %v4343_v3 = vpop.f32.mrb[136].mxu0 }
 0x4ff   : > { %v3608_v63 = vadd.f32 1.0, %v5384_v38  ;;  %5387 = vtanh.f32 %v3546_v53  ;;  %v4455_v22 = vpop.f32.mrb[168].mxu1  ;;  %v4344_v46 = vpop.f32.mrb[137].mxu0  ;;  %v3639_v18 = vmul.f32 0.5, %v3607_v13 }
 0x500   : > { %v4345_v11 = vadd.f32 %v4344_v46, %v4343_v3  ;;  %v4456_v60 = vpop.f32.mrb[169].mxu1  ;;  %v4346_v15 = vpop.f32.mrb[138].mxu0 }
 0x501   : > { %v4457_v59 = vadd.f32 %v4456_v60, %v4455_v22  ;;  %v4458_v57 = vpop.f32.mrb[170].mxu1  ;;  %v4347_v49 = vpop.f32.mrb[139].mxu0  ;;  %v3640_v14 = vmul.f32 0.5, %v3608_v63 }
 0x502   : > { %v3320_v21 = vadd.f32 %v4345_v11, %v6980_v2  ;;  %v4348_v31 = vadd.f32 %v4347_v49, %v4346_v15  ;;  %v4459_v17 = vpop.f32.mrb[171].mxu1 }
 0x503   : > { %v4460_v39 = vadd.f32 %v4459_v17, %v4458_v57  ;;  %v3663_v25 = vpack.c.bf16 %v3640_v14, %v3639_v18 }
 0x504   : > { %v3481_v43 = vadd.f32 %v4457_v59, %v3320_v21  ;;  %v3323_v4 = vadd.f32 %v4348_v31, %v6980_v2 }
 0x505   : > { %4595 = vmatprep.mubr.bf16.mxu0 %v3663_v25 }
 0x506   : > { %v3547_v6 = vmul.f32 0.5, %v3481_v43  ;;  %v3484_v47 = vadd.f32 %v4460_v39, %v3323_v4 }
 0x507   : > { %v5386_v32 = vpop.eup %5385 }
 0x508   : > { %v3609_v1 = vadd.f32 1.0, %v5386_v32  ;;  %5389 = vtanh.f32 %v3547_v6  ;;  %v3548_v36 = vmul.f32 0.5, %v3484_v47 }
 0x509   : > { %v5388_v23 = vpop.eup %5387  ;;  %v4349_v50 = vpop.f32.mrb[140].mxu0 }
 0x50a   : > { %v3610_v35 = vadd.f32 1.0, %v5388_v23  ;;  %5391 = vtanh.f32 %v3548_v36  ;;  %v4461_v5 = vpop.f32.mrb[172].mxu1  ;;  %v4350_v7 = vpop.f32.mrb[141].mxu0  ;;  %v3641_v24 = vmul.f32 0.5, %v3609_v1 }
 0x50b   : > { %v4351_v0 = vadd.f32 %v4350_v7, %v4349_v50  ;;  %v4462_v58 = vpop.f32.mrb[173].mxu1  ;;  %v4352_v56 = vpop.f32.mrb[142].mxu0 }
 0x50c   : > { %v4463_v55 = vadd.f32 %v4462_v58, %v4461_v5  ;;  %v4464_v19 = vpop.f32.mrb[174].mxu1  ;;  %v4353_v34 = vpop.f32.mrb[143].mxu0  ;;  %v3642_v41 = vmul.f32 0.5, %v3610_v35 }
 0x50d   : > { %v3328_v40 = vadd.f32 %v4351_v0, %v6980_v2  ;;  %v4354_v52 = vadd.f32 %v4353_v34, %v4352_v56  ;;  %v4465_v27 = vpop.f32.mrb[175].mxu1 }
 0x50e   : > { %v4466_v37 = vadd.f32 %v4465_v27, %v4464_v19  ;;  %v3664_v28 = vpack.c.bf16 %v3642_v41, %v3641_v24 }
 0x50f   : > { %v3489_v44 = vadd.f32 %v4463_v55, %v3328_v40  ;;  %v3331_v9 = vadd.f32 %v4354_v52, %v6980_v2 }
 0x510   : > { %4596 = vmatmul.mubr.bf16.gmra.mrb[176].mxu0 %v3664_v28 }
 0x511   : > { %v3549_v20 = vmul.f32 0.5, %v3489_v44  ;;  %v3492_v16 = vadd.f32 %v4466_v37, %v3331_v9 }
 0x512   : > { %v5390_v26 = vpop.eup %5389 }
 0x513   : > { %v3611_v48 = vadd.f32 1.0, %v5390_v26  ;;  %5393 = vtanh.f32 %v3549_v20  ;;  %v3550_v33 = vmul.f32 0.5, %v3492_v16 }
 0x514   : > { %v5392_v61 = vpop.eup %5391  ;;  %v4355_v12 = vpop.f32.mrb[144].mxu0 }
 0x515   : > { %v3612_v45 = vadd.f32 1.0, %v5392_v61  ;;  %5395 = vtanh.f32 %v3550_v33  ;;  %v4467_v10 = vpop.f32.mrb[176].mxu1  ;;  %v4356_v8 = vpop.f32.mrb[145].mxu0  ;;  %v3643_v13 = vmul.f32 0.5, %v3611_v48 }
 0x516   : > { %v4357_v42 = vadd.f32 %v4356_v8, %v4355_v12  ;;  %v4468_v51 = vpop.f32.mrb[177].mxu1  ;;  %v4358_v54 = vpop.f32.mrb[146].mxu0 }
 0x517   : > { %v4469_v62 = vadd.f32 %v4468_v51, %v4467_v10  ;;  %v4470_v29 = vpop.f32.mrb[178].mxu1  ;;  %v4359_v30 = vpop.f32.mrb[147].mxu0  ;;  %v3644_v53 = vmul.f32 0.5, %v3612_v45 }
 0x518   : > { %v3336_v38 = vadd.f32 %v4357_v42, %v6980_v2  ;;  %v4360_v3 = vadd.f32 %v4359_v30, %v4358_v54  ;;  %v4471_v63 = vpop.f32.mrb[179].mxu1 }
 0x519   : > { %v4472_v22 = vadd.f32 %v4471_v63, %v4470_v29  ;;  %v3665_v46 = vpack.c.bf16 %v3644_v53, %v3643_v13 }
 0x51a   : > { %v3497_v11 = vadd.f32 %v4469_v62, %v3336_v38  ;;  %v3339_v60 = vadd.f32 %v4360_v3, %v6980_v2 }
 0x51b   : > { %4599 = vmatprep.mubr.bf16.mxu0 %v3665_v46 }
 0x51c   : > { %v3551_v15 = vmul.f32 0.5, %v3497_v11  ;;  %v3500_v59 = vadd.f32 %v4472_v22, %v3339_v60  ;;  %v4361_v57 = vpop.f32.mrb[148].mxu0 }
 0x51d   : > { %v5394_v49 = vpop.eup %5393  ;;  %v4473_v18 = vpop.f32.mrb[180].mxu1 }
 0x51e   : > { %v4362_v14 = vpop.f32.mrb[149].mxu0  ;;  %v3613_v21 = vadd.f32 1.0, %v5394_v49  ;;  %5397 = vtanh.f32 %v3551_v15  ;;  %v3552_v31 = vmul.f32 0.5, %v3500_v59  ;;  %v4474_v39 = vpop.f32.mrb[181].mxu1 }
 0x51f   : > { %v4363_v17 = vadd.f32 %v4362_v14, %v4361_v57  ;;  %v4364_v25 = vpop.f32.mrb[150].mxu0  ;;  %v5396_v43 = vpop.eup %5395  ;;  %v4475_v4 = vadd.f32 %v4474_v39, %v4473_v18 }
 0x520   : > { %v4476_v6 = vpop.f32.mrb[182].mxu1  ;;  %v4365_v47 = vpop.f32.mrb[151].mxu0  ;;  %v3614_v32 = vadd.f32 1.0, %v5396_v43  ;;  %5399 = vtanh.f32 %v3552_v31  ;;  %v3645_v7 = vmul.f32 0.5, %v3613_v21 }
 0x521   : > { %v3344_v1 = vadd.f32 %v4363_v17, %v6980_v2  ;;  %v4366_v36 = vadd.f32 %v4365_v47, %v4364_v25  ;;  %v4477_v23 = vpop.f32.mrb[183].mxu1 }
 0x522   : > { %v4478_v50 = vadd.f32 %v4477_v23, %v4476_v6  ;;  %v3646_v0 = vmul.f32 0.5, %v3614_v32 }
 0x523   : > { %v3505_v35 = vadd.f32 %v4475_v4, %v3344_v1  ;;  %v3347_v5 = vadd.f32 %v4366_v36, %v6980_v2 }
 0x524   : > { %v4367_v55 = vpop.f32.mrb[152].mxu0  ;;  %v3666_v19 = vpack.c.bf16 %v3646_v0, %v3645_v7 }
 0x525   : > { %v3553_v58 = vmul.f32 0.5, %v3505_v35  ;;  %v3508_v56 = vadd.f32 %v4478_v50, %v3347_v5  ;;  %v4479_v34 = vpop.f32.mrb[184].mxu1  ;;  %v4368_v24 = vpop.f32.mrb[153].mxu0 }
 0x526   : > { %v4369_v40 = vadd.f32 %v4368_v24, %v4367_v55  ;;  %v4480_v52 = vpop.f32.mrb[185].mxu1  ;;  %v4370_v27 = vpop.f32.mrb[154].mxu0  ;;  %4600 = vmatmul.mubr.bf16.gmra.mrb[180].mxu0 %v3666_v19 }
 0x527   : > { %5401 = vtanh.f32 %v3553_v58  ;;  %v3554_v41 = vmul.f32 0.5, %v3508_v56  ;;  %v4481_v37 = vadd.f32 %v4480_v52, %v4479_v34  ;;  %v4482_v28 = vpop.f32.mrb[186].mxu1  ;;  %v4371_v44 = vpop.f32.mrb[155].mxu0  ;;  %v7018_v34 = vld [vmem:[%s7190_s14] ss:$0 sm:$0xff] }
 0x528   : > { %v5398_v9 = vpop.eup %5397  ;;  %v3352_v20 = vadd.f32 %v4369_v40, %v6980_v2  ;;  %v4372_v16 = vadd.f32 %v4371_v44, %v4370_v27  ;;  %v4483_v26 = vpop.f32.mrb[187].mxu1 }
 0x529   : > { %5403 = vtanh.f32 %v3554_v41  ;;  %v3615_v48 = vadd.f32 1.0, %v5398_v9  ;;  %v4484_v33 = vadd.f32 %v4483_v26, %v4482_v28 }
 0x52a   : > { %v5400_v61 = vpop.eup %5399  ;;  %v3513_v12 = vadd.f32 %v4481_v37, %v3352_v20  ;;  %v3355_v45 = vadd.f32 %v4372_v16, %v6980_v2 }
 0x52b   : > { %v3616_v10 = vadd.f32 1.0, %v5400_v61  ;;  %v3647_v29 = vmul.f32 0.5, %v3615_v48 }
 0x52c   : > { %v3555_v8 = vmul.f32 0.5, %v3513_v12  ;;  %v3516_v42 = vadd.f32 %v4484_v33, %v3355_v45  ;;  %v4373_v51 = vpop.f32.mrb[156].mxu0 }
 0x52d   : > { %v4485_v54 = vpop.f32.mrb[188].mxu1  ;;  %v4374_v62 = vpop.f32.mrb[157].mxu0  ;;  %v3648_v30 = vmul.f32 0.5, %v3616_v10 }
 0x52e   : > { %5405 = vtanh.f32 %v3555_v8  ;;  %v3556_v13 = vmul.f32 0.5, %v3516_v42  ;;  %v4375_v53 = vadd.f32 %v4374_v62, %v4373_v51  ;;  %v4486_v38 = vpop.f32.mrb[189].mxu1  ;;  %v4376_v3 = vpop.f32.mrb[158].mxu0 }
 0x52f   : > { %v4487_v63 = vadd.f32 %v4486_v38, %v4485_v54  ;;  %v4488_v22 = vpop.f32.mrb[190].mxu1  ;;  %v4377_v46 = vpop.f32.mrb[159].mxu0  ;;  %v3667_v11 = vpack.c.bf16 %v3648_v30, %v3647_v29 }
 0x530   : > { %5407 = vtanh.f32 %v3556_v13  ;;  %v3360_v15 = vadd.f32 %v4375_v53, %v6980_v2  ;;  %v4378_v59 = vadd.f32 %v4377_v46, %v4376_v3  ;;  %v4489_v57 = vpop.f32.mrb[191].mxu1 }
 0x531   : > { %v5402_v60 = vpop.eup %5401  ;;  %v4490_v18 = vadd.f32 %v4489_v57, %v4488_v22  ;;  %4603 = vmatprep.mubr.bf16.mxu0 %v3667_v11 }
 0x532   : > { %v3617_v49 = vadd.f32 1.0, %v5402_v60  ;;  %v3521_v21 = vadd.f32 %v4487_v63, %v3360_v15  ;;  %v3363_v31 = vadd.f32 %v4378_v59, %v6980_v2 }
 0x533   : > { %v5404_v14 = vpop.eup %5403 }
 0x534   : > { %v3618_v17 = vadd.f32 1.0, %v5404_v14  ;;  %v3557_v39 = vmul.f32 0.5, %v3521_v21  ;;  %v3524_v25 = vadd.f32 %v4490_v18, %v3363_v31  ;;  %v3649_v43 = vmul.f32 0.5, %v3617_v49 }
 0x536   : > { %v3650_v4 = vmul.f32 0.5, %v3618_v17  ;;  %5409 = vtanh.f32 %v3557_v39  ;;  %v3558_v6 = vmul.f32 0.5, %v3524_v25 }
 0x538   : > { %v3668_v47 = vpack.c.bf16 %v3650_v4, %v3649_v43  ;;  %v5406_v32 = vpop.eup %5405  ;;  %5411 = vtanh.f32 %v3558_v6 }
 0x539   : > { %v3619_v1 = vadd.f32 1.0, %v5406_v32 }
 0x53a   : > { %4604 = vmatmul.mubr.bf16.gmra.mrb[184].mxu0 %v3668_v47  ;;  %v5408_v36 = vpop.eup %5407 }
 0x53b   : > { %v3620_v23 = vadd.f32 1.0, %v5408_v36  ;;  %v3651_v50 = vmul.f32 0.5, %v3619_v1 }
 0x53d   : > { %v3652_v35 = vmul.f32 0.5, %v3620_v23 }
 0x53f   : > { %v3669_v5 = vpack.c.bf16 %v3652_v35, %v3651_v50 }
 0x540   : > { %v5410_v7 = vpop.eup %5409 }
 0x541   : > { %v3621_v2 = vadd.f32 1.0, %v5410_v7  ;;  %4607 = vmatprep.mubr.bf16.mxu0 %v3669_v5 }
 0x542   : > { %v5412_v0 = vpop.eup %5411 }
 0x543   : > { %v3622_v58 = vadd.f32 1.0, %v5412_v0  ;;  %v3653_v56 = vmul.f32 0.5, %v3621_v2 }
 0x545   : > { %v3654_v55 = vmul.f32 0.5, %v3622_v58 }
 0x547   : > { %v3670_v19 = vpack.c.bf16 %v3654_v55, %v3653_v56 }
 0x549   : > { %4608 = vmatmul.mubr.bf16.gmra.mrb[188].mxu0 %v3670_v19 }
 0x58a   : > { %v4581_v24 = vpop.f32.mrb[160].mxu0 }
 0x58b   : > { %v3785_v41 = vadd.f32 %v4581_v24, %v7018_v34  ;;  %v3776_v40 = vpop.f32.mrb[161].mxu0 }
 0x58c   : > { %v3777_v52 = vadd.f32 %v7018_v34, %v3776_v40  ;;  %v4582_v27 = vpop.f32.mrb[162].mxu0 }
 0x58d   : > { %3905 = vst [vmem:[%s7022_s30 + $0x10] sm:$0xff] %v3785_v41  ;;  %v3788_v37 = vadd.f32 %v4582_v27, %v7018_v34  ;;  %v3779_v28 = vpop.f32.mrb[163].mxu0 }
 0x58e   : > { %3903 = vst [vmem:[%s7022_s30] sm:$0xff] %v3777_v52  ;;  %v3780_v44 = vadd.f32 %v7018_v34, %v3779_v28 }
 0x58f   : > { %3906 = vst [vmem:[%s7022_s30 + $0x18] sm:$0xff] %v3788_v37 }
 0x590   : > { %3904 = vst [vmem:[%s7022_s30 + $0x8] sm:$0xff] %v3780_v44 }
 0x5a1   : > { %v4585_v9 = vpop.f32.mrb[164].mxu0 }
 0x5a2   : > { %v3801_v20 = vadd.f32 %v4585_v9, %v7018_v34  ;;  %v3792_v16 = vpop.f32.mrb[165].mxu0 }
 0x5a3   : > { %v3793_v26 = vadd.f32 %v7018_v34, %v3792_v16  ;;  %v4586_v48 = vpop.f32.mrb[166].mxu0 }
 0x5a4   : > { %3909 = vst [vmem:[%s7022_s30 + $0x30] sm:$0xff] %v3801_v20  ;;  %v3804_v33 = vadd.f32 %v4586_v48, %v7018_v34  ;;  %v3795_v61 = vpop.f32.mrb[167].mxu0 }
 0x5a5   : > { %3907 = vst [vmem:[%s7022_s30 + $0x20] sm:$0xff] %v3793_v26  ;;  %v3796_v12 = vadd.f32 %v7018_v34, %v3795_v61 }
 0x5a6   : > { %3910 = vst [vmem:[%s7022_s30 + $0x38] sm:$0xff] %v3804_v33 }
 0x5a7   : > { %3908 = vst [vmem:[%s7022_s30 + $0x28] sm:$0xff] %v3796_v12 }
 0x5b7   : > { %v4589_v45 = vpop.f32.mrb[168].mxu0 }
 0x5b8   : > { %v3817_v10 = vadd.f32 %v4589_v45, %v7018_v34  ;;  %v3808_v8 = vpop.f32.mrb[169].mxu0 }
 0x5b9   : > { %v3809_v42 = vadd.f32 %v7018_v34, %v3808_v8  ;;  %v4590_v51 = vpop.f32.mrb[170].mxu0 }
 0x5ba   : > { %3913 = vst [vmem:[%s7022_s30 + $0x50] sm:$0xff] %v3817_v10  ;;  %v3820_v54 = vadd.f32 %v4590_v51, %v7018_v34  ;;  %v3811_v62 = vpop.f32.mrb[171].mxu0 }
 0x5bb   : > { %3911 = vst [vmem:[%s7022_s30 + $0x40] sm:$0xff] %v3809_v42  ;;  %v3812_v29 = vadd.f32 %v7018_v34, %v3811_v62 }
 0x5bc   : > { %3914 = vst [vmem:[%s7022_s30 + $0x58] sm:$0xff] %v3820_v54 }
 0x5bd   : > { %3912 = vst [vmem:[%s7022_s30 + $0x48] sm:$0xff] %v3812_v29 }
 0x5cd   : > { %v4593_v30 = vpop.f32.mrb[172].mxu0 }
 0x5ce   : > { %v3833_v13 = vadd.f32 %v4593_v30, %v7018_v34  ;;  %v3824_v53 = vpop.f32.mrb[173].mxu0 }
 0x5cf   : > { %v3825_v38 = vadd.f32 %v7018_v34, %v3824_v53  ;;  %v4594_v3 = vpop.f32.mrb[174].mxu0 }
 0x5d0   : > { %3917 = vst [vmem:[%s7022_s30 + $0x70] sm:$0xff] %v3833_v13  ;;  %v3836_v63 = vadd.f32 %v4594_v3, %v7018_v34  ;;  %v3827_v22 = vpop.f32.mrb[175].mxu0 }
 0x5d1   : > { %3915 = vst [vmem:[%s7022_s30 + $0x60] sm:$0xff] %v3825_v38  ;;  %v3828_v46 = vadd.f32 %v7018_v34, %v3827_v22 }
 0x5d2   : > { %3918 = vst [vmem:[%s7022_s30 + $0x78] sm:$0xff] %v3836_v63 }
 0x5d3   : > { %3916 = vst [vmem:[%s7022_s30 + $0x68] sm:$0xff] %v3828_v46 }
 0x5e3   : > { %v4597_v11 = vpop.f32.mrb[176].mxu0 }
 0x5e4   : > { %v3849_v60 = vadd.f32 %v4597_v11, %v7018_v34  ;;  %v3840_v15 = vpop.f32.mrb[177].mxu0 }
 0x5e5   : > { %v3841_v59 = vadd.f32 %v7018_v34, %v3840_v15  ;;  %v4598_v57 = vpop.f32.mrb[178].mxu0 }
 0x5e6   : > { %3921 = vst [vmem:[%s7022_s30 + $0x90] sm:$0xff] %v3849_v60  ;;  %v3852_v49 = vadd.f32 %v4598_v57, %v7018_v34  ;;  %v3843_v18 = vpop.f32.mrb[179].mxu0 }
 0x5e7   : > { %3919 = vst [vmem:[%s7022_s30 + $0x80] sm:$0xff] %v3841_v59  ;;  %v3844_v14 = vadd.f32 %v7018_v34, %v3843_v18 }
 0x5e8   : > { %3922 = vst [vmem:[%s7022_s30 + $0x98] sm:$0xff] %v3852_v49 }
 0x5e9   : > { %3920 = vst [vmem:[%s7022_s30 + $0x88] sm:$0xff] %v3844_v14 }
 0x5f9   : > { %v4601_v21 = vpop.f32.mrb[180].mxu0 }
 0x5fa   : > { %v3865_v31 = vadd.f32 %v4601_v21, %v7018_v34  ;;  %v3856_v17 = vpop.f32.mrb[181].mxu0 }
 0x5fb   : > { %v3857_v39 = vadd.f32 %v7018_v34, %v3856_v17  ;;  %v4602_v25 = vpop.f32.mrb[182].mxu0 }
 0x5fc   : > { %3925 = vst [vmem:[%s7022_s30 + $0xb0] sm:$0xff] %v3865_v31  ;;  %v3868_v43 = vadd.f32 %v4602_v25, %v7018_v34  ;;  %v3859_v4 = vpop.f32.mrb[183].mxu0 }
 0x5fd   : > { %3923 = vst [vmem:[%s7022_s30 + $0xa0] sm:$0xff] %v3857_v39  ;;  %v3860_v6 = vadd.f32 %v7018_v34, %v3859_v4 }
 0x5fe   : > { %3926 = vst [vmem:[%s7022_s30 + $0xb8] sm:$0xff] %v3868_v43 }
 0x5ff   : > { %3924 = vst [vmem:[%s7022_s30 + $0xa8] sm:$0xff] %v3860_v6 }
 0x60d   : > { %v4605_v47 = vpop.f32.mrb[184].mxu0 }
 0x60e   : > { %v3881_v32 = vadd.f32 %v4605_v47, %v7018_v34  ;;  %v3872_v1 = vpop.f32.mrb[185].mxu0 }
 0x60f   : > { %v3873_v36 = vadd.f32 %v7018_v34, %v3872_v1  ;;  %v4606_v23 = vpop.f32.mrb[186].mxu0 }
 0x610   : > { %3929 = vst [vmem:[%s7022_s30 + $0xd0] sm:$0xff] %v3881_v32  ;;  %v3884_v50 = vadd.f32 %v4606_v23, %v7018_v34  ;;  %v3875_v35 = vpop.f32.mrb[187].mxu0 }
 0x611   : > { %3927 = vst [vmem:[%s7022_s30 + $0xc0] sm:$0xff] %v3873_v36  ;;  %v3876_v5 = vadd.f32 %v7018_v34, %v3875_v35 }
 0x612   : > { %3930 = vst [vmem:[%s7022_s30 + $0xd8] sm:$0xff] %v3884_v50 }
 0x613   : > { %3928 = vst [vmem:[%s7022_s30 + $0xc8] sm:$0xff] %v3876_v5 }
 0x61c   : > { %v4609_v7 = vpop.f32.mrb[188].mxu0 }
 0x61d   : > { %v3897_v2 = vadd.f32 %v4609_v7, %v7018_v34  ;;  %v3888_v0 = vpop.f32.mrb[189].mxu0 }
 0x61e   : > { %v3889_v58 = vadd.f32 %v7018_v34, %v3888_v0  ;;  %v4610_v56 = vpop.f32.mrb[190].mxu0 }
 0x61f   : > { %3933 = vst [vmem:[%s7022_s30 + $0xf0] sm:$0xff] %v3897_v2  ;;  %v3900_v55 = vadd.f32 %v4610_v56, %v7018_v34  ;;  %v3891_v19 = vpop.f32.mrb[191].mxu0 }
 0x620   : > { %3931 = vst [vmem:[%s7022_s30 + $0xe0] sm:$0xff] %v3889_v58  ;;  %v3892_v24 = vadd.f32 %v7018_v34, %v3891_v19 }
 0x621   : > { %3934 = vst [vmem:[%s7022_s30 + $0xf8] sm:$0xff] %v3900_v55 }
 0x622   : > { %3932 = vst [vmem:[%s7022_s30 + $0xe8] sm:$0xff] %v3892_v24 }
 0x623   : > { %5596 = shalt.err (!%p5593_p8)
}
 0x624   : > { %s5597_s28 = scalar_lea.hbm %s7087_s10, 4096  ;;  %s5601_s30 = scalar_lea.hbm %s7191_s22, 8192 }
 0x625   : > { %p5598_p6 = scmp.ne.s32.totalorder %s7087_s10, %s5597_s28  ;;  %p5602_p3 = scmp.lt.u32.totalorder %s7087_s10, %s7191_s22 }
 0x626   : > { %p5603_p0 = scmp.lt.u32.totalorder %s5601_s30, %s5597_s28  ;;  %p5605_p2 = scmp.lt.u32.totalorder %s5597_s28, %s7087_s10 }
 0x627   : > { %p5599_p9 = pnand %p5598_p6, %p7192_p7 }
 0x628   : > { %p5604_p5 = por %p5603_p0, %p5602_p3 }
 0x629   : > { %p5600_p4 = pneg %p5599_p9 }
 0x62a   : > { %p5606_p10 = por %p5605_p2, %p5604_p5 }
 0x62c   : > { %p5607_p1 = pnand %p5606_p10, %p5600_p4 }
 0x62e   : > { %5610 = shalt.err (!%p5607_p1)
}
 0x62f   : > { %s5677_s11 = smov 128   ;;  %s5678_s27 = smov 8  }
 0x630   : > { %4633 = dma.vmem_to_hbm [thread:$0]  (%p7192_p7), %s7089_s12, 4096, %s7087_s10, %s3936_s23, %s5677_s11, %s5677_s11, %s5678_s27  }
 0x631 PF: > { %s3964_s29 = sand.u32 1, %s5649_s17   ;;  %p7193_p11 = scmp.ne.s32.totalorder %s7172_s8, 0 }
 0x632   : > { %p7194_p12 = scmp.ge.s32.totalorder %s5661_s20, 2  ;;  %s3965_s13 = scalar_lea.sflag [#allocation4], %s3964_s29 }
 0x634   : > { %p4656_p13 = pnand %p7194_p12, %p7193_p11 }
 0x636   : > { %5644 = dma.done.wait (!%p4656_p13), %s3965_s13, 4096  }
 0x637   : > { %5646 = vsyncadd (!%p4656_p13), %s3965_s13, 4294963200  ;;  %p27_p8 = scmp.ge.s32.totalorder %s5902_s16, 4   ;;  %s7195_s17 = smov %s5653_s18 }
 0x638   : > { %s7196_s18 = smov %s5657_s19  ;;  %s7197_s19 = smov %s5914_s5 }
 0x639   : > { %s7198_s20 = smov %s5902_s16  ;;  %29 = sbr.rel (!%p27_p8) target bundleno = 14 (0xe), region = 129 }
 0x640   :  { %3970 = vsyncpa [#allocation3], 1 }
 0x641   :  { %3972 = vsyncpa [#allocation3 + $0x1], 1 }
 0x642   :  { %3973 = vsyncpa [#allocation6], 1 }
 0x643   :  { %3974 = vsyncpa [#allocation9], 1 }
 0x644   :  { %3975 = vsyncpa [#allocation12], 1 }
 0x645   :  { %3976 = vsyncpa [#allocation4], 1 }
 0x646   :  { %3978 = vsyncpa [#allocation4 + $0x1], 1 }

</bundles_post_ra>
